<compile_context>
chip_gen: v5e
topology: v5e:2x2
jax: 0.10.0
libtpu: 0.0.40
codegen_flags: <defaults>
</compile_context>

<pallas_src>
import functools

import jax
import jax.numpy as jnp
from jax.experimental import pallas as pl
from jax.experimental.pallas import tpu as pltpu


# ----------------------------- configuration ------------------------------
X_DIM = 256     # input feature dim  (x_dim)
Z_DIM = 16      # latent dim         (z_dim)
H1, H2, H3 = 512, 128, 32   # fixed hidden sizes from the module
VAR = True      # self.var
IS_TRAIN = True # self.isTrain
DROPOUT_P = 0.5 # self.dropout


def _softplus(x):
    # numerically-stable softplus (matches F.softplus semantics)
    return jnp.maximum(x, 0.0) + jnp.log1p(jnp.exp(-jnp.abs(x)))


def _sigmoid(x):
    # stable logistic: one exp (EUP) + approx reciprocal (EUP), no inf intermediates
    e = jnp.exp(-jnp.abs(x))
    r = pl.reciprocal(1.0 + e, approx=True)
    return jnp.where(x >= 0.0, r, e * r)


def vasc_kernel(inv_tau, var, is_train, z_dim,
                # data / noise (batch-tiled)
                x_ref, mask_ref, eps_ref, gdiff_ref,
                # encoder params (VMEM-resident)
                w1_ref, b1_ref, w2_ref, b2_ref, w3_ref, b3_ref, wz_ref, bz_ref,
                # decoder params (VMEM-resident)
                w4_ref, b4_ref, w5_ref, b5_ref, w6_ref, b6_ref, wd_ref, bd_ref,
                # outputs
                out_ref, mlv_ref):
    f32 = jnp.float32
    bf16 = jnp.bfloat16

    def linear(a, w_ref, b_ref):
        # bf16 MXU matmul with f32 accumulation; bias add in f32
        return jnp.dot(a.astype(bf16), w_ref[...], preferred_element_type=f32) + b_ref[...]

    # ----------------------------- encoder -----------------------------
    x = x_ref[...]
    if is_train:
        x = x * mask_ref[...]                      # nn.Dropout (mask pre-scaled by 1/(1-p))

    h1 = linear(x, w1_ref, b1_ref)                                  # fc1 (no activation)
    h2 = jnp.maximum(linear(h1, w2_ref, b2_ref), 0.0)               # fc2 + relu
    h3 = jnp.maximum(linear(h2, w3_ref, b3_ref), 0.0)               # fc3 + relu

    mlv = linear(h3, wz_ref, bz_ref)               # fused [z_mean | z_log_var]  -> (TM, 2*z_dim)
    mu = mlv[:, :z_dim]
    zlv = mlv[:, z_dim:]
    if var:
        log_var = _softplus(zlv)
    else:
        log_var = zlv

    # ---------------------------- sampling ----------------------------
    eps = eps_ref[...]
    if var:
        std = jnp.exp(0.5 * log_var)
    else:
        # torch.exp(0.5 * ones) -> constant exp(0.5), independent of log_var (matches reference)
        std = jnp.full_like(log_var, jnp.exp(jnp.float32(0.5)))
    z = eps * std + mu

    # ----------------------------- decoder -----------------------------
    h4 = jnp.maximum(linear(z,  w4_ref, b4_ref), 0.0)
    h5 = jnp.maximum(linear(h4, w5_ref, b5_ref), 0.0)
    h6 = jnp.maximum(linear(h5, w6_ref, b6_ref), 0.0)
    expr_x = _sigmoid(linear(h6, wd_ref, bd_ref))

    if is_train:
        # p = exp(-expr^2) in [e^-1, 1]  =>  log(p + 1e-20) == -expr^2 exactly
        log_p = -(expr_x * expr_x)
        p = jnp.exp(log_p)
        log_q = jnp.log(1.0 - p + 1e-20)
        # softmax over the 2 classes at temperature tau, keep class 1:
        #   softmax([lp+g0, lq+g1]/tau)[1] == sigmoid(((lq+g1)-(lp+g0)) * inv_tau)
        # gdiff = g1 - g0 is precomputed in the wrapper.
        samples = _sigmoid((log_q - log_p + gdiff_ref[...]) * inv_tau)
        out = expr_x * samples
    else:
        out = expr_x

    out_ref[...] = out
    mlv_ref[...] = jnp.concatenate([mu, log_var], axis=-1)   # single 2*z_dim lane slab


def vasc_forward(x, mask, eps, gdiff, params, tau, *, tm=128):
    """Run the VASC forward pass. n should be a multiple of 8 (ideally of tm)."""
    n, x_dim = x.shape
    z_dim = eps.shape[1]
    inv_tau = 1.0 / float(tau)

    def row_spec(d):
        return pl.BlockSpec((tm, d), lambda i: (i, 0))

    def full_spec(a):
        return pl.BlockSpec(a.shape, lambda i: (0, 0))   # resident across batch tiles

    weight_ops = [
        params["w1"], params["b1"], params["w2"], params["b2"],
        params["w3"], params["b3"], params["wz"], params["bz"],
        params["w4"], params["b4"], params["w5"], params["b5"],
        params["w6"], params["b6"], params["wd"], params["bd"],
    ]
    operands = [x, mask, eps, gdiff] + weight_ops

    in_specs = [row_spec(x_dim), row_spec(x_dim), row_spec(z_dim), row_spec(x_dim)]
    in_specs += [full_spec(w) for w in weight_ops]

    kernel = functools.partial(vasc_kernel, inv_tau, VAR, IS_TRAIN, z_dim)

    out, mlv = pl.pallas_call(
        kernel,
        grid=(pl.cdiv(n, tm),),
        out_shape=(
            jax.ShapeDtypeStruct((n, x_dim), jnp.float32),       # out
            jax.ShapeDtypeStruct((n, 2 * z_dim), jnp.float32),   # [mu | log_var] slab
        ),
        in_specs=in_specs,
        out_specs=(
            pl.BlockSpec((tm, x_dim), lambda i: (i, 0)),
            pl.BlockSpec((tm, 2 * z_dim), lambda i: (i, 0)),
        ),
        compiler_params=pltpu.CompilerParams(dimension_semantics=("parallel",)),
    )(*operands)

    mu = mlv[:, :z_dim]
    log_var = mlv[:, z_dim:]
    return out, mu, log_var


def init_linear(key, fan_in, fan_out, w_dtype=jnp.bfloat16):
    # deterministic PyTorch-Linear-style init: U(-1/sqrt(fan_in), 1/sqrt(fan_in))
    kw, kb = jax.random.split(key)
    bound = 1.0 / (float(fan_in) ** 0.5)
    w = jax.random.uniform(kw, (fan_in, fan_out), jnp.float32, -bound, bound).astype(w_dtype)
    b = jax.random.uniform(kb, (1, fan_out), jnp.float32, -bound, bound)
    return w, b


def init_params(key, x_dim, z_dim):
    ks = jax.random.split(key, 9)
    p = {}
    p["w1"], p["b1"] = init_linear(ks[0], x_dim, H1)
    p["w2"], p["b2"] = init_linear(ks[1], H1, H2)
    p["w3"], p["b3"] = init_linear(ks[2], H2, H3)
    wzm, bzm = init_linear(ks[3], H3, z_dim)
    wzv, bzv = init_linear(ks[4], H3, z_dim)
    p["wz"] = jnp.concatenate([wzm, wzv], axis=1)   # fused [z_mean | z_log_var] weight
    p["bz"] = jnp.concatenate([bzm, bzv], axis=1)
    p["w4"], p["b4"] = init_linear(ks[5], z_dim, H3)
    p["w5"], p["b5"] = init_linear(ks[6], H3, H2)
    p["w6"], p["b6"] = init_linear(ks[7], H2, H1)
    p["wd"], p["bd"] = init_linear(ks[8], H1, x_dim)
    return p


if __name__ == "__main__":
    key = jax.random.PRNGKey(0)
    k_param, k_x, k_mask, k_eps, k_u0, k_u1 = jax.random.split(key, 6)

    n = 256      # multiple of the batch tile so the MXU M-dim is well utilized
    tm = 128     # batch tile (128 for v5e; bump to 256 on v6e/v7x)
    tau = 1.0

    params = init_params(k_param, X_DIM, Z_DIM)

    x = jax.random.normal(k_x, (n, X_DIM), jnp.float32)
    # dropout mask, pre-scaled by 1/(1-p) (PyTorch nn.Dropout semantics)
    keep = jax.random.bernoulli(k_mask, 1.0 - DROPOUT_P, (n, X_DIM)).astype(jnp.float32)
    mask = keep / (1.0 - DROPOUT_P)
    eps = jax.random.normal(k_eps, (n, Z_DIM), jnp.float32)            # reparam noise
    # gumbel noise for the two classes, pre-reduced to a single difference array g1 - g0
    geps = 1e-8
    u0 = jax.random.uniform(k_u0, (n, X_DIM), jnp.float32)
    u1 = jax.random.uniform(k_u1, (n, X_DIM), jnp.float32)
    g0 = -jnp.log(-jnp.log(u0 + geps) + geps)
    g1 = -jnp.log(-jnp.log(u1 + geps) + geps)
    gdiff = g1 - g0

    out, mu, log_var = vasc_forward(x, mask, eps, gdiff, params, tau, tm=tm)
    jax.block_until_ready((out, mu, log_var))

    assert out.shape == (n, X_DIM) and mu.shape == (n, Z_DIM) and log_var.shape == (n, Z_DIM)
    assert bool(jnp.all(jnp.isfinite(out))) and bool(jnp.all(jnp.isfinite(mu)))
    assert bool(jnp.all(jnp.isfinite(log_var)))
    assert bool(jnp.all((out >= 0.0) & (out <= 1.0)))
    print("KERNEL_OK")
</pallas_src>

<mosaic_0001>
module attributes {stable_mosaic.version = 11 : i64} {
  func.func @vasc_kernel(%arg0: i32, %arg1: memref<128x256xf32, #tpu.memory_space<vmem>>, %arg2: memref<128x256xf32, #tpu.memory_space<vmem>>, %arg3: memref<128x16xf32, #tpu.memory_space<vmem>>, %arg4: memref<128x256xf32, #tpu.memory_space<vmem>>, %arg5: memref<256x512xbf16, #tpu.memory_space<vmem>>, %arg6: memref<1x512xf32, #tpu.memory_space<vmem>>, %arg7: memref<512x128xbf16, #tpu.memory_space<vmem>>, %arg8: memref<1x128xf32, #tpu.memory_space<vmem>>, %arg9: memref<128x32xbf16, #tpu.memory_space<vmem>>, %arg10: memref<1x32xf32, #tpu.memory_space<vmem>>, %arg11: memref<32x32xbf16, #tpu.memory_space<vmem>>, %arg12: memref<1x32xf32, #tpu.memory_space<vmem>>, %arg13: memref<16x32xbf16, #tpu.memory_space<vmem>>, %arg14: memref<1x32xf32, #tpu.memory_space<vmem>>, %arg15: memref<32x128xbf16, #tpu.memory_space<vmem>>, %arg16: memref<1x128xf32, #tpu.memory_space<vmem>>, %arg17: memref<128x512xbf16, #tpu.memory_space<vmem>>, %arg18: memref<1x512xf32, #tpu.memory_space<vmem>>, %arg19: memref<512x256xbf16, #tpu.memory_space<vmem>>, %arg20: memref<1x256xf32, #tpu.memory_space<vmem>>, %arg21: memref<128x256xf32, #tpu.memory_space<vmem>>, %arg22: memref<128x32xf32, #tpu.memory_space<vmem>>) attributes {dimension_semantics = [#tpu.dimension_semantics<parallel>], iteration_bounds = array<i64: 2>, scalar_prefetch = 0 : i64, scratch_operands = 0 : i64, tpu.core_type = #tpu.core_type<tc>, window_params = [{transform_indices = @transform_0, window_bounds = array<i64: 128, 256>}, {transform_indices = @transform_1, window_bounds = array<i64: 128, 256>}, {transform_indices = @transform_2, window_bounds = array<i64: 128, 16>}, {transform_indices = @transform_3, window_bounds = array<i64: 128, 256>}, {pipeline_mode = #tpu.pipeline_mode<synchronous>, transform_indices = @transform_4, window_bounds = array<i64: 256, 512>}, {pipeline_mode = #tpu.pipeline_mode<synchronous>, transform_indices = @transform_5, window_bounds = array<i64: 1, 512>}, {pipeline_mode = #tpu.pipeline_mode<synchronous>, transform_indices = @transform_6, window_bounds = array<i64: 512, 128>}, {pipeline_mode = #tpu.pipeline_mode<synchronous>, transform_indices = @transform_7, window_bounds = array<i64: 1, 128>}, {pipeline_mode = #tpu.pipeline_mode<synchronous>, transform_indices = @transform_8, window_bounds = array<i64: 128, 32>}, {pipeline_mode = #tpu.pipeline_mode<synchronous>, transform_indices = @transform_9, window_bounds = array<i64: 1, 32>}, {pipeline_mode = #tpu.pipeline_mode<synchronous>, transform_indices = @transform_10, window_bounds = array<i64: 32, 32>}, {pipeline_mode = #tpu.pipeline_mode<synchronous>, transform_indices = @transform_11, window_bounds = array<i64: 1, 32>}, {pipeline_mode = #tpu.pipeline_mode<synchronous>, transform_indices = @transform_12, window_bounds = array<i64: 16, 32>}, {pipeline_mode = #tpu.pipeline_mode<synchronous>, transform_indices = @transform_13, window_bounds = array<i64: 1, 32>}, {pipeline_mode = #tpu.pipeline_mode<synchronous>, transform_indices = @transform_14, window_bounds = array<i64: 32, 128>}, {pipeline_mode = #tpu.pipeline_mode<synchronous>, transform_indices = @transform_15, window_bounds = array<i64: 1, 128>}, {pipeline_mode = #tpu.pipeline_mode<synchronous>, transform_indices = @transform_16, window_bounds = array<i64: 128, 512>}, {pipeline_mode = #tpu.pipeline_mode<synchronous>, transform_indices = @transform_17, window_bounds = array<i64: 1, 512>}, {pipeline_mode = #tpu.pipeline_mode<synchronous>, transform_indices = @transform_18, window_bounds = array<i64: 512, 256>}, {pipeline_mode = #tpu.pipeline_mode<synchronous>, transform_indices = @transform_19, window_bounds = array<i64: 1, 256>}, {transform_indices = @transform_20, window_bounds = array<i64: 128, 256>}, {transform_indices = @transform_21, window_bounds = array<i64: 128, 32>}]} {
    %c0 = arith.constant 0 : index
    %c0_0 = arith.constant 0 : index
    %0 = vector.load %arg1[%c0, %c0_0] : memref<128x256xf32, #tpu.memory_space<vmem>>, vector<128x256xf32>
    %c0_1 = arith.constant 0 : index
    %c0_2 = arith.constant 0 : index
    %1 = vector.load %arg2[%c0_1, %c0_2] : memref<128x256xf32, #tpu.memory_space<vmem>>, vector<128x256xf32>
    %2 = arith.mulf %0, %1 : vector<128x256xf32>
    %3 = arith.truncf %2 : vector<128x256xf32> to vector<128x256xbf16>
    %c0_3 = arith.constant 0 : index
    %c0_4 = arith.constant 0 : index
    %4 = vector.load %arg5[%c0_3, %c0_4] : memref<256x512xbf16, #tpu.memory_space<vmem>>, vector<256x512xbf16>
    %cst = arith.constant dense<0.000000e+00> : vector<128x512xf32>
    %5 = tpu.matmul %3, %4, %cst {dimension_numbers = #tpu.dot_dimension_numbers<[1], [0], [0], [1], [0, 0, 1, 1], [], []>} : vector<128x256xbf16>, vector<256x512xbf16>, vector<128x512xf32> -> vector<128x512xf32>
    %c0_5 = arith.constant 0 : index
    %c0_6 = arith.constant 0 : index
    %6 = vector.load %arg6[%c0_5, %c0_6] : memref<1x512xf32, #tpu.memory_space<vmem>>, vector<1x512xf32>
    %7 = vector.broadcast %6 : vector<1x512xf32> to vector<128x512xf32>
    %8 = arith.addf %5, %7 : vector<128x512xf32>
    %9 = arith.truncf %8 : vector<128x512xf32> to vector<128x512xbf16>
    %c0_7 = arith.constant 0 : index
    %c0_8 = arith.constant 0 : index
    %10 = vector.load %arg7[%c0_7, %c0_8] : memref<512x128xbf16, #tpu.memory_space<vmem>>, vector<512x128xbf16>
    %cst_9 = arith.constant dense<0.000000e+00> : vector<128x128xf32>
    %11 = tpu.matmul %9, %10, %cst_9 {dimension_numbers = #tpu.dot_dimension_numbers<[1], [0], [0], [1], [0, 0, 1, 1], [], []>} : vector<128x512xbf16>, vector<512x128xbf16>, vector<128x128xf32> -> vector<128x128xf32>
    %c0_10 = arith.constant 0 : index
    %c0_11 = arith.constant 0 : index
    %12 = vector.load %arg8[%c0_10, %c0_11] : memref<1x128xf32, #tpu.memory_space<vmem>>, vector<1x128xf32>
    %13 = vector.broadcast %12 : vector<1x128xf32> to vector<128x128xf32>
    %14 = arith.addf %11, %13 : vector<128x128xf32>
    %cst_12 = arith.constant 0.000000e+00 : f32
    %15 = vector.broadcast %cst_12 : f32 to vector<128x128xf32>
    %16 = arith.maximumf %14, %15 : vector<128x128xf32>
    %17 = arith.truncf %16 : vector<128x128xf32> to vector<128x128xbf16>
    %c0_13 = arith.constant 0 : index
    %c0_14 = arith.constant 0 : index
    %18 = vector.load %arg9[%c0_13, %c0_14] : memref<128x32xbf16, #tpu.memory_space<vmem>>, vector<128x32xbf16>
    %cst_15 = arith.constant dense<0.000000e+00> : vector<128x32xf32>
    %19 = tpu.matmul %17, %18, %cst_15 {dimension_numbers = #tpu.dot_dimension_numbers<[1], [0], [0], [1], [0, 0, 1, 1], [], []>} : vector<128x128xbf16>, vector<128x32xbf16>, vector<128x32xf32> -> vector<128x32xf32>
    %c0_16 = arith.constant 0 : index
    %c0_17 = arith.constant 0 : index
    %20 = vector.load %arg10[%c0_16, %c0_17] : memref<1x32xf32, #tpu.memory_space<vmem>>, vector<1x32xf32>
    %21 = vector.broadcast %20 : vector<1x32xf32> to vector<128x32xf32>
    %22 = arith.addf %19, %21 : vector<128x32xf32>
    %cst_18 = arith.constant 0.000000e+00 : f32
    %23 = vector.broadcast %cst_18 : f32 to vector<128x32xf32>
    %24 = arith.maximumf %22, %23 : vector<128x32xf32>
    %25 = arith.truncf %24 : vector<128x32xf32> to vector<128x32xbf16>
    %c0_19 = arith.constant 0 : index
    %c0_20 = arith.constant 0 : index
    %26 = vector.load %arg11[%c0_19, %c0_20] : memref<32x32xbf16, #tpu.memory_space<vmem>>, vector<32x32xbf16>
    %cst_21 = arith.constant dense<0.000000e+00> : vector<128x32xf32>
    %27 = tpu.matmul %25, %26, %cst_21 {dimension_numbers = #tpu.dot_dimension_numbers<[1], [0], [0], [1], [0, 0, 1, 1], [], []>} : vector<128x32xbf16>, vector<32x32xbf16>, vector<128x32xf32> -> vector<128x32xf32>
    %c0_22 = arith.constant 0 : index
    %c0_23 = arith.constant 0 : index
    %28 = vector.load %arg12[%c0_22, %c0_23] : memref<1x32xf32, #tpu.memory_space<vmem>>, vector<1x32xf32>
    %29 = vector.broadcast %28 : vector<1x32xf32> to vector<128x32xf32>
    %30 = arith.addf %27, %29 : vector<128x32xf32>
    %31 = vector.extract_strided_slice %30 {offsets = [0, 0], sizes = [128, 16], strides = [1, 1]} : vector<128x32xf32> to vector<128x16xf32>
    %32 = vector.extract_strided_slice %30 {offsets = [0, 16], sizes = [128, 16], strides = [1, 1]} : vector<128x32xf32> to vector<128x16xf32>
    %cst_24 = arith.constant 0.000000e+00 : f32
    %33 = vector.broadcast %cst_24 : f32 to vector<128x16xf32>
    %34 = arith.maximumf %32, %33 : vector<128x16xf32>
    %35 = math.absf %32 : vector<128x16xf32>
    %cst_25 = arith.constant 0.000000e+00 : f32
    %36 = vector.broadcast %cst_25 : f32 to vector<128x16xf32>
    %37 = arith.subf %36, %35 : vector<128x16xf32>
    %38 = math.exp %37 : vector<128x16xf32>
    %39 = math.log1p %38 : vector<128x16xf32>
    %40 = arith.addf %34, %39 : vector<128x16xf32>
    %c0_26 = arith.constant 0 : index
    %c0_27 = arith.constant 0 : index
    %41 = vector.load %arg3[%c0_26, %c0_27] : memref<128x16xf32, #tpu.memory_space<vmem>>, vector<128x16xf32>
    %cst_28 = arith.constant 5.000000e-01 : f32
    %42 = vector.broadcast %cst_28 : f32 to vector<128x16xf32>
    %43 = arith.mulf %42, %40 : vector<128x16xf32>
    %44 = math.exp %43 : vector<128x16xf32>
    %45 = arith.mulf %41, %44 : vector<128x16xf32>
    %46 = arith.addf %45, %31 : vector<128x16xf32>
    %47 = arith.truncf %46 : vector<128x16xf32> to vector<128x16xbf16>
    %c0_29 = arith.constant 0 : index
    %c0_30 = arith.constant 0 : index
    %48 = vector.load %arg13[%c0_29, %c0_30] : memref<16x32xbf16, #tpu.memory_space<vmem>>, vector<16x32xbf16>
    %cst_31 = arith.constant dense<0.000000e+00> : vector<128x32xf32>
    %49 = tpu.matmul %47, %48, %cst_31 {dimension_numbers = #tpu.dot_dimension_numbers<[1], [0], [0], [1], [0, 0, 1, 1], [], []>} : vector<128x16xbf16>, vector<16x32xbf16>, vector<128x32xf32> -> vector<128x32xf32>
    %c0_32 = arith.constant 0 : index
    %c0_33 = arith.constant 0 : index
    %50 = vector.load %arg14[%c0_32, %c0_33] : memref<1x32xf32, #tpu.memory_space<vmem>>, vector<1x32xf32>
    %51 = vector.broadcast %50 : vector<1x32xf32> to vector<128x32xf32>
    %52 = arith.addf %49, %51 : vector<128x32xf32>
    %cst_34 = arith.constant 0.000000e+00 : f32
    %53 = vector.broadcast %cst_34 : f32 to vector<128x32xf32>
    %54 = arith.maximumf %52, %53 : vector<128x32xf32>
    %55 = arith.truncf %54 : vector<128x32xf32> to vector<128x32xbf16>
    %c0_35 = arith.constant 0 : index
    %c0_36 = arith.constant 0 : index
    %56 = vector.load %arg15[%c0_35, %c0_36] : memref<32x128xbf16, #tpu.memory_space<vmem>>, vector<32x128xbf16>
    %cst_37 = arith.constant dense<0.000000e+00> : vector<128x128xf32>
    %57 = tpu.matmul %55, %56, %cst_37 {dimension_numbers = #tpu.dot_dimension_numbers<[1], [0], [0], [1], [0, 0, 1, 1], [], []>} : vector<128x32xbf16>, vector<32x128xbf16>, vector<128x128xf32> -> vector<128x128xf32>
    %c0_38 = arith.constant 0 : index
    %c0_39 = arith.constant 0 : index
    %58 = vector.load %arg16[%c0_38, %c0_39] : memref<1x128xf32, #tpu.memory_space<vmem>>, vector<1x128xf32>
    %59 = vector.broadcast %58 : vector<1x128xf32> to vector<128x128xf32>
    %60 = arith.addf %57, %59 : vector<128x128xf32>
    %cst_40 = arith.constant 0.000000e+00 : f32
    %61 = vector.broadcast %cst_40 : f32 to vector<128x128xf32>
    %62 = arith.maximumf %60, %61 : vector<128x128xf32>
    %63 = arith.truncf %62 : vector<128x128xf32> to vector<128x128xbf16>
    %c0_41 = arith.constant 0 : index
    %c0_42 = arith.constant 0 : index
    %64 = vector.load %arg17[%c0_41, %c0_42] : memref<128x512xbf16, #tpu.memory_space<vmem>>, vector<128x512xbf16>
    %cst_43 = arith.constant dense<0.000000e+00> : vector<128x512xf32>
    %65 = tpu.matmul %63, %64, %cst_43 {dimension_numbers = #tpu.dot_dimension_numbers<[1], [0], [0], [1], [0, 0, 1, 1], [], []>} : vector<128x128xbf16>, vector<128x512xbf16>, vector<128x512xf32> -> vector<128x512xf32>
    %c0_44 = arith.constant 0 : index
    %c0_45 = arith.constant 0 : index
    %66 = vector.load %arg18[%c0_44, %c0_45] : memref<1x512xf32, #tpu.memory_space<vmem>>, vector<1x512xf32>
    %67 = vector.broadcast %66 : vector<1x512xf32> to vector<128x512xf32>
    %68 = arith.addf %65, %67 : vector<128x512xf32>
    %cst_46 = arith.constant 0.000000e+00 : f32
    %69 = vector.broadcast %cst_46 : f32 to vector<128x512xf32>
    %70 = arith.maximumf %68, %69 : vector<128x512xf32>
    %71 = arith.truncf %70 : vector<128x512xf32> to vector<128x512xbf16>
    %c0_47 = arith.constant 0 : index
    %c0_48 = arith.constant 0 : index
    %72 = vector.load %arg19[%c0_47, %c0_48] : memref<512x256xbf16, #tpu.memory_space<vmem>>, vector<512x256xbf16>
    %cst_49 = arith.constant dense<0.000000e+00> : vector<128x256xf32>
    %73 = tpu.matmul %71, %72, %cst_49 {dimension_numbers = #tpu.dot_dimension_numbers<[1], [0], [0], [1], [0, 0, 1, 1], [], []>} : vector<128x512xbf16>, vector<512x256xbf16>, vector<128x256xf32> -> vector<128x256xf32>
    %c0_50 = arith.constant 0 : index
    %c0_51 = arith.constant 0 : index
    %74 = vector.load %arg20[%c0_50, %c0_51] : memref<1x256xf32, #tpu.memory_space<vmem>>, vector<1x256xf32>
    %75 = vector.broadcast %74 : vector<1x256xf32> to vector<128x256xf32>
    %76 = arith.addf %73, %75 : vector<128x256xf32>
    %77 = math.absf %76 : vector<128x256xf32>
    %cst_52 = arith.constant 0.000000e+00 : f32
    %78 = vector.broadcast %cst_52 : f32 to vector<128x256xf32>
    %79 = arith.subf %78, %77 : vector<128x256xf32>
    %80 = math.exp %79 : vector<128x256xf32>
    %cst_53 = arith.constant 1.000000e+00 : f32
    %81 = vector.broadcast %cst_53 : f32 to vector<128x256xf32>
    %82 = arith.addf %81, %80 : vector<128x256xf32>
    %83 = tpu.reciprocal %82 {approx = true} : vector<128x256xf32> -> vector<128x256xf32>
    %cst_54 = arith.constant 0.000000e+00 : f32
    %84 = vector.broadcast %cst_54 : f32 to vector<128x256xf32>
    %85 = arith.cmpf oge, %76, %84 : vector<128x256xf32>
    %86 = arith.mulf %80, %83 : vector<128x256xf32>
    %87 = arith.select %85, %83, %86 : vector<128x256xi1>, vector<128x256xf32>
    %88 = arith.mulf %87, %87 : vector<128x256xf32>
    %cst_55 = arith.constant 0.000000e+00 : f32
    %89 = vector.broadcast %cst_55 : f32 to vector<128x256xf32>
    %90 = arith.subf %89, %88 : vector<128x256xf32>
    %91 = math.exp %90 : vector<128x256xf32>
    %cst_56 = arith.constant 1.000000e+00 : f32
    %92 = vector.broadcast %cst_56 : f32 to vector<128x256xf32>
    %93 = arith.subf %92, %91 : vector<128x256xf32>
    %cst_57 = arith.constant 9.99999968E-21 : f32
    %94 = vector.broadcast %cst_57 : f32 to vector<128x256xf32>
    %95 = arith.addf %93, %94 : vector<128x256xf32>
    %96 = math.log %95 : vector<128x256xf32>
    %97 = arith.subf %96, %90 : vector<128x256xf32>
    %c0_58 = arith.constant 0 : index
    %c0_59 = arith.constant 0 : index
    %98 = vector.load %arg4[%c0_58, %c0_59] : memref<128x256xf32, #tpu.memory_space<vmem>>, vector<128x256xf32>
    %99 = arith.addf %97, %98 : vector<128x256xf32>
    %cst_60 = arith.constant 1.000000e+00 : f32
    %100 = vector.broadcast %cst_60 : f32 to vector<128x256xf32>
    %101 = arith.mulf %99, %100 : vector<128x256xf32>
    %102 = math.absf %101 : vector<128x256xf32>
    %cst_61 = arith.constant 0.000000e+00 : f32
    %103 = vector.broadcast %cst_61 : f32 to vector<128x256xf32>
    %104 = arith.subf %103, %102 : vector<128x256xf32>
    %105 = math.exp %104 : vector<128x256xf32>
    %cst_62 = arith.constant 1.000000e+00 : f32
    %106 = vector.broadcast %cst_62 : f32 to vector<128x256xf32>
    %107 = arith.addf %106, %105 : vector<128x256xf32>
    %108 = tpu.reciprocal %107 {approx = true} : vector<128x256xf32> -> vector<128x256xf32>
    %cst_63 = arith.constant 0.000000e+00 : f32
    %109 = vector.broadcast %cst_63 : f32 to vector<128x256xf32>
    %110 = arith.cmpf oge, %101, %109 : vector<128x256xf32>
    %111 = arith.mulf %105, %108 : vector<128x256xf32>
    %112 = arith.select %110, %108, %111 : vector<128x256xi1>, vector<128x256xf32>
    %113 = arith.mulf %87, %112 : vector<128x256xf32>
    %c0_64 = arith.constant 0 : index
    %c0_65 = arith.constant 0 : index
    %114 = vector.load %arg21[%c0_64, %c0_65] : memref<128x256xf32, #tpu.memory_space<vmem>>, vector<128x256xf32>
    tpu.vector_store %arg21[%c0_64, %c0_65], %113 {strides = array<i32>} : memref<128x256xf32, #tpu.memory_space<vmem>>, vector<128x256xf32>,
    %115 = tpu.concatenate %31, %40 in 1 : vector<128x16xf32>, vector<128x16xf32> -> vector<128x32xf32>
    %c0_66 = arith.constant 0 : index
    %c0_67 = arith.constant 0 : index
    %116 = vector.load %arg22[%c0_66, %c0_67] : memref<128x32xf32, #tpu.memory_space<vmem>>, vector<128x32xf32>
    tpu.vector_store %arg22[%c0_66, %c0_67], %115 {strides = array<i32>} : memref<128x32xf32, #tpu.memory_space<vmem>>, vector<128x32xf32>,
    return
  }
  func.func @transform_0(%arg0: i32) -> (i32, i32) {
    %c0_i32 = arith.constant 0 : i32
    %c0_i32_0 = arith.constant 0 : i32
    return %arg0, %c0_i32 : i32, i32
  }
  func.func @transform_1(%arg0: i32) -> (i32, i32) {
    %c0_i32 = arith.constant 0 : i32
    %c0_i32_0 = arith.constant 0 : i32
    return %arg0, %c0_i32 : i32, i32
  }
  func.func @transform_2(%arg0: i32) -> (i32, i32) {
    %c0_i32 = arith.constant 0 : i32
    %c0_i32_0 = arith.constant 0 : i32
    return %arg0, %c0_i32 : i32, i32
  }
  func.func @transform_3(%arg0: i32) -> (i32, i32) {
    %c0_i32 = arith.constant 0 : i32
    %c0_i32_0 = arith.constant 0 : i32
    return %arg0, %c0_i32 : i32, i32
  }
  func.func @transform_4(%arg0: i32) -> (i32, i32) {
    %c0_i32 = arith.constant 0 : i32
    %c0_i32_0 = arith.constant 0 : i32
    %c0_i32_1 = arith.constant 0 : i32
    return %c0_i32, %c0_i32_0 : i32, i32
  }
  func.func @transform_5(%arg0: i32) -> (i32, i32) {
    %c0_i32 = arith.constant 0 : i32
    %c0_i32_0 = arith.constant 0 : i32
    %c0_i32_1 = arith.constant 0 : i32
    return %c0_i32, %c0_i32_0 : i32, i32
  }
  func.func @transform_6(%arg0: i32) -> (i32, i32) {
    %c0_i32 = arith.constant 0 : i32
    %c0_i32_0 = arith.constant 0 : i32
    %c0_i32_1 = arith.constant 0 : i32
    return %c0_i32, %c0_i32_0 : i32, i32
  }
  func.func @transform_7(%arg0: i32) -> (i32, i32) {
    %c0_i32 = arith.constant 0 : i32
    %c0_i32_0 = arith.constant 0 : i32
    %c0_i32_1 = arith.constant 0 : i32
    return %c0_i32, %c0_i32_0 : i32, i32
  }
  func.func @transform_8(%arg0: i32) -> (i32, i32) {
    %c0_i32 = arith.constant 0 : i32
    %c0_i32_0 = arith.constant 0 : i32
    %c0_i32_1 = arith.constant 0 : i32
    return %c0_i32, %c0_i32_0 : i32, i32
  }
  func.func @transform_9(%arg0: i32) -> (i32, i32) {
    %c0_i32 = arith.constant 0 : i32
    %c0_i32_0 = arith.constant 0 : i32
    %c0_i32_1 = arith.constant 0 : i32
    return %c0_i32, %c0_i32_0 : i32, i32
  }
  func.func @transform_10(%arg0: i32) -> (i32, i32) {
    %c0_i32 = arith.constant 0 : i32
    %c0_i32_0 = arith.constant 0 : i32
    %c0_i32_1 = arith.constant 0 : i32
    return %c0_i32, %c0_i32_0 : i32, i32
  }
  func.func @transform_11(%arg0: i32) -> (i32, i32) {
    %c0_i32 = arith.constant 0 : i32
    %c0_i32_0 = arith.constant 0 : i32
    %c0_i32_1 = arith.constant 0 : i32
    return %c0_i32, %c0_i32_0 : i32, i32
  }
  func.func @transform_12(%arg0: i32) -> (i32, i32) {
    %c0_i32 = arith.constant 0 : i32
    %c0_i32_0 = arith.constant 0 : i32
    %c0_i32_1 = arith.constant 0 : i32
    return %c0_i32, %c0_i32_0 : i32, i32
  }
  func.func @transform_13(%arg0: i32) -> (i32, i32) {
    %c0_i32 = arith.constant 0 : i32
    %c0_i32_0 = arith.constant 0 : i32
    %c0_i32_1 = arith.constant 0 : i32
    return %c0_i32, %c0_i32_0 : i32, i32
  }
  func.func @transform_14(%arg0: i32) -> (i32, i32) {
    %c0_i32 = arith.constant 0 : i32
    %c0_i32_0 = arith.constant 0 : i32
    %c0_i32_1 = arith.constant 0 : i32
    return %c0_i32, %c0_i32_0 : i32, i32
  }
  func.func @transform_15(%arg0: i32) -> (i32, i32) {
    %c0_i32 = arith.constant 0 : i32
    %c0_i32_0 = arith.constant 0 : i32
    %c0_i32_1 = arith.constant 0 : i32
    return %c0_i32, %c0_i32_0 : i32, i32
  }
  func.func @transform_16(%arg0: i32) -> (i32, i32) {
    %c0_i32 = arith.constant 0 : i32
    %c0_i32_0 = arith.constant 0 : i32
    %c0_i32_1 = arith.constant 0 : i32
    return %c0_i32, %c0_i32_0 : i32, i32
  }
  func.func @transform_17(%arg0: i32) -> (i32, i32) {
    %c0_i32 = arith.constant 0 : i32
    %c0_i32_0 = arith.constant 0 : i32
    %c0_i32_1 = arith.constant 0 : i32
    return %c0_i32, %c0_i32_0 : i32, i32
  }
  func.func @transform_18(%arg0: i32) -> (i32, i32) {
    %c0_i32 = arith.constant 0 : i32
    %c0_i32_0 = arith.constant 0 : i32
    %c0_i32_1 = arith.constant 0 : i32
    return %c0_i32, %c0_i32_0 : i32, i32
  }
  func.func @transform_19(%arg0: i32) -> (i32, i32) {
    %c0_i32 = arith.constant 0 : i32
    %c0_i32_0 = arith.constant 0 : i32
    %c0_i32_1 = arith.constant 0 : i32
    return %c0_i32, %c0_i32_0 : i32, i32
  }
  func.func @transform_20(%arg0: i32) -> (i32, i32) {
    %c0_i32 = arith.constant 0 : i32
    %c0_i32_0 = arith.constant 0 : i32
    return %arg0, %c0_i32 : i32, i32
  }
  func.func @transform_21(%arg0: i32) -> (i32, i32) {
    %c0_i32 = arith.constant 0 : i32
    %c0_i32_0 = arith.constant 0 : i32
    return %arg0, %c0_i32 : i32, i32
  }
}

</mosaic_0001>

<bundles_post_ra>
// kernel: tpu_custom_call.1
= control target key start
LH: loop header
LB: loop body
LE: loop exit
PB: predicated region body
PF: predicated region fallthrough
CT: control target
= control target key end

     0   :  { %s9853_s0 = inlined_call_operand.hbm [shape: f32[256,256], index: 0, kind: input, shape index: {}]   ;;  %s9854_s1 = inlined_call_operand.hbm [shape: f32[256,256], index: 1, kind: input, shape index: {}]   ;;  %s9855_s2 = inlined_call_operand.vmem [shape: f32[256,16], index: 2, kind: input, shape index: {}]   ;;  %s9856_s3 = inlined_call_operand.hbm [shape: f32[256,256], index: 3, kind: input, shape index: {}]   ;;  %s9857_s4 = inlined_call_operand.hbm [shape: bf16[256,512], index: 4, kind: input, shape index: {}]   ;;  %s9858_s5 = inlined_call_operand.vmem [shape: f32[1,512], index: 5, kind: input, shape index: {}]   ;;  %s9859_s6 = inlined_call_operand.vmem [shape: bf16[512,128], index: 6, kind: input, shape index: {}]   ;;  %s9860_s7 = inlined_call_operand.vmem [shape: f32[1,128], index: 7, kind: input, shape index: {}]   ;;  %s9861_s8 = inlined_call_operand.vmem [shape: bf16[128,32], index: 8, kind: input, shape index: {}]   ;;  %s9862_s9 = inlined_call_operand.vmem [shape: f32[1,32], index: 9, kind: input, shape index: {}]   ;;  %s9863_s10 = inlined_call_operand.vmem [shape: bf16[32,32], index: 10, kind: input, shape index: {}]   ;;  %s9864_s11 = inlined_call_operand.vmem [shape: f32[1,32], index: 11, kind: input, shape index: {}]   ;;  %s9865_s12 = inlined_call_operand.vmem [shape: bf16[16,32], index: 12, kind: input, shape index: {}]   ;;  %s9866_s13 = inlined_call_operand.vmem [shape: f32[1,32], index: 13, kind: input, shape index: {}]   ;;  %s9867_s14 = inlined_call_operand.vmem [shape: bf16[32,128], index: 14, kind: input, shape index: {}]   ;;  %s9868_s15 = inlined_call_operand.vmem [shape: f32[1,128], index: 15, kind: input, shape index: {}]   ;;  %s9869_s16 = inlined_call_operand.hbm [shape: bf16[128,512], index: 16, kind: input, shape index: {}]   ;;  %s9870_s17 = inlined_call_operand.vmem [shape: f32[1,512], index: 17, kind: input, shape index: {}]   ;;  %s9871_s18 = inlined_call_operand.hbm [shape: bf16[512,256], index: 18, kind: input, shape index: {}]   ;;  %s9872_s19 = inlined_call_operand.vmem [shape: f32[1,256], index: 19, kind: input, shape index: {}]   ;;  %s9873_s20 = inlined_call_operand.hbm [shape: f32[256,256], index: 20, kind: output, shape index: {0}]   ;;  %s9874_s21 = inlined_call_operand.vmem [shape: f32[256,32], index: 21, kind: output, shape index: {1}]  }
   0x1   :  { %9895 = sst [smem:[#allocation25_spill]] %s9853_s0 }
   0x2   :  { %9896 = sst [smem:[#allocation26_spill]] %s9854_s1 }
   0x3   :  { %9897 = sst [smem:[#allocation27_spill]] %s9855_s2 }
   0x4   :  { %9898 = sst [smem:[#allocation28_spill]] %s9856_s3 }
   0x5   :  { %9899 = sst [smem:[#allocation29_spill]] %s9857_s4 }
   0x6   :  { %9900 = sst [smem:[#allocation30_spill]] %s9858_s5 }
   0x7   :  { %9901 = sst [smem:[#allocation31_spill]] %s9860_s7 }
   0x8   :  { %9902 = sst [smem:[#allocation32_spill]] %s9862_s9 }
   0x9   :  { %9903 = sst [smem:[#allocation33_spill]] %s9863_s10 }
   0xa   :  { %9904 = sst [smem:[#allocation34_spill]] %s9864_s11 }
   0xb   :  { %9905 = sst [smem:[#allocation35_spill]] %s9865_s12 }
   0xc   :  { %9906 = sst [smem:[#allocation36_spill]] %s9866_s13 }
   0xd   :  { %9907 = sst [smem:[#allocation37_spill]] %s9867_s14 }
   0xe   :  { %9908 = sst [smem:[#allocation38_spill]] %s9868_s15 }
   0xf   :  { %9909 = sst [smem:[#allocation39_spill]] %s9869_s16 }
  0x10   :  { %9910 = sst [smem:[#allocation40_spill]] %s9870_s17 }
  0x11   :  { %9911 = sst [smem:[#allocation41_spill]] %s9871_s18 }
  0x12   :  { %9912 = sst [smem:[#allocation42_spill]] %s9872_s19 }
  0x13   :  { %9913 = sst [smem:[#allocation43_spill]] %s9873_s20 }
  0x14   :  { %9914 = sst [smem:[#allocation44_spill]] %s9874_s21 }
  0x15   :  { %27 = vsyncpa [#allocation3], 0 }
  0x16   :  { %29 = vsyncpa [#allocation3 + $0x1], 0 }
  0x17   :  { %30 = vsyncpa [#allocation6], 0 }
  0x18   :  { %32 = vsyncpa [#allocation6 + $0x1], 0 }
  0x19   :  { %33 = vsyncpa [#allocation9], 0 }
  0x1a   :  { %34 = vsyncpa [#allocation12], 0 }
  0x1b   :  { %35 = vsyncpa [#allocation4], 0 }
  0x1c   :  { %37 = vsyncpa [#allocation4 + $0x1], 0  ;;  %s7692_s2 = smov 0   ;;  %s7694_s25 = smov 0  }
  0x1d   :  { %s7696_s26 = smov 0   ;;  %s7698_s27 = smov 0  }
  0x1e LB: > { %9915 = sst [smem:[#allocation19_spill]] %s7558_s2  ;;  %s7713_s3 = sadd.s32 4294967295, %s7570_s27   ;;  %s7570_s27 = sphi %s7698_s27, %s9960_s27   ;;  %s7566_s26 = sphi %s7696_s26, %s9964_s26   ;;  %s7562_s25 = sphi %s7694_s25, %s9963_s25   ;;  %s7558_s2 = sphi %s7692_s2, %s9962_s2  }
  0x1f   : > { %9916 = sst [smem:[#allocation20_spill]] %s7570_s27  ;;  %s5640_s28 = sadd.s32 4294967294, %s7570_s27  }
  0x20   : > { %p63_p0 = scmp.ne.s32.totalorder %s7562_s25, %s7558_s2  ;;  %p9892_p1 = scmp.eq.s32.totalorder %s7713_s3, 0 }
  0x21   : > { %p501_p2 = scmp.eq.s32.totalorder %s7713_s3, 1  ;;  %p507_p3 = scmp.eq.s32.totalorder %s5640_s28, 1 }
  0x22   : > { %p7722_p4 = por %p9892_p1, %p63_p0  ;;  %p5641_p5 = scmp.ge.s32.totalorder %s7570_s27, 1 }
  0x23   : > { %p7727_p6 = por %p507_p3, %p63_p0  ;;  %p540_p7 = scmp.lt.s32.totalorder %s7570_s27, 3 }
  0x24   : > { %s9920_s5 = sld [smem:[#allocation29_spill]]  ;;  %s7572_s1 = smov [#allocation8]  }
  0x25   : > { %s9918_s0 = scalar_select %p7727_p6, 1, 0 }
  0x26   : > { %p7735_p8 = pnand %p5641_p5, %p540_p7  ;;  %s553_s24 = sshll.u32 %s7572_s1, 4  ;;  %s554_s24 = int_to_ptr.vmem [resolvable:$true] %s553_s24 }
  0x27   : > { %9919 = sst [smem:[#allocation21_spill]] %s9918_s0  ;;  %s7749_s4 = sadd.s32 1, %s7570_s27  }
  0x28   : > { %p6753_p9 = pneg %p7735_p8  ;;  %9923 = sst [smem:[#allocation22_spill]] %s7749_s4 }
  0x29   : > { %s9881_s30 = smov 256   ;;  %s47_s1 = ssub.s32 %s7570_s27, %s7749_s4 }
  0x2a   : > { %s551_s22 = sshll.u32 %s9920_s5, 4  ;;  %p7743_p10 = pnand %p6753_p9, %p9892_p1  ;;  %s552_s22 = int_to_ptr.hbm [resolvable:$true] %s551_s22 }
  0x2b   : > { %s9883_s5 = smov 16   ;;  %s50_s0 = sadd.s32 1, %s7566_s26 }
  0x2c   : > { %6756 = dma.hbm_to_vmem [thread:$0]  (!%p7743_p10), %s552_s22, 8192, %s554_s24, [#allocation9], %s9881_s30, %s9881_s30, %s9883_s5  }
  0x2d   : > { %p48_p12 = scmp.eq.s32.totalorder %s47_s1, 0  ;;  %p57_p13 = scmp.ne.s32.totalorder %s7566_s26, %s7562_s25 }
  0x2e   : > { %p58_p0 = scmp.eq.s32.totalorder %s7570_s27, 0  ;;  %p6780_p3 = scmp.lt.s32.totalorder %s7570_s27, 2 }
  0x2f   : > { %s7764_s2 = scalar_select %p48_p12, %s7566_s26, %s50_s0  }
  0x30   : > { %p59_p5 = por %p58_p0, %p57_p13  ;;  %p7768_p7 = por %p501_p2, %p57_p13 }
  0x31   : > { %9924 = sst [smem:[#allocation23_spill]] %s7764_s2  ;;  %s9889_s19 = sand.u32 1, %s7566_s26  }
  0x32   : > { %s9925_s20 = scalar_select %p7768_p7, 1, 0 }
  0x33   : > { %s7774_s17 = sshll.u32 %s7570_s27, 8  ;;  %s7778_s22 = sshll.u32 %s9889_s19, 8 }
  0x34   : > { %9926 = sst [smem:[#allocation24_spill]] %s9925_s20  ;;  %p7780_p9 = pnand %p6780_p3, %p59_p5 }
  0x35   : > { %s657_s0 = sand.u32 1, %s7570_s27   ;;  %s9928_s5 = sld [smem:[#allocation26_spill]] }
  0x36   : > { %s661_s4 = scalar_lea.vmem [#allocation5], %s7778_s22  ;;  %s9929_s16 = sld [smem:[#allocation39_spill]] }
  0x37   : > { %s670_s20 = sshll.u32 %s661_s4, 4  ;;  %s7793_s12 = scalar_lea.sflag [#allocation6], %s657_s0  ;;  %s671_s20 = int_to_ptr.vmem [resolvable:$true] %s670_s20 }
  0x38   : > { %p7346_p12 = pneg %p7780_p9 }
  0x3b   : > { %s667_s2 = scalar_lea.hbm %s9928_s5, %s7774_s17  ;;  %s7349_s30 = scalar_lea.hbm %s9928_s5, 512 }
  0x3c   : > { %s668_s15 = sshll.u32 %s667_s2, 4  ;;  %s598_s14 = sshll.u32 %s9929_s16, 4  ;;  %s669_s15 = int_to_ptr.hbm [resolvable:$true] %s668_s15  ;;  %s599_s14 = int_to_ptr.hbm [resolvable:$true] %s598_s14 }
  0x3d   : > { %s7342_s21 = sshra.s32 %s669_s15, 4  ;;  %s7343_s21 = int_to_ptr.hbm [resolvable:$true] %s7342_s21 }
  0x3e   : > { %s7344_s11 = scalar_lea.hbm %s7343_s21, 256  ;;  %p7350_p3 = scmp.lt.s32.totalorder %s7343_s21, %s9928_s5 }
  0x3f   : > { %p7345_p2 = scmp.ne.s32.totalorder %s7343_s21, %s7344_s11  ;;  %p7351_p5 = scmp.lt.s32.totalorder %s7349_s30, %s7344_s11 }
  0x41   : > { %p7347_p13 = pnand %p7346_p12, %p7345_p2  ;;  %p7352_p11 = por %p7351_p5, %p7350_p3 }
  0x43   : > { %p7348_p0 = pneg %p7347_p13 }
  0x45   : > { %p7353_p1 = pnand %p7352_p11, %p7348_p0 }
  0x47   : > { %7356 = shalt.err (!%p7353_p1)
}
  0x48   : > { %s9930_s13 = smov 16   ;;  %s9931_s19 = smov 256  }
  0x49   : > { %6769 = dma.hbm_to_vmem [thread:$0]  (!%p7780_p9), %s669_s15, 4096, %s671_s20, %s7793_s12, %s9931_s19, %s9931_s19, %s9930_s13  }
  0x4a   : > { %s7575_s0 = smov [#allocation10]   ;;  %s9932_s18 = sld [smem:[#allocation41_spill]] }
  0x4b   : > { %s600_s4 = sshll.u32 %s7575_s0, 4  ;;  %s7576_s2 = smov [#allocation11]   ;;  %s601_s4 = int_to_ptr.vmem [resolvable:$true] %s600_s4 }
  0x4c   : > { %6759 = dma.hbm_to_vmem [thread:$0]  (!%p7743_p10), %s599_s14, 4096, %s601_s4, [#allocation9], %s9931_s19, %s9931_s19, %s9930_s13  }
  0x4d   : > { %s617_s30 = sshll.u32 %s7576_s2, 4  ;;  %s7577_s15 = smov 128   ;;  %s618_s30 = int_to_ptr.vmem [resolvable:$true] %s617_s30 }
  0x4e   : > { %s7578_s20 = smov 8   ;;  %s9933_s27 = sld [smem:[#allocation25_spill]] }
  0x4f   : > { %s9935_s10 = sand.u32 1, %s7566_s26  }
  0x50   : > { %s615_s11 = sshll.u32 %s9932_s18, 4  ;;  %s638_s18 = scalar_lea.vmem [#allocation2], %s7778_s22  ;;  %s616_s11 = int_to_ptr.hbm [resolvable:$true] %s615_s11 }
  0x51   : > { %6762 = dma.hbm_to_vmem [thread:$0]  (!%p7743_p10), %s616_s11, 8192, %s618_s30, [#allocation12], %s7577_s15, %s7577_s15, %s7578_s20  }
  0x52   : > { %s647_s9 = sshll.u32 %s638_s18, 4  ;;  %s635_s7 = scalar_lea.sflag [#allocation3], %s9935_s10  ;;  %s648_s9 = int_to_ptr.vmem [resolvable:$true] %s647_s9 }
  0x54   : > { %s9934_s21 = smov %s9933_s27  ;;  %s644_s5 = scalar_lea.hbm %s9933_s27, %s7774_s17 }
  0x55   : > { %s645_s16 = sshll.u32 %s644_s5, 4  ;;  %s7439_s2 = scalar_lea.hbm %s9934_s21, 512  ;;  %s646_s16 = int_to_ptr.hbm [resolvable:$true] %s645_s16 }
  0x56   : > { %s7432_s14 = sshra.s32 %s646_s16, 4  ;;  %s7433_s14 = int_to_ptr.hbm [resolvable:$true] %s7432_s14 }
  0x57   : > { %s7434_s4 = scalar_lea.hbm %s7433_s14, 256  ;;  %p7440_p10 = scmp.lt.s32.totalorder %s7433_s14, %s9934_s21 }
  0x58   : > { %p7435_p1 = scmp.ne.s32.totalorder %s7433_s14, %s7434_s4  ;;  %p7441_p13 = scmp.lt.s32.totalorder %s7439_s2, %s7434_s4 }
  0x5a   : > { %p7437_p11 = pnand %p7435_p1, %p7346_p12  ;;  %p7442_p0 = por %p7441_p13, %p7440_p10 }
  0x5c   : > { %p7438_p2 = pneg %p7437_p11 }
  0x5e   : > { %p7443_p3 = pnand %p7442_p0, %p7438_p2 }
  0x60   : > { %7446 = shalt.err (!%p7443_p3)
}
  0x61   : > { %6766 = dma.hbm_to_vmem [thread:$0]  (!%p7780_p9), %s646_s16, 4096, %s648_s9, %s635_s7, %s9931_s19, %s9931_s19, %s9930_s13  }
  0x62   : > { %s9936_s15 = sld [smem:[#allocation28_spill]]  ;;  %s693_s0 = scalar_lea.vmem [#allocation7], %s7778_s22 }
  0x63   : > { %s702_s27 = sshll.u32 %s693_s0, 4  ;;  %s703_s27 = int_to_ptr.vmem [resolvable:$true] %s702_s27 }
  0x68   : > { %s699_s20 = scalar_lea.hbm %s9936_s15, %s7774_s17  ;;  %s7469_s7 = scalar_lea.hbm %s9936_s15, 512 }
  0x69   : > { %s700_s1 = sshll.u32 %s699_s20, 4  ;;  %s701_s1 = int_to_ptr.hbm [resolvable:$true] %s700_s1 }
  0x6a   : > { %s7462_s14 = sshra.s32 %s701_s1, 4  ;;  %s7463_s14 = int_to_ptr.hbm [resolvable:$true] %s7462_s14 }
  0x6b   : > { %s7464_s4 = scalar_lea.hbm %s7463_s14, 256  ;;  %p7470_p2 = scmp.lt.s32.totalorder %s7463_s14, %s9936_s15 }
  0x6c   : > { %p7465_p5 = scmp.ne.s32.totalorder %s7463_s14, %s7464_s4  ;;  %p7471_p10 = scmp.lt.s32.totalorder %s7469_s7, %s7464_s4 }
  0x6e   : > { %p7467_p1 = pnand %p7465_p5, %p7346_p12  ;;  %p7472_p13 = por %p7471_p10, %p7470_p2 }
  0x70   : > { %p7468_p11 = pneg %p7467_p1 }
  0x72   : > { %p7473_p0 = pnand %p7472_p13, %p7468_p11 }
  0x74   : > { %7476 = shalt.err (!%p7473_p0)
}
  0x75   : > { %6772 = dma.hbm_to_vmem [thread:$0]  (!%p7780_p9), %s701_s1, 4096, %s703_s27, %s7793_s12, %s9931_s19, %s9931_s19, %s9930_s13  }
  0x76   : > { %714 = sbr.rel (%p7735_p8) target bundleno = 1950 (0x79e), region = 100  ;;  %s7866_s17 = sand.u32 (!%p7735_p8), 1, %s7562_s25  }
  0x77   : > { %s7869_s22 = sshll.u32 (!%p7735_p8), %s7866_s17, 8  ;;  %s717_s2 = scalar_lea.sflag (!%p7735_p8), [#allocation3], %s7866_s17 }
  0x78   : > { %s7873_s30 = scalar_lea.vmem (!%p7735_p8), [#allocation2], %s7869_s22 }
  0x7b   : > { %7537 = dma.done.wait (%p7722_p4), %s717_s2, 4096  }
  0x7c   : > { %7539 = vsyncadd (%p7722_p4), %s717_s2, 4294963200  ;;  %s726_s12 = sand.u32 1, %s7713_s3   ;;  %s7881_s24 = scalar_lea.vmem [#allocation5], %s7869_s22 }
  0x7d   : > { %s727_s23 = scalar_lea.sflag [#allocation6], %s726_s12 }
  0x7e   : > { %7541 = dma.done.wait (%p7722_p4), %s727_s23, 8192  }
  0x7f   : > { %7543 = vsyncadd (%p7722_p4), %s727_s23, 4294959104  ;;  %s7888_s13 = scalar_lea.vmem [#allocation7], %s7869_s22  ;;  %p9937_p8 = scmp.eq.s32.totalorder %s7713_s3, 0 }
  0x81   : > { %7545 = dma.done.wait (%p9937_p8), [#allocation9], 12288   ;;  %p9938_p9 = pmov %p9937_p8 }
  0x82   : > { %p9939_p12 = pmov %p9937_p8 }
  0x83   : > { %7547 = vsyncadd (%p9938_p9), [#allocation9], 4294955008 }
  0x84   : > { %7549 = dma.done.wait (%p9939_p12), [#allocation12], 8192   ;;  %p9940_p3 = pmov %p9937_p8 }
  0x85   : > { %v5784_v0 = vld [vmem:[#allocation8 + $0xe0] sm:$0xf]  ;;  %v6556_v1 = vld [vmem:[#allocation8 + $0xec] sm:$0xf0]  ;;  %v6554_v5 = vld [vmem:[#allocation8 + $0xe4] sm:$0xf] }
  0x86   : > { %7551 = vsyncadd (%p9940_p3), [#allocation12], 4294959104  ;;  %v5912_v2 = vld [vmem:[#allocation8 + $0x1e0] sm:$0xf]  ;;  %v5785_v3 = vor.u32 %v6556_v1, %v5784_v0  ;;  %v6588_v4 = vld [vmem:[#allocation8 + $0x1ec] sm:$0xf0] }
  0x87   : > { %v5786_v6 = vld [vmem:[#allocation8 + $0xf0] sm:$0xf0]  ;;  %v5913_v7 = vor.u32 %v6588_v4, %v5912_v2  ;;  %v6586_v9 = vld [vmem:[#allocation8 + $0x1e4] sm:$0xf]  ;;  %v5768_v11 = vld [vmem:[#allocation8 + $0xc0] sm:$0xf] }
  0x88   : > { %v5789_v8 = vor.u32 %v6554_v5, %v5786_v6  ;;  %v5914_v10 = vld [vmem:[#allocation8 + $0x1f0] sm:$0xf0]  ;;  %1358 = vmatpush.bf16.msra.mxu0 %v5785_v3  ;;  %v6552_v13 = vld [vmem:[#allocation8 + $0xcc] sm:$0xf0]  ;;  %v5896_v14 = vld [vmem:[#allocation8 + $0x1c0] sm:$0xf] }
  0x89   : > { %v5917_v12 = vor.u32 %v6586_v9, %v5914_v10  ;;  %v6584_v15 = vld [vmem:[#allocation8 + $0x1cc] sm:$0xf0]  ;;  %1407 = vmatpush.bf16.msra.mxu1 %v5913_v7  ;;  %v5769_v16 = vor.u32 %v6552_v13, %v5768_v11  ;;  %v6550_v18 = vld [vmem:[#allocation8 + $0xc4] sm:$0xf]  ;;  %v5770_v19 = vld [vmem:[#allocation8 + $0xd0] sm:$0xf0] }
  0x8a   : > { %1456 = vmatpush.bf16.msra.mxu2 %v5789_v8  ;;  %v5897_v17 = vor.u32 %v6584_v15, %v5896_v14  ;;  %v6582_v20 = vld [vmem:[#allocation8 + $0x1c4] sm:$0xf]  ;;  %v5773_v21 = vor.u32 %v6550_v18, %v5770_v19  ;;  %v5898_v22 = vld [vmem:[#allocation8 + $0x1d0] sm:$0xf0]  ;;  %v5752_v23 = vld [vmem:[#allocation8 + $0xa0] sm:$0xf] }
  0x8b   : > { %1505 = vmatpush.bf16.msra.mxu3 %v5917_v12  ;;  %v6548_v24 = vld [vmem:[#allocation8 + $0xac] sm:$0xf0]  ;;  %v5901_v25 = vor.u32 %v6582_v20, %v5898_v22  ;;  %v5880_v26 = vld [vmem:[#allocation8 + $0x1a0] sm:$0xf]  ;;  %v6546_v28 = vld [vmem:[#allocation8 + $0xa4] sm:$0xf] }
  0x8c   : > { %v6580_v27 = vld [vmem:[#allocation8 + $0x1ac] sm:$0xf0]  ;;  %1359 = vmatpush.bf16.msra.mxu0 %v5769_v16  ;;  %v5753_v29 = vor.u32 %v6548_v24, %v5752_v23  ;;  %v5754_v30 = vld [vmem:[#allocation8 + $0xb0] sm:$0xf0]  ;;  %v6578_v31 = vld [vmem:[#allocation8 + $0x1a4] sm:$0xf] }
  0x8d   : > { %v5882_v32 = vld [vmem:[#allocation8 + $0x1b0] sm:$0xf0]  ;;  %1408 = vmatpush.bf16.msra.mxu1 %v5897_v17  ;;  %v5881_v33 = vor.u32 %v6580_v27, %v5880_v26  ;;  %v5757_v34 = vor.u32 %v6546_v28, %v5754_v30  ;;  %v5736_v35 = vld [vmem:[#allocation8 + $0x80] sm:$0xf]  ;;  %v6544_v36 = vld [vmem:[#allocation8 + $0x8c] sm:$0xf0] }
  0x8e   : > { %1457 = vmatpush.bf16.msra.mxu2 %v5773_v21  ;;  %v5864_v37 = vld [vmem:[#allocation8 + $0x180] sm:$0xf]  ;;  %v5885_v38 = vor.u32 %v6578_v31, %v5882_v32  ;;  %v6576_v39 = vld [vmem:[#allocation8 + $0x18c] sm:$0xf0]  ;;  %v6542_v40 = vld [vmem:[#allocation8 + $0x84] sm:$0xf]  ;;  %v5737_v44 = vor.u32 %v6544_v36, %v5736_v35 }
  0x8f   : > { %1506 = vmatpush.bf16.msra.mxu3 %v5901_v25  ;;  %v5738_v41 = vld [vmem:[#allocation8 + $0x90] sm:$0xf0]  ;;  %v6574_v42 = vld [vmem:[#allocation8 + $0x184] sm:$0xf]  ;;  %v5865_v45 = vor.u32 %v6576_v39, %v5864_v37  ;;  %v5720_v47 = vld [vmem:[#allocation8 + $0x60] sm:$0xf] }
  0x90   : > { %v5866_v43 = vld [vmem:[#allocation8 + $0x190] sm:$0xf0]  ;;  %1360 = vmatpush.bf16.msra.mxu0 %v5753_v29  ;;  %v5741_v46 = vor.u32 %v6542_v40, %v5738_v41  ;;  %v6540_v48 = vld [vmem:[#allocation8 + $0x6c] sm:$0xf0]  ;;  %v5848_v49 = vld [vmem:[#allocation8 + $0x160] sm:$0xf] }
  0x91   : > { %1409 = vmatpush.bf16.msra.mxu1 %v5881_v33  ;;  %v5869_v50 = vor.u32 %v6574_v42, %v5866_v43  ;;  %v6572_v51 = vld [vmem:[#allocation8 + $0x16c] sm:$0xf0]  ;;  %v6538_v52 = vld [vmem:[#allocation8 + $0x64] sm:$0xf]  ;;  %v5722_v53 = vld [vmem:[#allocation8 + $0x70] sm:$0xf0]  ;;  %v5721_v56 = vor.u32 %v6540_v48, %v5720_v47 }
  0x92   : > { %1458 = vmatpush.bf16.msra.mxu2 %v5757_v34  ;;  %v6570_v54 = vld [vmem:[#allocation8 + $0x164] sm:$0xf]  ;;  %v5850_v55 = vld [vmem:[#allocation8 + $0x170] sm:$0xf0]  ;;  %v5849_v57 = vor.u32 %v6572_v51, %v5848_v49  ;;  %v5725_v58 = vor.u32 %v6538_v52, %v5722_v53  ;;  %v5704_v59 = vld [vmem:[#allocation8 + $0x40] sm:$0xf] }
  0x93   : > { %1507 = vmatpush.bf16.msra.mxu3 %v5885_v38  ;;  %v6536_v60 = vld [vmem:[#allocation8 + $0x4c] sm:$0xf0]  ;;  %v5832_v61 = vld [vmem:[#allocation8 + $0x140] sm:$0xf]  ;;  %v5853_v62 = vor.u32 %v6570_v54, %v5850_v55  ;;  %v6534_v0 = vld [vmem:[#allocation8 + $0x44] sm:$0xf] }
  0x94   : > { %1361 = vmatpush.bf16.msra.mxu0 %v5737_v44  ;;  %v6568_v63 = vld [vmem:[#allocation8 + $0x14c] sm:$0xf0]  ;;  %v5706_v1 = vld [vmem:[#allocation8 + $0x50] sm:$0xf0]  ;;  %v6566_v2 = vld [vmem:[#allocation8 + $0x144] sm:$0xf]  ;;  %v5705_v4 = vor.u32 %v6536_v60, %v5704_v59 }
  0x95   : > { %1410 = vmatpush.bf16.msra.mxu1 %v5865_v45  ;;  %v5834_v3 = vld [vmem:[#allocation8 + $0x150] sm:$0xf0]  ;;  %v5688_v5 = vld [vmem:[#allocation8 + $0x20] sm:$0xf]  ;;  %v6532_v6 = vld [vmem:[#allocation8 + $0x2c] sm:$0xf0]  ;;  %v5833_v7 = vor.u32 %v6568_v63, %v5832_v61  ;;  %v5709_v8 = vor.u32 %v6534_v0, %v5706_v1 }
  0x96   : > { %1459 = vmatpush.bf16.msra.mxu2 %v5741_v46  ;;  %v5816_v9 = vld [vmem:[#allocation8 + $0x120] sm:$0xf]  ;;  %v6564_v10 = vld [vmem:[#allocation8 + $0x12c] sm:$0xf0]  ;;  %v6530_v11 = vld [vmem:[#allocation8 + $0x24] sm:$0xf]  ;;  %v5837_v12 = vor.u32 %v6566_v2, %v5834_v3  ;;  %v5689_v20 = vor.u32 %v6532_v6, %v5688_v5 }
  0x97   : > { %1508 = vmatpush.bf16.msra.mxu3 %v5869_v50  ;;  %v5690_v13 = vld [vmem:[#allocation8 + $0x30] sm:$0xf0]  ;;  %v6562_v14 = vld [vmem:[#allocation8 + $0x124] sm:$0xf]  ;;  %v5672_v16 = vld [vmem:[#allocation8] sm:$0xf]  ;;  %v5817_v26 = vor.u32 %v6564_v10, %v5816_v9 }
  0x98   : > { %1362 = vmatpush.bf16.msra.mxu0 %v5721_v56  ;;  %v5818_v15 = vld [vmem:[#allocation8 + $0x130] sm:$0xf0]  ;;  %v6528_v17 = vld [vmem:[#allocation8 + $0xc] sm:$0xf0]  ;;  %v852_v18 = vld [vmem:[%s7873_s30] sm:$0xff]  ;;  %v5693_v27 = vor.u32 %v6530_v11, %v5690_v13  ;;  %s9941_s27 = sld [smem:[#allocation30_spill]] }
  0x99   : > { %1411 = vmatpush.bf16.msra.mxu1 %v5849_v57  ;;  %v854_v19 = vld [vmem:[%s7873_s30 + $0x10] sm:$0xff]  ;;  %v5800_v21 = vld [vmem:[#allocation8 + $0x100] sm:$0xf]  ;;  %v853_v25 = vld [vmem:[%s7873_s30 + $0x8] sm:$0xff]  ;;  %v5821_v31 = vor.u32 %v6562_v14, %v5818_v15  ;;  %v5673_v40 = vor.u32 %v6528_v17, %v5672_v16  ;;  %s9942_s19 = sld [smem:[#allocation31_spill]]  ;;  %vm2423_vm0 = vcmask 261120  }
  0x9a   : > { %1460 = vmatpush.bf16.msra.mxu2 %v5725_v58  ;;  %v6560_v22 = vld [vmem:[#allocation8 + $0x10c] sm:$0xf0]  ;;  %v884_v23 = vld [vmem:[%s7881_s24] sm:$0xff]  ;;  %v855_v28 = vld [vmem:[%s7873_s30 + $0x18] sm:$0xff]  ;;  %s9943_s18 = sld [smem:[#allocation33_spill]]  ;;  %s5666_s7 = sshll.u32 %s7713_s3, 4 }
  0x9b   : > { %1509 = vmatpush.bf16.msra.mxu3 %v5853_v62  ;;  %v886_v24 = vld [vmem:[%s7881_s24 + $0x10] sm:$0xff]  ;;  %v885_v29 = vld [vmem:[%s7881_s24 + $0x8] sm:$0xff]  ;;  %v887_v30 = vld [vmem:[%s7881_s24 + $0x18] sm:$0xff]  ;;  %v916_v36 = vmul.f32 %v884_v23, %v852_v18  ;;  %v5801_v45 = vor.u32 %v6560_v22, %v5800_v21  ;;  %s9944_s14 = sld [smem:[#allocation32_spill]]  ;;  %p838_p4 = scmp.lt.s32.totalorder %s5666_s7, 31  ;;  %vm2917_vm2 = vcmask 130048  }
  0x9c   : > { %1363 = vmatpush.bf16.msra.mxu0 %v5705_v4  ;;  %v6526_v32 = vld [vmem:[#allocation8 + $0x4] sm:$0xf]  ;;  %v5674_v33 = vld [vmem:[#allocation8 + $0x10] sm:$0xf0]  ;;  %v918_v37 = vmul.f32 %v886_v24, %v854_v19  ;;  %v6555_v38 = vld [vmem:[#allocation8 + $0xec] sm:$0xf]  ;;  %v917_v41 = vmul.f32 %v885_v29, %v853_v25  ;;  %v919_v42 = vmul.f32 %v887_v30, %v855_v28 }
  0x9d   : > { %1412 = vmatpush.bf16.msra.mxu1 %v5833_v7  ;;  %v6558_v34 = vld [vmem:[#allocation8 + $0x104] sm:$0xf]  ;;  %v5802_v35 = vld [vmem:[#allocation8 + $0x110] sm:$0xf0]  ;;  %v5794_v39 = vld [vmem:[#allocation8 + $0xf8] sm:$0xf0]  ;;  %v5677_v46 = vor.u32 %v6526_v32, %v5674_v33 }
  0x9e   : > { %1461 = vmatpush.bf16.msra.mxu2 %v5709_v8  ;;  %v6587_v43 = vld [vmem:[#allocation8 + $0x1ec] sm:$0xf]  ;;  %v5922_v44 = vld [vmem:[#allocation8 + $0x1f8] sm:$0xf0]  ;;  %v5805_v47 = vor.u32 %v6558_v34, %v5802_v35  ;;  %v5797_v48 = vor.u32 %v6555_v38, %v5794_v39  ;;  %v5792_v49 = vld [vmem:[#allocation8 + $0xe8] sm:$0xf]  ;;  %v7906_v52 = vpack.c.bf16 %v918_v37, %v916_v36  ;;  %v7908_v57 = vpack.c.bf16 %v919_v42, %v917_v41 }
  0x9f   : > { %1510 = vmatpush.bf16.msra.mxu3 %v5837_v12  ;;  %v6557_v50 = vld [vmem:[#allocation8 + $0xf4] sm:$0xf0]  ;;  %v5920_v51 = vld [vmem:[#allocation8 + $0x1e8] sm:$0xf]  ;;  %v5925_v53 = vor.u32 %v6587_v43, %v5922_v44  ;;  %v6551_v55 = vld [vmem:[#allocation8 + $0xcc] sm:$0xf] }
  0xa0   : > { %1364 = vmatpush.bf16.msra.mxu0 %v5689_v20  ;;  %v6589_v54 = vld [vmem:[#allocation8 + $0x1f4] sm:$0xf0]  ;;  %v5778_v56 = vld [vmem:[#allocation8 + $0xd8] sm:$0xf0]  ;;  %v6583_v58 = vld [vmem:[#allocation8 + $0x1cc] sm:$0xf]  ;;  %v5793_v60 = vor.u32 %v6557_v50, %v5792_v49 }
  0xa1   : > { %1413 = vmatpush.bf16.msra.mxu1 %v5817_v26  ;;  %v5906_v59 = vld [vmem:[#allocation8 + $0x1d8] sm:$0xf0]  ;;  %v5921_v61 = vor.u32 %v6589_v54, %v5920_v51  ;;  %v5781_v62 = vor.u32 %v6551_v55, %v5778_v56  ;;  %v5776_v63 = vld [vmem:[#allocation8 + $0xc8] sm:$0xf]  ;;  %v6553_v0 = vld [vmem:[#allocation8 + $0xd4] sm:$0xf0] }
  0xa2   : > { %1462 = vmatpush.bf16.msra.mxu2 %v5693_v27  ;;  %v5909_v1 = vor.u32 %v6583_v58, %v5906_v59  ;;  %v5904_v2 = vld [vmem:[#allocation8 + $0x1c8] sm:$0xf]  ;;  %v6585_v3 = vld [vmem:[#allocation8 + $0x1d4] sm:$0xf0]  ;;  %v5777_v4 = vor.u32 %v6553_v0, %v5776_v63  ;;  %v6547_v5 = vld [vmem:[#allocation8 + $0xac] sm:$0xf] }
  0xa3   : > { %1511 = vmatpush.bf16.msra.mxu3 %v5821_v31  ;;  %v5762_v6 = vld [vmem:[#allocation8 + $0xb8] sm:$0xf0]  ;;  %v6579_v7 = vld [vmem:[#allocation8 + $0x1ac] sm:$0xf]  ;;  %v856_v8 = vld [vmem:[%s7873_s30 + $0x20] sm:$0xff]  ;;  %v5905_v10 = vor.u32 %v6585_v3, %v5904_v2  ;;  %s9945_s11 = sld [smem:[#allocation34_spill]] }
  0xa4   : > { %1365 = vmatpush.bf16.msra.mxu0 %v5673_v40  ;;  %v858_v9 = vld [vmem:[%s7873_s30 + $0x30] sm:$0xff]  ;;  %v5765_v11 = vor.u32 %v6547_v5, %v5762_v6  ;;  %v5890_v12 = vld [vmem:[#allocation8 + $0x1b8] sm:$0xf0]  ;;  %v5760_v13 = vld [vmem:[#allocation8 + $0xa8] sm:$0xf]  ;;  %s9966_s7 = smov (!%p838_p4, %s5666_s7), 31 }
  0xa5   : > { %1414 = vmatpush.bf16.msra.mxu1 %v5801_v45  ;;  %v6549_v14 = vld [vmem:[#allocation8 + $0xb4] sm:$0xf0]  ;;  %v888_v15 = vld [vmem:[%s7881_s24 + $0x20] sm:$0xff]  ;;  %v5893_v16 = vor.u32 %v6579_v7, %v5890_v12  ;;  %v5888_v17 = vld [vmem:[#allocation8 + $0x1a8] sm:$0xf]  ;;  %s5667_s9 = sshll.u32 %s9966_s7, 3 }
  0xa6   : > { %1463 = vmatpush.bf16.msra.mxu2 %v5677_v46  ;;  %v6581_v18 = vld [vmem:[#allocation8 + $0x1b4] sm:$0xf0]  ;;  %v890_v19 = vld [vmem:[%s7881_s24 + $0x30] sm:$0xff]  ;;  %v857_v20 = vld [vmem:[%s7873_s30 + $0x28] sm:$0xff]  ;;  %v5761_v24 = vor.u32 %v6549_v14, %v5760_v13  ;;  %v920_v26 = vmul.f32 %v888_v15, %v856_v8  ;;  %s7579_s23 = smov 112   ;;  %s9948_s20 = sld [smem:[#allocation37_spill]] }
  0xa7   : > { %1512 = vmatpush.bf16.msra.mxu3 %v5805_v47  ;;  %1366 = vmatmul.bf16.vlgmr.msra.gmra.mxu0 %v7906_v52  ;;  %v859_v21 = vld [vmem:[%s7873_s30 + $0x38] sm:$0xff]  ;;  %v889_v22 = vld [vmem:[%s7881_s24 + $0x28] sm:$0xff]  ;;  %v5889_v25 = vor.u32 %v6581_v18, %v5888_v17  ;;  %v922_v27 = vmul.f32 %v890_v19, %v858_v9  ;;  %v860_v35 = vld [vmem:[%s7873_s30 + $0x40] sm:$0xff]  ;;  %s9953_s5 = sld [smem:[#allocation42_spill]]  ;;  %s9079_s10 = scalar_lea.vmem [#allocation13], %s7869_s22 }
  0xa8   : > { %1415 = vmatmul.bf16.vlgmr.msra.gmra.mxu1 %v7908_v57  ;;  %1554 = vmatpush.bf16.msrb.mxu0 %v5793_v60  ;;  %v891_v23 = vld [vmem:[%s7881_s24 + $0x38] sm:$0xff]  ;;  %v921_v28 = vmul.f32 %v889_v22, %v857_v20  ;;  %v6543_v32 = vld [vmem:[#allocation8 + $0x8c] sm:$0xf]  ;;  %v5744_v38 = vld [vmem:[#allocation8 + $0x88] sm:$0xf]  ;;  %s6732_s22 = sshll.u32 %s7713_s3, 8 }
  0xa9   : > { %1464 = vmatmul.bf16.vlgmr.msra.gmra.mxu2 %v7906_v52  ;;  %1603 = vmatpush.bf16.msrb.mxu1 %v5921_v61  ;;  %v923_v29 = vmul.f32 %v891_v23, %v859_v21  ;;  %v7922_v30 = vpack.c.bf16 %v922_v27, %v920_v26  ;;  %v5746_v33 = vld [vmem:[#allocation8 + $0x98] sm:$0xf0]  ;;  %v6575_v34 = vld [vmem:[#allocation8 + $0x18c] sm:$0xf]  ;;  %v6545_v39 = vld [vmem:[#allocation8 + $0x94] sm:$0xf0] }
  0xaa   : > { %1652 = vmatpush.bf16.msrb.mxu2 %v5797_v48  ;;  %1513 = vmatmul.bf16.vlgmr.msra.gmra.mxu3 %v7908_v57  ;;  %v5749_v36 = vor.u32 %v6543_v32, %v5746_v33  ;;  %v5874_v37 = vld [vmem:[#allocation8 + $0x198] sm:$0xf0]  ;;  %v862_v40 = vld [vmem:[%s7873_s30 + $0x50] sm:$0xff]  ;;  %v5745_v42 = vor.u32 %v6545_v39, %v5744_v38  ;;  %v5872_v43 = vld [vmem:[#allocation8 + $0x188] sm:$0xf]  ;;  %s9954_s0 = sld [smem:[#allocation43_spill]] }
  0xab   : > { %1701 = vmatpush.bf16.msrb.mxu3 %v5925_v53  ;;  %v7924_v31 = vpack.c.bf16 %v923_v29, %v921_v28  ;;  %v5877_v41 = vor.u32 %v6575_v34, %v5874_v37  ;;  %v6577_v44 = vld [vmem:[#allocation8 + $0x194] sm:$0xf0]  ;;  %v892_v45 = vld [vmem:[%s7881_s24 + $0x40] sm:$0xff]  ;;  %v894_v46 = vld [vmem:[%s7881_s24 + $0x50] sm:$0xff]  ;;  %s5451_s4 = sshll.u32 %s9079_s10, 4  ;;  %s5452_s4 = int_to_ptr.vmem [resolvable:$true] %s5451_s4 }
  0xac   : > { %1555 = vmatpush.bf16.msrb.mxu0 %v5777_v4  ;;  %v861_v47 = vld [vmem:[%s7873_s30 + $0x48] sm:$0xff]  ;;  %v5873_v48 = vor.u32 %v6577_v44, %v5872_v43  ;;  %v863_v49 = vld [vmem:[%s7873_s30 + $0x58] sm:$0xff]  ;;  %v924_v53 = vmul.f32 %v892_v45, %v860_v35  ;;  %v926_v54 = vmul.f32 %v894_v46, %v862_v40  ;;  %v864_v63 = vld [vmem:[%s7873_s30 + $0x60] sm:$0xff] }
  0xad   : > { %1604 = vmatpush.bf16.msrb.mxu1 %v5905_v10  ;;  %v893_v50 = vld [vmem:[%s7881_s24 + $0x48] sm:$0xff]  ;;  %v895_v51 = vld [vmem:[%s7881_s24 + $0x58] sm:$0xff]  ;;  %v866_v4 = vld [vmem:[%s7873_s30 + $0x70] sm:$0xff] }
  0xae   : > { %1653 = vmatpush.bf16.msrb.mxu2 %v5781_v62  ;;  %v925_v55 = vmul.f32 %v893_v50, %v861_v47  ;;  %v927_v56 = vmul.f32 %v895_v51, %v863_v49  ;;  %v7938_v58 = vpack.c.bf16 %v926_v54, %v924_v53  ;;  %v6539_v60 = vld [vmem:[#allocation8 + $0x6c] sm:$0xf]  ;;  %v5730_v61 = vld [vmem:[#allocation8 + $0x78] sm:$0xf0]  ;;  %v5728_v2 = vld [vmem:[#allocation8 + $0x68] sm:$0xf] }
  0xaf   : > { %1702 = vmatpush.bf16.msrb.mxu3 %v5909_v1  ;;  %v6571_v62 = vld [vmem:[#allocation8 + $0x16c] sm:$0xf]  ;;  %v5733_v0 = vor.u32 %v6539_v60, %v5730_v61  ;;  %v5858_v1 = vld [vmem:[#allocation8 + $0x178] sm:$0xf0]  ;;  %v6541_v3 = vld [vmem:[#allocation8 + $0x74] sm:$0xf0] }
  0xb0   : > { %1556 = vmatpush.bf16.msrb.mxu0 %v5761_v24  ;;  %v7940_v59 = vpack.c.bf16 %v927_v56, %v925_v55  ;;  %v5861_v5 = vor.u32 %v6571_v62, %v5858_v1  ;;  %v5729_v6 = vor.u32 %v6541_v3, %v5728_v2  ;;  %v5856_v7 = vld [vmem:[#allocation8 + $0x168] sm:$0xf]  ;;  %v6573_v8 = vld [vmem:[#allocation8 + $0x174] sm:$0xf0]  ;;  %v896_v9 = vld [vmem:[%s7881_s24 + $0x60] sm:$0xff]  ;;  %s7512_s2 = scalar_lea.hbm %s9954_s0, 512 }
  0xb1   : > { %1605 = vmatpush.bf16.msrb.mxu1 %v5889_v25  ;;  %v898_v10 = vld [vmem:[%s7881_s24 + $0x70] sm:$0xff]  ;;  %v5857_v12 = vor.u32 %v6573_v8, %v5856_v7  ;;  %v867_v13 = vld [vmem:[%s7873_s30 + $0x78] sm:$0xff]  ;;  %v897_v14 = vld [vmem:[%s7881_s24 + $0x68] sm:$0xff] }
  0xb2   : > { %1654 = vmatpush.bf16.msrb.mxu2 %v5765_v11  ;;  %v865_v11 = vld [vmem:[%s7873_s30 + $0x68] sm:$0xff]  ;;  %v899_v15 = vld [vmem:[%s7881_s24 + $0x78] sm:$0xff]  ;;  %v930_v17 = vmul.f32 %v898_v10, %v866_v4  ;;  %v868_v25 = vld [vmem:[%s7873_s30 + $0x80] sm:$0xff] }
  0xb3   : > { %1703 = vmatpush.bf16.msrb.mxu3 %v5893_v16  ;;  %v928_v16 = vmul.f32 %v896_v9, %v864_v63  ;;  %v929_v18 = vmul.f32 %v897_v14, %v865_v11  ;;  %v931_v19 = vmul.f32 %v899_v15, %v867_v13  ;;  %v6535_v22 = vld [vmem:[#allocation8 + $0x4c] sm:$0xf]  ;;  %v5714_v23 = vld [vmem:[#allocation8 + $0x58] sm:$0xf0]  ;;  %v5712_v28 = vld [vmem:[#allocation8 + $0x48] sm:$0xf] }
  0xb4   : > { %1557 = vmatpush.bf16.msrb.mxu0 %v5745_v42  ;;  %v6567_v24 = vld [vmem:[#allocation8 + $0x14c] sm:$0xf]  ;;  %v5717_v26 = vor.u32 %v6535_v22, %v5714_v23  ;;  %v5842_v27 = vld [vmem:[#allocation8 + $0x158] sm:$0xf0]  ;;  %v6537_v29 = vld [vmem:[#allocation8 + $0x54] sm:$0xf0] }
  0xb5   : > { %1606 = vmatpush.bf16.msrb.mxu1 %v5873_v48  ;;  %v7954_v20 = vpack.c.bf16 %v930_v17, %v928_v16  ;;  %v7956_v21 = vpack.c.bf16 %v931_v19, %v929_v18  ;;  %v870_v32 = vld [vmem:[%s7873_s30 + $0x90] sm:$0xff]  ;;  %v5845_v33 = vor.u32 %v6567_v24, %v5842_v27  ;;  %v5713_v34 = vor.u32 %v6537_v29, %v5712_v28  ;;  %v5840_v35 = vld [vmem:[#allocation8 + $0x148] sm:$0xf]  ;;  %v900_v37 = vld [vmem:[%s7881_s24 + $0x80] sm:$0xff] }
  0xb6   : > { %1655 = vmatpush.bf16.msrb.mxu2 %v5749_v36  ;;  %v6569_v36 = vld [vmem:[#allocation8 + $0x154] sm:$0xf0]  ;;  %v902_v38 = vld [vmem:[%s7881_s24 + $0x90] sm:$0xff]  ;;  %v869_v39 = vld [vmem:[%s7873_s30 + $0x88] sm:$0xff]  ;;  %v932_v44 = vmul.f32 %v900_v37, %v868_v25 }
  0xb7   : > { %1371 = vmatmul.bf16.gmra.mxu0 %v7922_v30  ;;  %1704 = vmatpush.bf16.msrb.mxu3 %v5877_v41  ;;  %v5841_v40 = vor.u32 %v6569_v36, %v5840_v35  ;;  %v871_v41 = vld [vmem:[%s7873_s30 + $0x98] sm:$0xff]  ;;  %v901_v42 = vld [vmem:[%s7881_s24 + $0x88] sm:$0xff]  ;;  %v934_v45 = vmul.f32 %v902_v38, %v870_v32  ;;  %v872_v54 = vld [vmem:[%s7873_s30 + $0xa0] sm:$0xff] }
  0xb8   : > { %1420 = vmatmul.bf16.gmra.mxu1 %v7924_v31  ;;  %1558 = vmatpush.bf16.msrb.mxu0 %v5729_v6  ;;  %v903_v43 = vld [vmem:[%s7881_s24 + $0x98] sm:$0xff]  ;;  %v933_v46 = vmul.f32 %v901_v42, %v869_v39  ;;  %v6531_v50 = vld [vmem:[#allocation8 + $0x2c] sm:$0xf]  ;;  %v5696_v60 = vld [vmem:[#allocation8 + $0x28] sm:$0xf] }
  0xb9   : > { %1469 = vmatmul.bf16.gmra.mxu2 %v7922_v30  ;;  %1607 = vmatpush.bf16.msrb.mxu1 %v5857_v12  ;;  %v935_v47 = vmul.f32 %v903_v43, %v871_v41  ;;  %v7970_v48 = vpack.c.bf16 %v934_v45, %v932_v44  ;;  %v5698_v51 = vld [vmem:[#allocation8 + $0x38] sm:$0xf0]  ;;  %v6563_v53 = vld [vmem:[#allocation8 + $0x12c] sm:$0xf]  ;;  %v6533_v61 = vld [vmem:[#allocation8 + $0x34] sm:$0xf0] }
  0xba   : > { %1518 = vmatmul.bf16.gmra.mxu3 %v7924_v31  ;;  %1656 = vmatpush.bf16.msrb.mxu2 %v5733_v0  ;;  %v5701_v55 = vor.u32 %v6531_v50, %v5698_v51  ;;  %v5826_v56 = vld [vmem:[#allocation8 + $0x138] sm:$0xf0]  ;;  %v874_v62 = vld [vmem:[%s7873_s30 + $0xb0] sm:$0xff]  ;;  %v5697_v0 = vor.u32 %v6533_v61, %v5696_v60  ;;  %v5824_v1 = vld [vmem:[#allocation8 + $0x128] sm:$0xf] }
  0xbb   : > { %1705 = vmatpush.bf16.msrb.mxu3 %v5861_v5  ;;  %v7972_v49 = vpack.c.bf16 %v935_v47, %v933_v46  ;;  %v5829_v63 = vor.u32 %v6563_v53, %v5826_v56  ;;  %v6565_v2 = vld [vmem:[#allocation8 + $0x134] sm:$0xf0]  ;;  %v904_v3 = vld [vmem:[%s7881_s24 + $0xa0] sm:$0xff]  ;;  %v906_v4 = vld [vmem:[%s7881_s24 + $0xb0] sm:$0xff] }
  0xbc   : > { %1559 = vmatpush.bf16.msrb.mxu0 %v5713_v34  ;;  %v873_v5 = vld [vmem:[%s7873_s30 + $0xa8] sm:$0xff]  ;;  %v5825_v6 = vor.u32 %v6565_v2, %v5824_v1  ;;  %v875_v7 = vld [vmem:[%s7873_s30 + $0xb8] sm:$0xff]  ;;  %v936_v10 = vmul.f32 %v904_v3, %v872_v54  ;;  %v938_v11 = vmul.f32 %v906_v4, %v874_v62  ;;  %v876_v19 = vld [vmem:[%s7873_s30 + $0xc0] sm:$0xff] }
  0xbd   : > { %1608 = vmatpush.bf16.msrb.mxu1 %v5841_v40  ;;  %v905_v8 = vld [vmem:[%s7881_s24 + $0xa8] sm:$0xff]  ;;  %v907_v9 = vld [vmem:[%s7881_s24 + $0xb8] sm:$0xff]  ;;  %v910_v34 = vld [vmem:[%s7881_s24 + $0xd0] sm:$0xff] }
  0xbe   : > { %1657 = vmatpush.bf16.msrb.mxu2 %v5717_v26  ;;  %v937_v12 = vmul.f32 %v905_v8, %v873_v5  ;;  %v939_v13 = vmul.f32 %v907_v9, %v875_v7  ;;  %v7986_v14 = vpack.c.bf16 %v938_v11, %v936_v10  ;;  %v6527_v16 = vld [vmem:[#allocation8 + $0xc] sm:$0xf]  ;;  %v5682_v17 = vld [vmem:[#allocation8 + $0x18] sm:$0xf0]  ;;  %v5680_v24 = vld [vmem:[#allocation8 + $0x8] sm:$0xf] }
  0xbf   : > { %1706 = vmatpush.bf16.msrb.mxu3 %v5845_v33  ;;  %v6559_v18 = vld [vmem:[#allocation8 + $0x10c] sm:$0xf]  ;;  %v5685_v22 = vor.u32 %v6527_v16, %v5682_v17  ;;  %v5810_v23 = vld [vmem:[#allocation8 + $0x118] sm:$0xf0]  ;;  %v6529_v25 = vld [vmem:[#allocation8 + $0x14] sm:$0xf0] }
  0xc0   : > { %1560 = vmatpush.bf16.msrb.mxu0 %v5697_v0  ;;  %v7988_v15 = vpack.c.bf16 %v939_v13, %v937_v12  ;;  %v878_v26 = vld [vmem:[%s7873_s30 + $0xd0] sm:$0xff]  ;;  %v5813_v27 = vor.u32 %v6559_v18, %v5810_v23  ;;  %v5681_v28 = vor.u32 %v6529_v25, %v5680_v24  ;;  %v5808_v29 = vld [vmem:[#allocation8 + $0x108] sm:$0xf]  ;;  %v6561_v32 = vld [vmem:[#allocation8 + $0x114] sm:$0xf0] }
  0xc1   : > { %1609 = vmatpush.bf16.msrb.mxu1 %v5825_v6  ;;  %v908_v33 = vld [vmem:[%s7881_s24 + $0xc0] sm:$0xff]  ;;  %v877_v35 = vld [vmem:[%s7873_s30 + $0xc8] sm:$0xff]  ;;  %v5809_v36 = vor.u32 %v6561_v32, %v5808_v29  ;;  %v879_v37 = vld [vmem:[%s7873_s30 + $0xd8] sm:$0xff]  ;;  %v942_v41 = vmul.f32 %v910_v34, %v878_v26 }
  0xc2   : > { %1658 = vmatpush.bf16.msrb.mxu2 %v5701_v55  ;;  %v909_v38 = vld [vmem:[%s7881_s24 + $0xc8] sm:$0xff]  ;;  %v911_v39 = vld [vmem:[%s7881_s24 + $0xd8] sm:$0xff]  ;;  %v940_v40 = vmul.f32 %v908_v33, %v876_v19  ;;  %v880_v46 = vld [vmem:[%s7873_s30 + $0xe0] sm:$0xff] }
  0xc3   : > { %1707 = vmatpush.bf16.msrb.mxu3 %v5829_v63  ;;  %v941_v42 = vmul.f32 %v909_v38, %v877_v35  ;;  %v943_v43 = vmul.f32 %v911_v39, %v879_v37  ;;  %v882_v47 = vld [vmem:[%s7873_s30 + $0xf0] sm:$0xff]  ;;  %v912_v50 = vld [vmem:[%s7881_s24 + $0xe0] sm:$0xff]  ;;  %v881_v53 = vld [vmem:[%s7873_s30 + $0xe8] sm:$0xff] }
  0xc4   : > { %1561 = vmatpush.bf16.msrb.mxu0 %v5681_v28  ;;  %v8002_v44 = vpack.c.bf16 %v942_v41, %v940_v40  ;;  %v914_v51 = vld [vmem:[%s7881_s24 + $0xf0] sm:$0xff]  ;;  %v883_v54 = vld [vmem:[%s7873_s30 + $0xf8] sm:$0xff]  ;;  %v913_v55 = vld [vmem:[%s7881_s24 + $0xe8] sm:$0xff]  ;;  %v944_v60 = vmul.f32 %v912_v50, %v880_v46  ;;  %s9946_s30 = sld [smem:[#allocation44_spill]] }
  0xc5   : > { %1610 = vmatpush.bf16.msrb.mxu1 %v5809_v36  ;;  %v8004_v45 = vpack.c.bf16 %v943_v43, %v941_v42  ;;  %v915_v56 = vld [vmem:[%s7881_s24 + $0xf8] sm:$0xff]  ;;  %v946_v61 = vmul.f32 %v914_v51, %v882_v47  ;;  %v945_v62 = vmul.f32 %v913_v55, %v881_v53  ;;  %v8038_v5 = vld [vmem:[%s9941_s27] sm:$0xf]  ;;  %v6612_v13 = vld [vmem:[%s9859_s6 + $0xb0] sm:$0xff]  ;;  %s9949_s27 = sld [smem:[#allocation27_spill]] }
  0xc6   : > { %1659 = vmatpush.bf16.msrb.mxu2 %v5685_v22  ;;  %v947_v63 = vmul.f32 %v915_v56, %v883_v54  ;;  %v6613_v2 = vld [vmem:[%s9859_s6 + $0xb8] sm:$0xff]  ;;  %v8044_v7 = vperm.slane %v8038_v5, 0  ;;  %v8053_v12 = vperm.slane %v8038_v5, 1  ;;  %v6596_v16 = vld [vmem:[%s9859_s6 + $0x30] sm:$0xff]  ;;  %v6611_v39 = vld [vmem:[%s9859_s6 + $0xa8] sm:$0xff]  ;;  %s9952_s24 = sld [smem:[#allocation40_spill]] }
  0xc7   : > { %1376 = vmatmul.bf16.gmra.mxu0 %v7938_v58  ;;  %1708 = vmatpush.bf16.msrb.mxu3 %v5813_v27  ;;  %v8018_v0 = vpack.c.bf16 %v946_v61, %v944_v60  ;;  %v6597_v3 = vld [vmem:[%s9859_s6 + $0x38] sm:$0xff]  ;;  %v6620_v17 = vld [vmem:[%s9859_s6 + $0xf0] sm:$0xff]  ;;  %v6595_v40 = vld [vmem:[%s9859_s6 + $0x28] sm:$0xff] }
  0xc8   : > { %1425 = vmatmul.bf16.gmra.mxu1 %v7940_v59  ;;  %v8020_v1 = vpack.c.bf16 %v947_v63, %v945_v62  ;;  %v6621_v4 = vld [vmem:[%s9859_s6 + $0xf8] sm:$0xff]  ;;  %2042 = vmatpush.bf16.msra.mxu0 %v6597_v3  ;;  %v6604_v25 = vld [vmem:[%s9859_s6 + $0x70] sm:$0xff]  ;;  %v6619_v41 = vld [vmem:[%s9859_s6 + $0xe8] sm:$0xff] }
  0xc9   : > { %1474 = vmatmul.bf16.gmra.mxu2 %v7938_v58  ;;  %v6605_v6 = vld [vmem:[%s9859_s6 + $0x78] sm:$0xff]  ;;  %v6603_v51 = vld [vmem:[%s9859_s6 + $0x68] sm:$0xff] }
  0xca   : > { %1523 = vmatmul.bf16.gmra.mxu3 %v7940_v59  ;;  %2140 = vmatpush.bf16.msra.mxu2 %v6613_v2  ;;  %s8472_s12 = scalar_lea.vmem %s9946_s30, %s5667_s9  ;;  %s9951_s30 = sld [smem:[#allocation38_spill]] }
  0xcb   : > { %2189 = vmatpush.bf16.msra.mxu3 %v6621_v4  ;;  %2091 = vmatpush.bf16.msra.mxu1 %v6605_v6  ;;  %v6610_v6 = vld [vmem:[%s9859_s6 + $0xa0] sm:$0xff] }
  0xcc   : > { %2043 = vmatpush.bf16.msra.mxu0 %v6596_v16 }
  0xce   : > { %2141 = vmatpush.bf16.msra.mxu2 %v6612_v13 }
  0xcf   : > { %2190 = vmatpush.bf16.msra.mxu3 %v6620_v17  ;;  %2092 = vmatpush.bf16.msra.mxu1 %v6604_v25 }
  0xd0   : > { %2044 = vmatpush.bf16.msra.mxu0 %v6595_v40  ;;  %v6593_v40 = vld [vmem:[%s9859_s6 + $0x18] sm:$0xff] }
  0xd2   : > { %2142 = vmatpush.bf16.msra.mxu2 %v6611_v39  ;;  %v6609_v39 = vld [vmem:[%s9859_s6 + $0x98] sm:$0xff] }
  0xd3   : > { %2191 = vmatpush.bf16.msra.mxu3 %v6619_v41  ;;  %2093 = vmatpush.bf16.msra.mxu1 %v6603_v51  ;;  %v6617_v41 = vld [vmem:[%s9859_s6 + $0xd8] sm:$0xff] }
  0xd6   : > { %2143 = vmatpush.bf16.msra.mxu2 %v6610_v6 }
  0xd7   : > { %1381 = vmatmul.bf16.gmra.mxu0 %v7954_v20 }
  0xd8   : > { %1430 = vmatmul.bf16.gmra.mxu1 %v7956_v21 }
  0xd9   : > { %1479 = vmatmul.bf16.gmra.mxu2 %v7954_v20 }
  0xda   : > { %1528 = vmatmul.bf16.gmra.mxu3 %v7956_v21  ;;  %2144 = vmatpush.bf16.msra.mxu2 %v6609_v39 }
  0xe7   : > { %1386 = vmatmul.bf16.gmra.mxu0 %v7970_v48 }
  0xe8   : > { %1435 = vmatmul.bf16.gmra.mxu1 %v7972_v49 }
  0xe9   : > { %1484 = vmatmul.bf16.gmra.mxu2 %v7970_v48 }
  0xea   : > { %1533 = vmatmul.bf16.gmra.mxu3 %v7972_v49 }
  0xf7   : > { %1391 = vmatmul.bf16.gmra.mxu0 %v7986_v14 }
  0xf8   : > { %1440 = vmatmul.bf16.gmra.mxu1 %v7988_v15 }
  0xf9   : > { %1489 = vmatmul.bf16.gmra.mxu2 %v7986_v14 }
  0xfa   : > { %1538 = vmatmul.bf16.gmra.mxu3 %v7988_v15 }
 0x107   : > { %1396 = vmatmul.bf16.gmra.mxu0 %v8002_v44 }
 0x108   : > { %1445 = vmatmul.bf16.gmra.mxu1 %v8004_v45 }
 0x109   : > { %1494 = vmatmul.bf16.gmra.mxu2 %v8002_v44 }
 0x10a   : > { %1543 = vmatmul.bf16.gmra.mxu3 %v8004_v45 }
 0x117   : > { %1401 = vmatmul.bf16.gmra.mxu0 %v8018_v0 }
 0x118   : > { %1450 = vmatmul.bf16.gmra.mxu1 %v8020_v1 }
 0x119   : > { %1499 = vmatmul.bf16.gmra.mxu2 %v8018_v0 }
 0x11a   : > { %1548 = vmatmul.bf16.gmra.mxu3 %v8020_v1 }
 0x124   : > { %v1367_v8 = vpop.f32.mrf.mxu0 }
 0x125   : > { %v1368_v9 = vadd.f32 %v1367_v8, %v8044_v7  ;;  %v1416_v10 = vpop.f32.mrf.mxu1  ;;  %v6594_v8 = vld [vmem:[%s9859_s6 + $0x20] sm:$0xff] }
 0x126   : > { %2045 = vmatpush.bf16.msra.mxu0 %v6594_v8 }
 0x127   : > { %v8047_v11 = vadd.f32 %v1416_v10, %v1368_v9  ;;  %1562 = vmatmul.bf16.vlgmr.msrb.gmra.mxu0 %v7906_v52  ;;  %v6618_v9 = vld [vmem:[%s9859_s6 + $0xe0] sm:$0xff] }
 0x128   : > { %1611 = vmatmul.bf16.vlgmr.msrb.gmra.mxu1 %v7908_v57  ;;  %2192 = vmatpush.bf16.msra.mxu3 %v6618_v9 }
 0x129   : > { %1660 = vmatmul.bf16.vlgmr.msrb.gmra.mxu2 %v7906_v52 }
 0x12a   : > { %1709 = vmatmul.bf16.vlgmr.msrb.gmra.mxu3 %v7908_v57  ;;  %2046 = vmatpush.bf16.msra.mxu0 %v6593_v40 }
 0x12c   : > { %v1465_v18 = vpop.f32.mrf.mxu2  ;;  %v1369_v22 = vpop.f32.mrf.mxu0  ;;  %2193 = vmatpush.bf16.msra.mxu3 %v6617_v41 }
 0x12d   : > { %v1466_v52 = vadd.f32 %v1465_v18, %v8053_v12  ;;  %v1514_v19 = vpop.f32.mrf.mxu3  ;;  %v1370_v57 = vadd.f32 %v1369_v22, %v8044_v7  ;;  %v1418_v23 = vpop.f32.mrf.mxu1 }
 0x12f   : > { %v8067_v24 = vadd.f32 %v1514_v19, %v1466_v52  ;;  %v8072_v26 = vadd.f32 %v1418_v23, %v1370_v57  ;;  %v6602_v52 = vld [vmem:[%s9859_s6 + $0x60] sm:$0xff] }
 0x130   : > { %2094 = vmatpush.bf16.msra.mxu1 %v6602_v52 }
 0x131   : > { %v1750_v27 = vpack.c.bf16 %v8072_v26, %v8047_v11  ;;  %v6629_v11 = vld [vmem:[%s9861_s8 + $0x38] sm:$0xff] }
 0x134   : > { %v1467_v28 = vpop.f32.mrf.mxu2  ;;  %v1372_v33 = vpop.f32.mrf.mxu0 }
 0x135   : > { %v1468_v29 = vadd.f32 %v1467_v28, %v8053_v12  ;;  %v1516_v32 = vpop.f32.mrf.mxu3  ;;  %v1373_v34 = vadd.f32 %v1372_v33, %v8044_v7  ;;  %v1421_v35 = vpop.f32.mrf.mxu1 }
 0x137   : > { %v8078_v36 = vadd.f32 %v1516_v32, %v1468_v29  ;;  %v8080_v37 = vadd.f32 %v1421_v35, %v1373_v34  ;;  %1567 = vmatmul.bf16.gmra.mxu0 %v7922_v30 }
 0x138   : > { %1616 = vmatmul.bf16.gmra.mxu1 %v7924_v31 }
 0x139   : > { %v1751_v38 = vpack.c.bf16 %v8078_v36, %v8067_v24  ;;  %1665 = vmatmul.bf16.gmra.mxu2 %v7922_v30 }
 0x13a   : > { %1714 = vmatmul.bf16.gmra.mxu3 %v7924_v31 }
 0x13c   : > { %v1470_v42 = vpop.f32.mrf.mxu2  ;;  %v1374_v46 = vpop.f32.mrf.mxu0 }
 0x13d   : > { %v1471_v43 = vadd.f32 %v1470_v42, %v8053_v12  ;;  %v1519_v30 = vpop.f32.mrf.mxu3  ;;  %v1375_v31 = vadd.f32 %v1374_v46, %v8044_v7  ;;  %v1423_v47 = vpop.f32.mrf.mxu1 }
 0x13f   : > { %v8099_v50 = vadd.f32 %v1519_v30, %v1471_v43  ;;  %v8104_v53 = vadd.f32 %v1423_v47, %v1375_v31  ;;  %v6601_v47 = vld [vmem:[%s9859_s6 + $0x58] sm:$0xff] }
 0x140   : > { %2095 = vmatpush.bf16.msra.mxu1 %v6601_v47  ;;  %v6591_v47 = vld [vmem:[%s9859_s6 + $0x8] sm:$0xff] }
 0x141   : > { %v1754_v54 = vpack.c.bf16 %v8104_v53, %v8080_v37 }
 0x144   : > { %v1472_v55 = vpop.f32.mrf.mxu2  ;;  %v1377_v61 = vpop.f32.mrf.mxu0 }
 0x145   : > { %v1473_v56 = vadd.f32 %v1472_v55, %v8053_v12  ;;  %v1521_v60 = vpop.f32.mrf.mxu3  ;;  %v1378_v62 = vadd.f32 %v1377_v61, %v8044_v7  ;;  %v1426_v63 = vpop.f32.mrf.mxu1 }
 0x147   : > { %v8110_v2 = vadd.f32 %v1521_v60, %v1473_v56  ;;  %v8112_v3 = vadd.f32 %v1426_v63, %v1378_v62  ;;  %1572 = vmatmul.bf16.gmra.mxu0 %v7938_v58 }
 0x148   : > { %1621 = vmatmul.bf16.gmra.mxu1 %v7940_v59 }
 0x149   : > { %v1755_v4 = vpack.c.bf16 %v8110_v2, %v8099_v50  ;;  %1670 = vmatmul.bf16.gmra.mxu2 %v7938_v58 }
 0x14a   : > { %1719 = vmatmul.bf16.gmra.mxu3 %v7940_v59 }
 0x14c   : > { %v1475_v10 = vpop.f32.mrf.mxu2  ;;  %v1379_v16 = vpop.f32.mrf.mxu0 }
 0x14d   : > { %v1476_v13 = vadd.f32 %v1475_v10, %v8053_v12  ;;  %v1524_v58 = vpop.f32.mrf.mxu3  ;;  %v1380_v59 = vadd.f32 %v1379_v16, %v8044_v7  ;;  %v1428_v17 = vpop.f32.mrf.mxu1  ;;  %v6616_v16 = vld [vmem:[%s9859_s6 + $0xd0] sm:$0xff] }
 0x14e   : > { %2194 = vmatpush.bf16.msra.mxu3 %v6616_v16 }
 0x14f   : > { %v8131_v18 = vadd.f32 %v1524_v58, %v1476_v13  ;;  %v8136_v19 = vadd.f32 %v1428_v17, %v1380_v59  ;;  %v6608_v13 = vld [vmem:[%s9859_s6 + $0x90] sm:$0xff] }
 0x150   : > { %v6592_v58 = vld [vmem:[%s9859_s6 + $0x10] sm:$0xff]  ;;  %2145 = vmatpush.bf16.msra.mxu2 %v6608_v13  ;;  %v6599_v13 = vld [vmem:[%s9859_s6 + $0x48] sm:$0xff] }
 0x151   : > { %v1758_v22 = vpack.c.bf16 %v8136_v19, %v8112_v3  ;;  %2047 = vmatpush.bf16.msra.mxu0 %v6592_v58 }
 0x154   : > { %v1477_v57 = vpop.f32.mrf.mxu2  ;;  %v1382_v28 = vpop.f32.mrf.mxu0 }
 0x155   : > { %v1478_v23 = vadd.f32 %v1477_v57, %v8053_v12  ;;  %v1526_v25 = vpop.f32.mrf.mxu3  ;;  %v1383_v29 = vadd.f32 %v1382_v28, %v8044_v7  ;;  %v1431_v32 = vpop.f32.mrf.mxu1  ;;  %2048 = vmatpush.bf16.msra.mxu0 %v6591_v47 }
 0x157   : > { %v8142_v33 = vadd.f32 %v1526_v25, %v1478_v23  ;;  %v8144_v34 = vadd.f32 %v1431_v32, %v1383_v29  ;;  %1577 = vmatmul.bf16.gmra.mxu0 %v7954_v20  ;;  %v6600_v25 = vld [vmem:[%s9859_s6 + $0x50] sm:$0xff] }
 0x158   : > { %1626 = vmatmul.bf16.gmra.mxu1 %v7956_v21 }
 0x159   : > { %v1759_v35 = vpack.c.bf16 %v8142_v33, %v8131_v18  ;;  %1675 = vmatmul.bf16.gmra.mxu2 %v7954_v20  ;;  %2096 = vmatpush.bf16.msra.mxu1 %v6600_v25 }
 0x15a   : > { %1724 = vmatmul.bf16.gmra.mxu3 %v7956_v21 }
 0x15c   : > { %v1480_v42 = vpop.f32.mrf.mxu2  ;;  %v1384_v30 = vpop.f32.mrf.mxu0 }
 0x15d   : > { %v1481_v43 = vadd.f32 %v1480_v42, %v8053_v12  ;;  %v1529_v20 = vpop.f32.mrf.mxu3  ;;  %v1385_v21 = vadd.f32 %v1384_v30, %v8044_v7  ;;  %v1433_v46 = vpop.f32.mrf.mxu1  ;;  %2097 = vmatpush.bf16.msra.mxu1 %v6599_v13 }
 0x15f   : > { %v8163_v31 = vadd.f32 %v1529_v20, %v1481_v43  ;;  %v8168_v51 = vadd.f32 %v1433_v46, %v1385_v21  ;;  %v6607_v46 = vld [vmem:[%s9859_s6 + $0x88] sm:$0xff] }
 0x160   : > { %2146 = vmatpush.bf16.msra.mxu2 %v6607_v46 }
 0x161   : > { %v1762_v55 = vpack.c.bf16 %v8168_v51, %v8144_v34 }
 0x164   : > { %v1482_v56 = vpop.f32.mrf.mxu2  ;;  %v1387_v62 = vpop.f32.mrf.mxu0 }
 0x165   : > { %v1483_v60 = vadd.f32 %v1482_v56, %v8053_v12  ;;  %v1531_v61 = vpop.f32.mrf.mxu3  ;;  %v1388_v63 = vadd.f32 %v1387_v62, %v8044_v7  ;;  %v1436_v6 = vpop.f32.mrf.mxu1  ;;  %v6615_v56 = vld [vmem:[%s9859_s6 + $0xc8] sm:$0xff] }
 0x166   : > { %2195 = vmatpush.bf16.msra.mxu3 %v6615_v56 }
 0x167   : > { %v8174_v8 = vadd.f32 %v1531_v61, %v1483_v60  ;;  %v8176_v9 = vadd.f32 %v1436_v6, %v1388_v63  ;;  %1582 = vmatmul.bf16.gmra.mxu0 %v7970_v48 }
 0x168   : > { %1631 = vmatmul.bf16.gmra.mxu1 %v7972_v49 }
 0x169   : > { %v1763_v10 = vpack.c.bf16 %v8174_v8, %v8163_v31  ;;  %1680 = vmatmul.bf16.gmra.mxu2 %v7970_v48 }
 0x16a   : > { %1729 = vmatmul.bf16.gmra.mxu3 %v7972_v49 }
 0x16c   : > { %v1485_v59 = vpop.f32.mrf.mxu2  ;;  %v1389_v52 = vpop.f32.mrf.mxu0 }
 0x16d   : > { %v1486_v17 = vadd.f32 %v1485_v59, %v8053_v12  ;;  %v1534_v48 = vpop.f32.mrf.mxu3  ;;  %v1390_v49 = vadd.f32 %v1389_v52, %v8044_v7  ;;  %v1438_v57 = vpop.f32.mrf.mxu1 }
 0x16f   : > { %v8195_v23 = vadd.f32 %v1534_v48, %v1486_v17  ;;  %v8200_v28 = vadd.f32 %v1438_v57, %v1390_v49  ;;  %v6590_v49 = vld [vmem:[%s9859_s6] sm:$0xff] }
 0x170   : > { %v6598_v57 = vld [vmem:[%s9859_s6 + $0x40] sm:$0xff]  ;;  %2049 = vmatpush.bf16.msra.mxu0 %v6590_v49 }
 0x171   : > { %v1766_v29 = vpack.c.bf16 %v8200_v28, %v8176_v9  ;;  %2098 = vmatpush.bf16.msra.mxu1 %v6598_v57 }
 0x174   : > { %v1487_v32 = vpop.f32.mrf.mxu2  ;;  %v1392_v41 = vpop.f32.mrf.mxu0  ;;  %2330 = vmatpush.bf16.msrb.mxu0 %v6629_v11 }
 0x175   : > { %v1488_v39 = vadd.f32 %v1487_v32, %v8053_v12  ;;  %v1536_v40 = vpop.f32.mrf.mxu3  ;;  %v1393_v42 = vadd.f32 %v1392_v41, %v8044_v7  ;;  %v1441_v43 = vpop.f32.mrf.mxu1 }
 0x177   : > { %v8206_v20 = vadd.f32 %v1536_v40, %v1488_v39  ;;  %v8208_v30 = vadd.f32 %v1441_v43, %v1393_v42  ;;  %1587 = vmatmul.bf16.gmra.mxu0 %v7986_v14  ;;  %v6606_v42 = vld [vmem:[%s9859_s6 + $0x80] sm:$0xff] }
 0x178   : > { %1636 = vmatmul.bf16.gmra.mxu1 %v7988_v15  ;;  %v6614_v43 = vld [vmem:[%s9859_s6 + $0xc0] sm:$0xff]  ;;  %2147 = vmatpush.bf16.msra.mxu2 %v6606_v42 }
 0x179   : > { %v1767_v21 = vpack.c.bf16 %v8206_v20, %v8195_v23  ;;  %1685 = vmatmul.bf16.gmra.mxu2 %v7986_v14  ;;  %2196 = vmatpush.bf16.msra.mxu3 %v6614_v43 }
 0x17a   : > { %1734 = vmatmul.bf16.gmra.mxu3 %v7988_v15 }
 0x17c   : > { %v1490_v60 = vpop.f32.mrf.mxu2  ;;  %v1394_v62 = vpop.f32.mrf.mxu0 }
 0x17d   : > { %v1491_v61 = vadd.f32 %v1490_v60, %v8053_v12  ;;  %v1539_v14 = vpop.f32.mrf.mxu3  ;;  %v1395_v15 = vadd.f32 %v1394_v62, %v8044_v7  ;;  %v1443_v63 = vpop.f32.mrf.mxu1 }
 0x17f   : > { %v8227_v6 = vadd.f32 %v1539_v14, %v1491_v61  ;;  %v8232_v58 = vadd.f32 %v1443_v63, %v1395_v15 }
 0x181   : > { %v1770_v16 = vpack.c.bf16 %v8232_v58, %v8208_v30 }
 0x184   : > { %v1492_v59 = vpop.f32.mrf.mxu2  ;;  %v1397_v52 = vpop.f32.mrf.mxu0 }
 0x185   : > { %v1493_v17 = vadd.f32 %v1492_v59, %v8053_v12  ;;  %v1541_v48 = vpop.f32.mrf.mxu3  ;;  %v1398_v25 = vadd.f32 %v1397_v52, %v8044_v7  ;;  %v1446_v32 = vpop.f32.mrf.mxu1 }
 0x187   : > { %v8244_v39 = vadd.f32 %v1541_v48, %v1493_v17  ;;  %v8246_v40 = vadd.f32 %v1446_v32, %v1398_v25  ;;  %1592 = vmatmul.bf16.gmra.mxu0 %v8002_v44 }
 0x188   : > { %1641 = vmatmul.bf16.gmra.mxu1 %v8004_v45 }
 0x189   : > { %v1771_v41 = vpack.c.bf16 %v8244_v39, %v8227_v6  ;;  %1690 = vmatmul.bf16.gmra.mxu2 %v8002_v44 }
 0x18a   : > { %1739 = vmatmul.bf16.gmra.mxu3 %v8004_v45 }
 0x18c   : > { %v1495_v46 = vpop.f32.mrf.mxu2  ;;  %v1399_v60 = vpop.f32.mrf.mxu0 }
 0x18d   : > { %v1496_v47 = vadd.f32 %v1495_v46, %v8053_v12  ;;  %v1544_v56 = vpop.f32.mrf.mxu3  ;;  %v1400_v61 = vadd.f32 %v1399_v60, %v8044_v7  ;;  %v1448_v44 = vpop.f32.mrf.mxu1 }
 0x18f   : > { %v8262_v14 = vadd.f32 %v1544_v56, %v1496_v47  ;;  %v8264_v62 = vadd.f32 %v1448_v44, %v1400_v61 }
 0x191   : > { %v1774_v15 = vpack.c.bf16 %v8264_v62, %v8246_v40 }
 0x194   : > { %v1497_v63 = vpop.f32.mrf.mxu2  ;;  %v1402_v59 = vpop.f32.mrf.mxu0 }
 0x195   : > { %v1498_v45 = vadd.f32 %v1497_v63, %v8053_v12  ;;  %v1546_v13 = vpop.f32.mrf.mxu3  ;;  %v1403_v17 = vadd.f32 %v1402_v59, %v8044_v7  ;;  %v1451_v48 = vpop.f32.mrf.mxu1  ;;  %v8292_v59 = vperm.slane %v8038_v5, 2 }
 0x197   : > { %v8270_v52 = vadd.f32 %v1546_v13, %v1498_v45  ;;  %v8272_v49 = vadd.f32 %v1451_v48, %v1403_v17  ;;  %1597 = vmatmul.bf16.gmra.mxu0 %v8018_v0 }
 0x198   : > { %1646 = vmatmul.bf16.gmra.mxu1 %v8020_v1 }
 0x199   : > { %v1775_v57 = vpack.c.bf16 %v8270_v52, %v8262_v14  ;;  %1695 = vmatmul.bf16.gmra.mxu2 %v8018_v0 }
 0x19a   : > { %1744 = vmatmul.bf16.gmra.mxu3 %v8020_v1 }
 0x19c   : > { %v1500_v25 = vpop.f32.mrf.mxu2  ;;  %v1404_v43 = vpop.f32.mrf.mxu0 }
 0x19d   : > { %v1501_v32 = vadd.f32 %v1500_v25, %v8053_v12  ;;  %v1549_v42 = vpop.f32.mrf.mxu3  ;;  %v1405_v46 = vadd.f32 %v1404_v43, %v8044_v7  ;;  %v1453_v47 = vpop.f32.mrf.mxu1  ;;  %v8305_v43 = vperm.slane %v8038_v5, 3 }
 0x19f   : > { %v8282_v56 = vadd.f32 %v1549_v42, %v1501_v32  ;;  %v8284_v60 = vadd.f32 %v1453_v47, %v1405_v46 }
 0x1a1   : > { %v1778_v61 = vpack.c.bf16 %v8284_v60, %v8272_v49 }
 0x1a4   : > { %v1502_v44 = vpop.f32.mrf.mxu2  ;;  %v1563_v1 = vpop.f32.mrf.mxu0 }
 0x1a5   : > { %v1503_v0 = vadd.f32 %v1502_v44, %v8053_v12  ;;  %v1551_v63 = vpop.f32.mrf.mxu3  ;;  %v1612_v45 = vpop.f32.mrf.mxu1  ;;  %v1564_v12 = vadd.f32 %v1563_v1, %v8292_v59 }
 0x1a7   : > { %v8289_v13 = vadd.f32 %v1551_v63, %v1503_v0  ;;  %2050 = vmatmul.bf16.vlgmr.msra.gmra.mxu0 %v1750_v27  ;;  %v1613_v26 = vadd.f32 %v1612_v45, %v1564_v12 }
 0x1a8   : > { %2099 = vmatmul.bf16.vlgmr.msra.gmra.mxu1 %v1751_v38 }
 0x1a9   : > { %v1779_v7 = vpack.c.bf16 %v8289_v13, %v8282_v56 }
 0x1ac   : > { %v1661_v17 = vpop.f32.mrf.mxu2  ;;  %v1565_v25 = vpop.f32.mrf.mxu0 }
 0x1ad   : > { %v1710_v48 = vpop.f32.mrf.mxu3  ;;  %v1566_v32 = vadd.f32 %v1565_v25, %v8292_v59  ;;  %v1614_v42 = vpop.f32.mrf.mxu1  ;;  %v1662_v36 = vadd.f32 %v1661_v17, %v8305_v43 }
 0x1af   : > { %v1615_v27 = vadd.f32 %v1614_v42, %v1566_v32  ;;  %v1711_v63 = vadd.f32 %v1710_v48, %v1662_v36  ;;  %v6628_v48 = vld [vmem:[%s9861_s8 + $0x30] sm:$0xff] }
 0x1b0   : > { %2331 = vmatpush.bf16.msrb.mxu0 %v6628_v48 }
 0x1b1   : > { %v1752_v24 = vpack.c.bf16 %v1615_v27, %v1613_v26 }
 0x1b3   : > { %2148 = vmatmul.bf16.vlgmr.msra.gmra.mxu2 %v1752_v24 }
 0x1b4   : > { %v1663_v38 = vpop.f32.mrf.mxu2  ;;  %v1568_v44 = vpop.f32.mrf.mxu0 }
 0x1b5   : > { %v1664_v46 = vadd.f32 %v1663_v38, %v8305_v43  ;;  %v1712_v47 = vpop.f32.mrf.mxu3  ;;  %v1617_v0 = vpop.f32.mrf.mxu1  ;;  %v1569_v45 = vadd.f32 %v1568_v44, %v8292_v59 }
 0x1b7   : > { %v1713_v5 = vadd.f32 %v1712_v47, %v1664_v46  ;;  %2055 = vmatmul.bf16.gmra.mxu0 %v1754_v54  ;;  %v1618_v37 = vadd.f32 %v1617_v0, %v1569_v45 }
 0x1b8   : > { %2104 = vmatmul.bf16.gmra.mxu1 %v1755_v4 }
 0x1b9   : > { %v1753_v1 = vpack.c.bf16 %v1713_v5, %v1711_v63 }
 0x1bb   : > { %2197 = vmatmul.bf16.vlgmr.msra.gmra.mxu3 %v1753_v1  ;;  %v6627_v1 = vld [vmem:[%s9861_s8 + $0x28] sm:$0xff] }
 0x1bc   : > { %v1666_v12 = vpop.f32.mrf.mxu2  ;;  %v1570_v25 = vpop.f32.mrf.mxu0  ;;  %2332 = vmatpush.bf16.msrb.mxu0 %v6627_v1  ;;  %v6625_v1 = vld [vmem:[%s9861_s8 + $0x18] sm:$0xff] }
 0x1bd   : > { %v1715_v17 = vpop.f32.mrf.mxu3  ;;  %v1571_v32 = vadd.f32 %v1570_v25, %v8292_v59  ;;  %v1619_v42 = vpop.f32.mrf.mxu1  ;;  %v1667_v50 = vadd.f32 %v1666_v12, %v8305_v43 }
 0x1bf   : > { %v1620_v53 = vadd.f32 %v1619_v42, %v1571_v32  ;;  %v1716_v24 = vadd.f32 %v1715_v17, %v1667_v50 }
 0x1c1   : > { %v1756_v54 = vpack.c.bf16 %v1620_v53, %v1618_v37 }
 0x1c3   : > { %2153 = vmatmul.bf16.gmra.mxu2 %v1756_v54 }
 0x1c4   : > { %v1668_v2 = vpop.f32.mrf.mxu2  ;;  %v1573_v26 = vpop.f32.mrf.mxu0 }
 0x1c5   : > { %v1669_v4 = vadd.f32 %v1668_v2, %v8305_v43  ;;  %v1717_v11 = vpop.f32.mrf.mxu3  ;;  %v1622_v27 = vpop.f32.mrf.mxu1  ;;  %v1574_v46 = vadd.f32 %v1573_v26, %v8292_v59 }
 0x1c7   : > { %v1718_v36 = vadd.f32 %v1717_v11, %v1669_v4  ;;  %2060 = vmatmul.bf16.gmra.mxu0 %v1758_v22  ;;  %v1623_v3 = vadd.f32 %v1622_v27, %v1574_v46  ;;  %v6626_v4 = vld [vmem:[%s9861_s8 + $0x20] sm:$0xff] }
 0x1c8   : > { %2109 = vmatmul.bf16.gmra.mxu1 %v1759_v35  ;;  %2333 = vmatpush.bf16.msrb.mxu0 %v6626_v4 }
 0x1c9   : > { %v1757_v38 = vpack.c.bf16 %v1718_v36, %v1716_v24 }
 0x1cb   : > { %2202 = vmatmul.bf16.gmra.mxu3 %v1757_v38 }
 0x1cc   : > { %v1671_v47 = vpop.f32.mrf.mxu2  ;;  %v1575_v0 = vpop.f32.mrf.mxu0  ;;  %2334 = vmatpush.bf16.msrb.mxu0 %v6625_v1 }
 0x1cd   : > { %v1720_v44 = vpop.f32.mrf.mxu3  ;;  %v1576_v63 = vadd.f32 %v1575_v0, %v8292_v59  ;;  %v1624_v5 = vpop.f32.mrf.mxu1  ;;  %v1672_v18 = vadd.f32 %v1671_v47, %v8305_v43 }
 0x1cf   : > { %v1625_v19 = vadd.f32 %v1624_v5, %v1576_v63  ;;  %v1721_v25 = vadd.f32 %v1720_v44, %v1672_v18 }
 0x1d1   : > { %v1760_v22 = vpack.c.bf16 %v1625_v19, %v1623_v3 }
 0x1d3   : > { %2158 = vmatmul.bf16.gmra.mxu2 %v1760_v22 }
 0x1d4   : > { %v1673_v33 = vpop.f32.mrf.mxu2  ;;  %v1578_v12 = vpop.f32.mrf.mxu0 }
 0x1d5   : > { %v1674_v35 = vadd.f32 %v1673_v33, %v8305_v43  ;;  %v1722_v45 = vpop.f32.mrf.mxu3  ;;  %v1627_v17 = vpop.f32.mrf.mxu1  ;;  %v1579_v48 = vadd.f32 %v1578_v12, %v8292_v59 }
 0x1d7   : > { %v1723_v32 = vadd.f32 %v1722_v45, %v1674_v35  ;;  %2065 = vmatmul.bf16.gmra.mxu0 %v1762_v55  ;;  %v1628_v34 = vadd.f32 %v1627_v17, %v1579_v48  ;;  %v6624_v48 = vld [vmem:[%s9861_s8 + $0x10] sm:$0xff] }
 0x1d8   : > { %2114 = vmatmul.bf16.gmra.mxu1 %v1763_v10  ;;  %2335 = vmatpush.bf16.msrb.mxu0 %v6624_v48 }
 0x1d9   : > { %v1761_v42 = vpack.c.bf16 %v1723_v32, %v1721_v25 }
 0x1db   : > { %2207 = vmatmul.bf16.gmra.mxu3 %v1761_v42 }
 0x1dc   : > { %v1676_v37 = vpop.f32.mrf.mxu2  ;;  %v1580_v54 = vpop.f32.mrf.mxu0 }
 0x1dd   : > { %v1725_v53 = vpop.f32.mrf.mxu3  ;;  %v1581_v50 = vadd.f32 %v1580_v54, %v8292_v59  ;;  %v1629_v2 = vpop.f32.mrf.mxu1  ;;  %v1677_v31 = vadd.f32 %v1676_v37, %v8305_v43 }
 0x1df   : > { %v1630_v51 = vadd.f32 %v1629_v2, %v1581_v50  ;;  %v1726_v24 = vadd.f32 %v1725_v53, %v1677_v31 }
 0x1e1   : > { %v1764_v55 = vpack.c.bf16 %v1630_v51, %v1628_v34  ;;  %v6623_v34 = vld [vmem:[%s9861_s8 + $0x8] sm:$0xff] }
 0x1e2   : > { %2336 = vmatpush.bf16.msrb.mxu0 %v6623_v34 }
 0x1e3   : > { %2163 = vmatmul.bf16.gmra.mxu2 %v1764_v55 }
 0x1e4   : > { %v1678_v8 = vpop.f32.mrf.mxu2  ;;  %v1583_v26 = vpop.f32.mrf.mxu0 }
 0x1e5   : > { %v1679_v10 = vadd.f32 %v1678_v8, %v8305_v43  ;;  %v1727_v11 = vpop.f32.mrf.mxu3  ;;  %v1632_v27 = vpop.f32.mrf.mxu1  ;;  %v1584_v46 = vadd.f32 %v1583_v26, %v8292_v59 }
 0x1e7   : > { %v1728_v36 = vadd.f32 %v1727_v11, %v1679_v10  ;;  %2070 = vmatmul.bf16.gmra.mxu0 %v1766_v29  ;;  %v1633_v9 = vadd.f32 %v1632_v27, %v1584_v46  ;;  %v6622_v46 = vld [vmem:[%s9861_s8] sm:$0xff] }
 0x1e8   : > { %2119 = vmatmul.bf16.gmra.mxu1 %v1767_v21  ;;  %2337 = vmatpush.bf16.msrb.mxu0 %v6622_v46 }
 0x1e9   : > { %v1765_v38 = vpack.c.bf16 %v1728_v36, %v1726_v24 }
 0x1eb   : > { %2212 = vmatmul.bf16.gmra.mxu3 %v1765_v38 }
 0x1ec   : > { %v1681_v47 = vpop.f32.mrf.mxu2  ;;  %v1585_v0 = vpop.f32.mrf.mxu0 }
 0x1ed   : > { %v1730_v44 = vpop.f32.mrf.mxu3  ;;  %v1586_v63 = vadd.f32 %v1585_v0, %v8292_v59  ;;  %v1634_v5 = vpop.f32.mrf.mxu1  ;;  %v1682_v23 = vadd.f32 %v1681_v47, %v8305_v43 }
 0x1ef   : > { %v1635_v28 = vadd.f32 %v1634_v5, %v1586_v63  ;;  %v1731_v18 = vadd.f32 %v1730_v44, %v1682_v23 }
 0x1f1   : > { %v1768_v29 = vpack.c.bf16 %v1635_v28, %v1633_v9 }
 0x1f3   : > { %2168 = vmatmul.bf16.gmra.mxu2 %v1768_v29 }
 0x1f4   : > { %v1683_v20 = vpop.f32.mrf.mxu2  ;;  %v1588_v19 = vpop.f32.mrf.mxu0 }
 0x1f5   : > { %v1684_v21 = vadd.f32 %v1683_v20, %v8305_v43  ;;  %v1732_v3 = vpop.f32.mrf.mxu3  ;;  %v1637_v22 = vpop.f32.mrf.mxu1  ;;  %v1589_v45 = vadd.f32 %v1588_v19, %v8292_v59 }
 0x1f7   : > { %v1733_v33 = vadd.f32 %v1732_v3, %v1684_v21  ;;  %2075 = vmatmul.bf16.gmra.mxu0 %v1770_v16  ;;  %v1638_v30 = vadd.f32 %v1637_v22, %v1589_v45 }
 0x1f8   : > { %2124 = vmatmul.bf16.gmra.mxu1 %v1771_v41 }
 0x1f9   : > { %v1769_v35 = vpack.c.bf16 %v1733_v33, %v1731_v18 }
 0x1fb   : > { %2217 = vmatmul.bf16.gmra.mxu3 %v1769_v35  ;;  %v8406_v35 = vld [vmem:[%s9942_s19] ss:$0 sm:$0xff]  ;;  %s9947_s19 = sld [smem:[#allocation35_spill]] }
 0x1fc   : > { %v1686_v12 = vpop.f32.mrf.mxu2  ;;  %v1590_v25 = vpop.f32.mrf.mxu0 }
 0x1fd   : > { %v1735_v17 = vpop.f32.mrf.mxu3  ;;  %v1591_v32 = vadd.f32 %v1590_v25, %v8292_v59  ;;  %v1639_v42 = vpop.f32.mrf.mxu1  ;;  %v1687_v6 = vadd.f32 %v1686_v12, %v8305_v43 }
 0x1ff   : > { %v1640_v58 = vadd.f32 %v1639_v42, %v1591_v32  ;;  %v1736_v50 = vadd.f32 %v1735_v17, %v1687_v6 }
 0x201   : > { %v1772_v16 = vpack.c.bf16 %v1640_v58, %v1638_v30 }
 0x203   : > { %2173 = vmatmul.bf16.gmra.mxu2 %v1772_v16 }
 0x204   : > { %v1688_v39 = vpop.f32.mrf.mxu2  ;;  %v1593_v53 = vpop.f32.mrf.mxu0 }
 0x205   : > { %v1689_v41 = vadd.f32 %v1688_v39, %v8305_v43  ;;  %v1737_v37 = vpop.f32.mrf.mxu3  ;;  %v1642_v54 = vpop.f32.mrf.mxu1  ;;  %v1594_v51 = vadd.f32 %v1593_v53, %v8292_v59 }
 0x207   : > { %v1738_v2 = vadd.f32 %v1737_v37, %v1689_v41  ;;  %2080 = vmatmul.bf16.gmra.mxu0 %v1774_v15  ;;  %v1643_v62 = vadd.f32 %v1642_v54, %v1594_v51 }
 0x208   : > { %2129 = vmatmul.bf16.gmra.mxu1 %v1775_v57 }
 0x209   : > { %v1773_v4 = vpack.c.bf16 %v1738_v2, %v1736_v50 }
 0x20b   : > { %2222 = vmatmul.bf16.gmra.mxu3 %v1773_v4 }
 0x20c   : > { %v1691_v55 = vpop.f32.mrf.mxu2  ;;  %v1595_v8 = vpop.f32.mrf.mxu0 }
 0x20d   : > { %v1740_v31 = vpop.f32.mrf.mxu3  ;;  %v1596_v10 = vadd.f32 %v1595_v8, %v8292_v59  ;;  %v1644_v40 = vpop.f32.mrf.mxu1  ;;  %v1692_v14 = vadd.f32 %v1691_v55, %v8305_v43 }
 0x20f   : > { %v1645_v15 = vadd.f32 %v1644_v40, %v1596_v10  ;;  %v1741_v36 = vadd.f32 %v1740_v31, %v1692_v14 }
 0x211   : > { %v1776_v11 = vpack.c.bf16 %v1645_v15, %v1643_v62 }
 0x213   : > { %2178 = vmatmul.bf16.gmra.mxu2 %v1776_v11 }
 0x214   : > { %v1693_v52 = vpop.f32.mrf.mxu2  ;;  %v1598_v27 = vpop.f32.mrf.mxu0 }
 0x215   : > { %v1694_v57 = vadd.f32 %v1693_v52, %v8305_v43  ;;  %v1742_v26 = vpop.f32.mrf.mxu3  ;;  %v1647_v24 = vpop.f32.mrf.mxu1  ;;  %v1599_v44 = vadd.f32 %v1598_v27, %v8292_v59 }
 0x217   : > { %v1743_v38 = vadd.f32 %v1742_v26, %v1694_v57  ;;  %2085 = vmatmul.bf16.gmra.mxu0 %v1778_v61  ;;  %v1648_v60 = vadd.f32 %v1647_v24, %v1599_v44 }
 0x218   : > { %2134 = vmatmul.bf16.gmra.mxu1 %v1779_v7 }
 0x219   : > { %v1777_v47 = vpack.c.bf16 %v1743_v38, %v1741_v36 }
 0x21b   : > { %2227 = vmatmul.bf16.gmra.mxu3 %v1777_v47 }
 0x21c   : > { %v1696_v0 = vpop.f32.mrf.mxu2  ;;  %v1600_v5 = vpop.f32.mrf.mxu0 }
 0x21d   : > { %v1745_v63 = vpop.f32.mrf.mxu3  ;;  %v1601_v1 = vadd.f32 %v1600_v5, %v8292_v59  ;;  %v1649_v49 = vpop.f32.mrf.mxu1  ;;  %v1697_v28 = vadd.f32 %v1696_v0, %v8305_v43 }
 0x21f   : > { %v1650_v61 = vadd.f32 %v1649_v49, %v1601_v1  ;;  %v1746_v20 = vadd.f32 %v1745_v63, %v1697_v28 }
 0x221   : > { %v1780_v9 = vpack.c.bf16 %v1650_v61, %v1648_v60 }
 0x223   : > { %2183 = vmatmul.bf16.gmra.mxu2 %v1780_v9 }
 0x224   : > { %v1698_v29 = vpop.f32.mrf.mxu2  ;;  %v2051_v13 = vpop.f32.mrf.mxu0 }
 0x225   : > { %v1699_v56 = vadd.f32 %v1698_v29, %v8305_v43  ;;  %v1747_v7 = vpop.f32.mrf.mxu3  ;;  %v2100_v23 = vpop.f32.mrf.mxu1  ;;  %v6631_v43 = vld [vmem:[%s9943_s18 + $0x8] sm:$0xff]  ;;  %v2052_v45 = vadd.f32 %v8406_v35, %v2051_v13 }
 0x226   : > { %2454 = vmatpush.bf16.msrb.mxu1 %v6631_v43 }
 0x227   : > { %v1748_v21 = vadd.f32 %v1747_v7, %v1699_v56  ;;  %v2101_v48 = vadd.f32 %v2100_v23, %v2052_v45 }
 0x229   : > { %v1781_v3 = vpack.c.bf16 %v1748_v21, %v1746_v20 }
 0x22b   : > { %2232 = vmatmul.bf16.gmra.mxu3 %v1781_v3 }
 0x22c   : > { %v2053_v19 = vpop.f32.mrf.mxu0 }
 0x22d   : > { %v2102_v22 = vpop.f32.mrf.mxu1  ;;  %v2054_v32 = vadd.f32 %v8406_v35, %v2053_v19 }
 0x22f   : > { %v2103_v30 = vadd.f32 %v2102_v22, %v2054_v32 }
 0x234   : > { %v2056_v59 = vpop.f32.mrf.mxu0 }
 0x235   : > { %v2105_v18 = vpop.f32.mrf.mxu1  ;;  %v2057_v34 = vadd.f32 %v8406_v35, %v2056_v59 }
 0x236   : > { %v2149_v33 = vpop.f32.mrf.mxu2 }
 0x237   : > { %v2150_v58 = vadd.f32 %v2149_v33, %v2101_v48  ;;  %v2106_v40 = vadd.f32 %v2105_v18, %v2057_v34 }
 0x23c   : > { %v2058_v12 = vpop.f32.mrf.mxu0 }
 0x23d   : > { %v2107_v17 = vpop.f32.mrf.mxu1  ;;  %v2059_v8 = vadd.f32 %v8406_v35, %v2058_v12 }
 0x23e   : > { %v2198_v25 = vpop.f32.mrf.mxu3  ;;  %v2151_v42 = vpop.f32.mrf.mxu2 }
 0x23f   : > { %v2199_v16 = vadd.f32 %v2198_v25, %v2150_v58  ;;  %v2152_v6 = vadd.f32 %v2151_v42, %v2103_v30  ;;  %v2108_v62 = vadd.f32 %v2107_v17, %v2059_v8 }
 0x241   : > { %v2238_v50 = vmax.f32 %v2199_v16, 0.0 }
 0x244   : > { %v2061_v39 = vpop.f32.mrf.mxu0 }
 0x245   : > { %v2110_v41 = vpop.f32.mrf.mxu1  ;;  %v2062_v47 = vadd.f32 %v8406_v35, %v2061_v39 }
 0x246   : > { %v2200_v37 = vpop.f32.mrf.mxu3  ;;  %v2154_v54 = vpop.f32.mrf.mxu2 }
 0x247   : > { %v2201_v53 = vadd.f32 %v2200_v37, %v2152_v6  ;;  %v2155_v15 = vadd.f32 %v2154_v54, %v2106_v40  ;;  %v2111_v1 = vadd.f32 %v2110_v41, %v2062_v47  ;;  %v6630_v6 = vld [vmem:[%s9943_s18] sm:$0xff] }
 0x248   : > { %2455 = vmatpush.bf16.msrb.mxu1 %v6630_v6 }
 0x249   : > { %v2239_v2 = vmax.f32 %v2201_v53, 0.0 }
 0x24b   : > { %v2254_v4 = vpack.c.bf16 %v2239_v2, %v2238_v50 }
 0x24c   : > { %v2063_v51 = vpop.f32.mrf.mxu0 }
 0x24d   : > { %2338 = vmatmul.bf16.vlgmr.msrb.gmra.mxu0 %v2254_v4  ;;  %v2112_v55 = vpop.f32.mrf.mxu1  ;;  %v2064_v63 = vadd.f32 %v8406_v35, %v2063_v51 }
 0x24e   : > { %v2203_v31 = vpop.f32.mrf.mxu3  ;;  %v2156_v10 = vpop.f32.mrf.mxu2 }
 0x24f   : > { %v2204_v11 = vadd.f32 %v2203_v31, %v2155_v15  ;;  %v2157_v14 = vadd.f32 %v2156_v10, %v2108_v62  ;;  %v2113_v60 = vadd.f32 %v2112_v55, %v2064_v63 }
 0x251   : > { %v2240_v36 = vmax.f32 %v2204_v11, 0.0 }
 0x254   : > { %v2066_v52 = vpop.f32.mrf.mxu0 }
 0x255   : > { %v2115_v24 = vpop.f32.mrf.mxu1  ;;  %v2067_v19 = vadd.f32 %v8406_v35, %v2066_v52 }
 0x256   : > { %v2205_v57 = vpop.f32.mrf.mxu3  ;;  %v2159_v27 = vpop.f32.mrf.mxu2 }
 0x257   : > { %v2206_v26 = vadd.f32 %v2205_v57, %v2157_v14  ;;  %v2160_v61 = vadd.f32 %v2159_v27, %v2111_v1  ;;  %v2116_v43 = vadd.f32 %v2115_v24, %v2067_v19 }
 0x259   : > { %v2241_v38 = vmax.f32 %v2206_v26, 0.0 }
 0x25b   : > { %v2255_v46 = vpack.c.bf16 %v2241_v38, %v2240_v36 }
 0x25c   : > { %v2068_v44 = vpop.f32.mrf.mxu0 }
 0x25d   : > { %2343 = vmatmul.bf16.gmra.mxu0 %v2255_v46  ;;  %v2117_v49 = vpop.f32.mrf.mxu1  ;;  %v2069_v59 = vadd.f32 %v8406_v35, %v2068_v44 }
 0x25e   : > { %v2208_v0 = vpop.f32.mrf.mxu3  ;;  %v2161_v5 = vpop.f32.mrf.mxu2 }
 0x25f   : > { %v2209_v9 = vadd.f32 %v2208_v0, %v2160_v61  ;;  %v2162_v28 = vadd.f32 %v2161_v5, %v2113_v60  ;;  %v2118_v45 = vadd.f32 %v2117_v49, %v2069_v59 }
 0x261   : > { %v2242_v23 = vmax.f32 %v2209_v9, 0.0 }
 0x264   : > { %v2071_v29 = vpop.f32.mrf.mxu0 }
 0x265   : > { %v2120_v3 = vpop.f32.mrf.mxu1  ;;  %v2072_v37 = vadd.f32 %v8406_v35, %v2071_v29 }
 0x266   : > { %v2210_v56 = vpop.f32.mrf.mxu3  ;;  %v2164_v7 = vpop.f32.mrf.mxu2 }
 0x267   : > { %v2211_v13 = vadd.f32 %v2210_v56, %v2162_v28  ;;  %v2165_v12 = vadd.f32 %v2164_v7, %v2116_v43  ;;  %v2121_v4 = vadd.f32 %v2120_v3, %v2072_v37 }
 0x269   : > { %v2243_v20 = vmax.f32 %v2211_v13, 0.0 }
 0x26b   : > { %v2256_v21 = vpack.c.bf16 %v2243_v20, %v2242_v23 }
 0x26c   : > { %v2073_v33 = vpop.f32.mrf.mxu0 }
 0x26d   : > { %2348 = vmatmul.bf16.gmra.mxu0 %v2256_v21  ;;  %v2122_v32 = vpop.f32.mrf.mxu1  ;;  %v2074_v54 = vadd.f32 %v8406_v35, %v2073_v33 }
 0x26e   : > { %v2213_v22 = vpop.f32.mrf.mxu3  ;;  %v2166_v18 = vpop.f32.mrf.mxu2 }
 0x26f   : > { %v2214_v17 = vadd.f32 %v2213_v22, %v2165_v12  ;;  %v2167_v25 = vadd.f32 %v2166_v18, %v2118_v45  ;;  %v2123_v34 = vadd.f32 %v2122_v32, %v2074_v54 }
 0x271   : > { %v2244_v58 = vmax.f32 %v2214_v17, 0.0 }
 0x274   : > { %v2076_v39 = vpop.f32.mrf.mxu0 }
 0x275   : > { %v2125_v2 = vpop.f32.mrf.mxu1  ;;  %v2077_v57 = vadd.f32 %v8406_v35, %v2076_v39 }
 0x276   : > { %v2215_v42 = vpop.f32.mrf.mxu3  ;;  %v2169_v30 = vpop.f32.mrf.mxu2 }
 0x277   : > { %v2216_v48 = vadd.f32 %v2215_v42, %v2167_v25  ;;  %v2170_v51 = vadd.f32 %v2169_v30, %v2121_v4  ;;  %v2126_v38 = vadd.f32 %v2125_v2, %v2077_v57 }
 0x279   : > { %v2245_v16 = vmax.f32 %v2216_v48, 0.0 }
 0x27b   : > { %v2257_v41 = vpack.c.bf16 %v2245_v16, %v2244_v58 }
 0x27c   : > { %v2078_v55 = vpop.f32.mrf.mxu0 }
 0x27d   : > { %2353 = vmatmul.bf16.gmra.mxu0 %v2257_v41  ;;  %v2127_v14 = vpop.f32.mrf.mxu1  ;;  %v2079_v24 = vadd.f32 %v8406_v35, %v2078_v55  ;;  %v6828_v55 = vld [vmem:[%s9944_s14] ss:$0 sm:$0xff]  ;;  %s8627_s14 = scalar_lea.vmem %s9949_s27, %s5667_s9  ;;  %s9950_s9 = sld [smem:[#allocation36_spill]] }
 0x27e   : > { %v2218_v53 = vpop.f32.mrf.mxu3  ;;  %v2171_v50 = vpop.f32.mrf.mxu2  ;;  %s5450_s27 = scalar_lea.hbm %s9954_s0, %s6732_s22 }
 0x27f   : > { %v2219_v31 = vadd.f32 %v2218_v53, %v2170_v51  ;;  %v2172_v8 = vadd.f32 %v2171_v50, %v2123_v34  ;;  %v2128_v46 = vadd.f32 %v2127_v14, %v2079_v24  ;;  %s5453_s28 = sshll.u32 %s5450_s27, 4  ;;  %s5454_s28 = int_to_ptr.hbm [resolvable:$true] %s5453_s28 }
 0x280   : > { %s7506_s7 = sshra.s32 %s5454_s28, 4  ;;  %s7507_s7 = int_to_ptr.hbm [resolvable:$true] %s7506_s7 }
 0x281   : > { %v2246_v15 = vmax.f32 %v2219_v31, 0.0  ;;  %s7508_s3 = scalar_lea.hbm %s7507_s7, 256  ;;  %p7513_p2 = scmp.lt.s32.totalorder %s7507_s7, %s9954_s0 }
 0x282   : > { %p7509_p5 = scmp.ne.s32.totalorder %s7507_s7, %s7508_s3  ;;  %p7514_p10 = scmp.lt.s32.totalorder %s7512_s2, %s7508_s3 }
 0x284   : > { %v2081_v26 = vpop.f32.mrf.mxu0  ;;  %p7510_p1 = pnand %p7509_p5, %p7768_p7  ;;  %p7515_p13 = por %p7514_p10, %p7513_p2 }
 0x285   : > { %v2130_v44 = vpop.f32.mrf.mxu1  ;;  %v2082_v29 = vadd.f32 %v8406_v35, %v2081_v26 }
 0x286   : > { %v2220_v10 = vpop.f32.mrf.mxu3  ;;  %v2174_v62 = vpop.f32.mrf.mxu2  ;;  %p7511_p11 = pneg %p7510_p1 }
 0x287   : > { %v2221_v40 = vadd.f32 %v2220_v10, %v2172_v8  ;;  %v2175_v47 = vadd.f32 %v2174_v62, %v2126_v38  ;;  %v2131_v20 = vadd.f32 %v2130_v44, %v2082_v29 }
 0x288   : > { %p7516_p0 = pnand %p7515_p13, %p7511_p11 }
 0x289   : > { %v2247_v11 = vmax.f32 %v2221_v40, 0.0 }
 0x28b   : > { %v2258_v52 = vpack.c.bf16 %v2247_v11, %v2246_v15 }
 0x28c   : > { %v2083_v60 = vpop.f32.mrf.mxu0 }
 0x28d   : > { %2358 = vmatmul.bf16.gmra.mxu0 %v2258_v52  ;;  %v2132_v56 = vpop.f32.mrf.mxu1  ;;  %v2084_v7 = vadd.f32 %v8406_v35, %v2083_v60 }
 0x28e   : > { %v2223_v27 = vpop.f32.mrf.mxu3  ;;  %v2176_v36 = vpop.f32.mrf.mxu2 }
 0x28f   : > { %v2224_v0 = vadd.f32 %v2223_v27, %v2175_v47  ;;  %v2177_v63 = vadd.f32 %v2176_v36, %v2128_v46  ;;  %v2133_v3 = vadd.f32 %v2132_v56, %v2084_v7 }
 0x291   : > { %v2248_v61 = vmax.f32 %v2224_v0, 0.0 }
 0x294   : > { %v2086_v21 = vpop.f32.mrf.mxu0 }
 0x295   : > { %v2135_v43 = vpop.f32.mrf.mxu1  ;;  %v2087_v42 = vadd.f32 %v8406_v35, %v2086_v21 }
 0x296   : > { %v2225_v5 = vpop.f32.mrf.mxu3  ;;  %v2179_v49 = vpop.f32.mrf.mxu2 }
 0x297   : > { %v2226_v1 = vadd.f32 %v2225_v5, %v2177_v63  ;;  %v2180_v19 = vadd.f32 %v2179_v49, %v2131_v20  ;;  %v2136_v58 = vadd.f32 %v2135_v43, %v2087_v42 }
 0x299   : > { %v2249_v9 = vmax.f32 %v2226_v1, 0.0 }
 0x29b   : > { %v2259_v28 = vpack.c.bf16 %v2249_v9, %v2248_v61 }
 0x29c   : > { %v2088_v32 = vpop.f32.mrf.mxu0 }
 0x29d   : > { %2363 = vmatmul.bf16.gmra.mxu0 %v2259_v28  ;;  %v2089_v30 = vadd.f32 %v8406_v35, %v2088_v32  ;;  %v2137_v16 = vpop.f32.mrf.mxu1 }
 0x29e   : > { %v2228_v13 = vpop.f32.mrf.mxu3  ;;  %v2181_v23 = vpop.f32.mrf.mxu2 }
 0x29f   : > { %v2229_v22 = vadd.f32 %v2228_v13, %v2180_v19  ;;  %v2182_v59 = vadd.f32 %v2181_v23, %v2133_v3  ;;  %v2138_v39 = vadd.f32 %v2137_v16, %v2089_v30 }
 0x2a1   : > { %v2250_v12 = vmax.f32 %v2229_v22, 0.0 }
 0x2a6   : > { %v2230_v18 = vpop.f32.mrf.mxu3  ;;  %v2184_v45 = vpop.f32.mrf.mxu2 }
 0x2a7   : > { %v2231_v33 = vadd.f32 %v2230_v18, %v2182_v59  ;;  %v2185_v41 = vadd.f32 %v2184_v45, %v2136_v58 }
 0x2a9   : > { %v2251_v17 = vmax.f32 %v2231_v33, 0.0 }
 0x2ab   : > { %v2260_v25 = vpack.c.bf16 %v2251_v17, %v2250_v12 }
 0x2ad   : > { %2368 = vmatmul.bf16.gmra.mxu0 %v2260_v25 }
 0x2ae   : > { %v2233_v48 = vpop.f32.mrf.mxu3  ;;  %v2186_v6 = vpop.f32.mrf.mxu2 }
 0x2af   : > { %v2234_v37 = vadd.f32 %v2233_v48, %v2185_v41  ;;  %v2187_v53 = vadd.f32 %v2186_v6, %v2138_v39 }
 0x2b1   : > { %v2252_v2 = vmax.f32 %v2234_v37, 0.0  ;;  %v8444_v37 = vld [vmem:[%s9945_s11] ss:$0 sm:$0xff]  ;;  %s5433_s11 = scalar_lea.sflag [#allocation4], %s7866_s17 }
 0x2b6   : > { %v2235_v54 = vpop.f32.mrf.mxu3 }
 0x2b7   : > { %v2236_v50 = vadd.f32 %v2235_v54, %v2187_v53 }
 0x2b9   : > { %v2253_v4 = vmax.f32 %v2236_v50, 0.0 }
 0x2bb   : > { %v2261_v34 = vpack.c.bf16 %v2253_v4, %v2252_v2 }
 0x2bd   : > { %2373 = vmatmul.bf16.gmra.mxu0 %v2261_v34 }
 0x2ca   : > { %v2339_v51 = vpop.f32.mrf.mxu0 }
 0x2cb   : > { %v2340_v31 = vadd.f32 %v6828_v55, %v2339_v51 }
 0x2cd   : > { %v2379_v10 = vmax.f32 %v2340_v31, 0.0 }
 0x2d2   : > { %v2341_v35 = vpop.f32.mrf.mxu0 }
 0x2d3   : > { %v2342_v8 = vadd.f32 %v6828_v55, %v2341_v35 }
 0x2d5   : > { %v2380_v40 = vmax.f32 %v2342_v8, 0.0 }
 0x2d7   : > { %v2395_v62 = vpack.c.bf16 %v2380_v40, %v2379_v10 }
 0x2d9   : > { %6094 = vmatmul.msk.bf16.vlgmr.msrb.gmra.mxu1 %vm2423_vm0, %v2395_v62 }
 0x2da   : > { %v2344_v15 = vpop.f32.mrf.mxu0 }
 0x2db   : > { %v2345_v11 = vadd.f32 %v6828_v55, %v2344_v15 }
 0x2dd   : > { %v2381_v57 = vmax.f32 %v2345_v11, 0.0 }
 0x2e2   : > { %v2346_v14 = vpop.f32.mrf.mxu0 }
 0x2e3   : > { %v2347_v52 = vadd.f32 %v6828_v55, %v2346_v14 }
 0x2e5   : > { %v2382_v26 = vmax.f32 %v2347_v52, 0.0 }
 0x2e7   : > { %v2396_v27 = vpack.c.bf16 %v2382_v26, %v2381_v57 }
 0x2e9   : > { %6095 = vmatmul.msk.bf16.gmra.mxu1 %vm2423_vm0, %v2396_v27 }
 0x2ea   : > { %v2349_v24 = vpop.f32.mrf.mxu0 }
 0x2eb   : > { %v2350_v36 = vadd.f32 %v6828_v55, %v2349_v24 }
 0x2ed   : > { %v2383_v47 = vmax.f32 %v2350_v36, 0.0 }
 0x2f2   : > { %v2351_v38 = vpop.f32.mrf.mxu0 }
 0x2f3   : > { %v2352_v46 = vadd.f32 %v6828_v55, %v2351_v38 }
 0x2f5   : > { %v2384_v44 = vmax.f32 %v2352_v46, 0.0 }
 0x2f7   : > { %v2397_v0 = vpack.c.bf16 %v2384_v44, %v2383_v47 }
 0x2f9   : > { %6096 = vmatmul.msk.bf16.gmra.mxu1 %vm2423_vm0, %v2397_v0 }
 0x2fa   : > { %v2354_v63 = vpop.f32.mrf.mxu0 }
 0x2fb   : > { %v2355_v5 = vadd.f32 %v6828_v55, %v2354_v63 }
 0x2fd   : > { %v2385_v60 = vmax.f32 %v2355_v5, 0.0 }
 0x302   : > { %v2356_v1 = vpop.f32.mrf.mxu0 }
 0x303   : > { %v2357_v49 = vadd.f32 %v6828_v55, %v2356_v1 }
 0x305   : > { %v2386_v61 = vmax.f32 %v2357_v49, 0.0 }
 0x307   : > { %v2398_v9 = vpack.c.bf16 %v2386_v61, %v2385_v60 }
 0x309   : > { %6097 = vmatmul.msk.bf16.gmra.mxu1 %vm2423_vm0, %v2398_v9 }
 0x30a   : > { %v2359_v28 = vpop.f32.mrf.mxu0 }
 0x30b   : > { %v2360_v29 = vadd.f32 %v6828_v55, %v2359_v28 }
 0x30d   : > { %v2387_v7 = vmax.f32 %v2360_v29, 0.0 }
 0x312   : > { %v2361_v56 = vpop.f32.mrf.mxu0 }
 0x313   : > { %v2362_v13 = vadd.f32 %v6828_v55, %v2361_v56 }
 0x315   : > { %v2388_v23 = vmax.f32 %v2362_v13, 0.0 }
 0x317   : > { %v2399_v20 = vpack.c.bf16 %v2388_v23, %v2387_v7 }
 0x319   : > { %6098 = vmatmul.msk.bf16.gmra.mxu1 %vm2423_vm0, %v2399_v20 }
 0x31a   : > { %v2364_v21 = vpop.f32.mrf.mxu0 }
 0x31b   : > { %v2365_v3 = vadd.f32 %v6828_v55, %v2364_v21 }
 0x31d   : > { %v2389_v59 = vmax.f32 %v2365_v3, 0.0 }
 0x322   : > { %v2366_v19 = vpop.f32.mrf.mxu0 }
 0x323   : > { %v2367_v22 = vadd.f32 %v6828_v55, %v2366_v19 }
 0x325   : > { %v2390_v18 = vmax.f32 %v2367_v22, 0.0 }
 0x327   : > { %v2400_v33 = vpack.c.bf16 %v2390_v18, %v2389_v59 }
 0x329   : > { %6099 = vmatmul.msk.bf16.gmra.mxu1 %vm2423_vm0, %v2400_v33 }
 0x32a   : > { %v2369_v43 = vpop.f32.mrf.mxu0 }
 0x32b   : > { %v2370_v45 = vadd.f32 %v6828_v55, %v2369_v43 }
 0x32d   : > { %v2391_v25 = vmax.f32 %v2370_v45, 0.0 }
 0x332   : > { %v2371_v12 = vpop.f32.mrf.mxu0 }
 0x333   : > { %v2372_v17 = vadd.f32 %v6828_v55, %v2371_v12 }
 0x335   : > { %v2392_v32 = vmax.f32 %v2372_v17, 0.0 }
 0x337   : > { %v2401_v42 = vpack.c.bf16 %v2392_v32, %v2391_v25 }
 0x339   : > { %6100 = vmatmul.msk.bf16.gmra.mxu1 %vm2423_vm0, %v2401_v42 }
 0x33a   : > { %v2374_v48 = vpop.f32.mrf.mxu0 }
 0x33b   : > { %v2375_v30 = vadd.f32 %v6828_v55, %v2374_v48 }
 0x33d   : > { %v2393_v6 = vmax.f32 %v2375_v30, 0.0 }
 0x342   : > { %v2376_v58 = vpop.f32.mrf.mxu0 }
 0x343   : > { %v2377_v16 = vadd.f32 %v6828_v55, %v2376_v58 }
 0x345   : > { %v2394_v39 = vmax.f32 %v2377_v16, 0.0 }
 0x347   : > { %v2402_v41 = vpack.c.bf16 %v2394_v39, %v2393_v6 }
 0x349   : > { %6101 = vmatmul.msk.bf16.gmra.mxu1 %vm2423_vm0, %v2402_v41 }
 0x356   : > { %v2457_v53 = vpop.f32.mrf.mxu1 }
 0x357   : > { %v8447_v54 = vadd.f32 %v8444_v37, %v2457_v53 }
 0x359   : > { %v2513_v50 = vand.u32 2147483647, %v8447_v54  ;;  %v2497_v63 = vmax.f32 %v8447_v54, 0.0 }
 0x35b   : > { %v2529_v2 = vsub.f32 0.0, %v2513_v50 }
 0x35d   : > { %v2545_v4 = vmul.f32 1.442695, %v2529_v2 }
 0x35e   : > { %v2459_v34 = vpop.f32.mrf.mxu1 }
 0x35f   : > { %6832 = vpow2.f32 %v2545_v4  ;;  %v8451_v51 = vadd.f32 %v8444_v37, %v2459_v34 }
 0x361   : > { %v2514_v55 = vand.u32 2147483647, %v8451_v51  ;;  %v2498_v18 = vmax.f32 %v8451_v51, 0.0 }
 0x363   : > { %v2530_v31 = vsub.f32 0.0, %v2514_v55  ;;  %v6632_v55 = vld [vmem:[%s9947_s19] sm:$0xff] }
 0x364   : > { %2949 = vmatpush.bf16.msrb.mxu2 %v6632_v55 }
 0x365   : > { %v6833_v35 = vpop.eup %6832  ;;  %v2547_v8 = vmul.f32 1.442695, %v2530_v31 }
 0x366   : > { %v2577_v10 = vadd.f32 1.0, %v6833_v35  ;;  %v2462_v40 = vpop.f32.mrf.mxu1  ;;  %v2580_v62 = vmul.f32 -0.5, %v6833_v35  ;;  %v2583_v57 = vand.u32 2147483647, %v6833_v35 }
 0x367   : > { %6834 = vpow2.f32 %v2547_v8  ;;  %v8456_v15 = vadd.f32 %v8444_v37, %v2462_v40 }
 0x368   : > { %6836 = vlog2.f32 %v2577_v10  ;;  %v2581_v14 = vadd.f32 1.0, %v2580_v62  ;;  %vm2584_vm1 = vcmp.lt.f32.partialorder %v2583_v57, 0.0004427343 }
 0x369   : > { %v2515_v11 = vand.u32 2147483647, %v8456_v15  ;;  %v2499_v4 = vmax.f32 %v8456_v15, 0.0 }
 0x36a   : > { %v2582_v44 = vmul.f32 %v6833_v35, %v2581_v14 }
 0x36b   : > { %v2531_v52 = vsub.f32 0.0, %v2515_v11 }
 0x36d   : > { %v6835_v26 = vpop.eup %6834  ;;  %v2549_v27 = vmul.f32 1.442695, %v2531_v52 }
 0x36e   : > { %v6837_v24 = vpop.eup %6836  ;;  %v2586_v36 = vadd.f32 1.0, %v6835_v26  ;;  %v2589_v38 = vmul.f32 -0.5, %v6835_v26  ;;  %v2464_v46 = vpop.f32.mrf.mxu1  ;;  %v2592_v28 = vand.u32 2147483647, %v6835_v26 }
 0x36f   : > { %v2579_v47 = vmul.f32 0.6931472, %v6837_v24  ;;  %6838 = vpow2.f32 %v2549_v27  ;;  %v8463_v0 = vadd.f32 %v8444_v37, %v2464_v46 }
 0x370   : > { %6840 = vlog2.f32 %v2586_v36  ;;  %v2590_v60 = vadd.f32 1.0, %v2589_v38  ;;  %vm2593_vm3 = vcmp.lt.f32.partialorder %v2592_v28, 0.0004427343 }
 0x371   : > { %v2585_v5 = vsel %vm2584_vm1, %v2582_v44, %v2579_v47  ;;  %v2516_v1 = vand.u32 2147483647, %v8463_v0 }
 0x372   : > { %v2721_v49 = vadd.f32 %v2585_v5, %v2497_v63  ;;  %v2591_v23 = vmul.f32 %v6835_v26, %v2590_v60  ;;  %v2500_v5 = vmax.f32 %v8463_v0, 0.0 }
 0x373   : > { %v2532_v61 = vsub.f32 0.0, %v2516_v1 }
 0x374   : > { %v5400_v9 = vsel %vm2917_vm2, %v8447_v54, %v2721_v49  ;;  %v2753_v29 = vmul.f32 0.5, %v2721_v49 }
 0x375   : > { %v6839_v56 = vpop.eup %6838  ;;  %5416 = vst.msk [vmem:[%s8472_s12] sm:$0xff] %vm2423_vm0, %v5400_v9  ;;  %v2551_v13 = vmul.f32 1.442695, %v2532_v61 }
 0x376   : > { %v6841_v7 = vpop.eup %6840  ;;  %v2595_v20 = vadd.f32 1.0, %v6839_v56  ;;  %v2467_v21 = vpop.f32.mrf.mxu1  ;;  %v2769_v3 = vmul.f32 1.442695, %v2753_v29  ;;  %v2598_v22 = vmul.f32 -0.5, %v6839_v56  ;;  %v2601_v42 = vand.u32 2147483647, %v6839_v56 }
 0x377   : > { %v2588_v19 = vmul.f32 0.6931472, %v6841_v7  ;;  %6842 = vpow2.f32 %v2551_v13  ;;  %v8479_v59 = vadd.f32 %v8444_v37, %v2467_v21 }
 0x378   : > { %6844 = vlog2.f32 %v2595_v20  ;;  %v2599_v12 = vadd.f32 1.0, %v2598_v22  ;;  %vm2602_vm4 = vcmp.lt.f32.partialorder %v2601_v42, 0.0004427343 }
 0x379   : > { %v2594_v33 = vsel %vm2593_vm3, %v2591_v23, %v2588_v19  ;;  %v2517_v43 = vand.u32 2147483647, %v8479_v59  ;;  %6846 = vpow2.f32 %v2769_v3 }
 0x37a   : > { %v2722_v45 = vadd.f32 %v2594_v33, %v2498_v18  ;;  %v2600_v50 = vmul.f32 %v6839_v56, %v2599_v12 }
 0x37b   : > { %v2533_v17 = vsub.f32 0.0, %v2517_v43 }
 0x37c   : > { %v2754_v25 = vmul.f32 0.5, %v2722_v45  ;;  %v5401_v32 = vsel %vm2917_vm2, %v8451_v51, %v2722_v45  ;;  %v2501_v45 = vmax.f32 %v8479_v59, 0.0 }
 0x37d   : > { %v6843_v48 = vpop.eup %6842  ;;  %5417 = vst.msk [vmem:[%s8472_s12 + $0x8] sm:$0xff] %vm2423_vm0, %v5401_v32  ;;  %v2553_v30 = vmul.f32 1.442695, %v2533_v17 }
 0x37e   : > { %v6845_v58 = vpop.eup %6844  ;;  %v2771_v16 = vmul.f32 1.442695, %v2754_v25  ;;  %v2604_v6 = vadd.f32 1.0, %v6843_v48  ;;  %v2469_v39 = vpop.f32.mrf.mxu1  ;;  %v2607_v34 = vmul.f32 -0.5, %v6843_v48  ;;  %v2610_v52 = vand.u32 2147483647, %v6843_v48 }
 0x37f   : > { %v6847_v41 = vpop.eup %6846  ;;  %v2597_v53 = vmul.f32 0.6931472, %v6845_v58  ;;  %6848 = vpow2.f32 %v2553_v30  ;;  %v8488_v2 = vadd.f32 %v8444_v37, %v2469_v39 }
 0x380   : > { %6850 = vpow2.f32 %v2771_v16  ;;  %2817 = vrot.lane.b32.xlu0 %v6847_v41, %s7579_s23  ;;  %v2608_v62 = vadd.f32 1.0, %v2607_v34  ;;  %vm2611_vm5 = vcmp.lt.f32.partialorder %v2610_v52, 0.0004427343 }
 0x381   : > { %v2603_v31 = vsel %vm2602_vm4, %v2600_v50, %v2597_v53  ;;  %6852 = vlog2.f32 %v2604_v6  ;;  %v2518_v35 = vand.u32 2147483647, %v8488_v2 }
 0x382   : > { %v2723_v8 = vadd.f32 %v2603_v31, %v2499_v4  ;;  %v2609_v63 = vmul.f32 %v6843_v48, %v2608_v62 }
 0x383   : > { %v2534_v10 = vsub.f32 0.0, %v2518_v35 }
 0x384   : > { %v5402_v40 = vsel %vm2917_vm2, %v8456_v15, %v2723_v8  ;;  %v2755_v11 = vmul.f32 0.5, %v2723_v8  ;;  %v2502_v8 = vmax.f32 %v8488_v2, 0.0 }
 0x385   : > { %v6849_v14 = vpop.eup %6848  ;;  %5418 = vst.msk [vmem:[%s8472_s12 + $0x10] sm:$0xff] %vm2423_vm0, %v5402_v40  ;;  %v2555_v57 = vmul.f32 1.442695, %v2534_v10 }
 0x386   : > { %v6851_v26 = vpop.eup %6850  ;;  %v2613_v27 = vadd.f32 1.0, %v6849_v14  ;;  %v2616_v24 = vmul.f32 -0.5, %v6849_v14  ;;  %v2472_v36 = vpop.f32.mrf.mxu1  ;;  %v2773_v38 = vmul.f32 1.442695, %v2755_v11  ;;  %v2619_v28 = vand.u32 2147483647, %v6849_v14 }
 0x387   : > { %v6853_v46 = vpop.eup %6852  ;;  %6854 = vpow2.f32 %v2555_v57  ;;  %v8501_v47 = vadd.f32 %v8444_v37, %v2472_v36 }
 0x388   : > { %v2606_v44 = vmul.f32 0.6931472, %v6853_v46  ;;  %6856 = vlog2.f32 %v2613_v27  ;;  %2819 = vrot.lane.b32.xlu0 %v6851_v26, %s7579_s23  ;;  %v2617_v60 = vadd.f32 1.0, %v2616_v24  ;;  %vm2620_vm6 = vcmp.lt.f32.partialorder %v2619_v28, 0.0004427343 }
 0x389   : > { %v2519_v1 = vand.u32 2147483647, %v8501_v47  ;;  %6858 = vpow2.f32 %v2773_v38 }
 0x38a   : > { %v2612_v49 = vsel %vm2611_vm5, %v2609_v63, %v2606_v44  ;;  %v2618_v20 = vmul.f32 %v6849_v14, %v2617_v60  ;;  %v2503_v60 = vmax.f32 %v8501_v47, 0.0 }
 0x38b   : > { %v2724_v61 = vadd.f32 %v2612_v49, %v2500_v5  ;;  %v2535_v9 = vsub.f32 0.0, %v2519_v1 }
 0x38d   : > { %v6855_v29 = vpop.eup %6854  ;;  %v2756_v56 = vmul.f32 0.5, %v2724_v61  ;;  %v5403_v13 = vsel %vm2917_vm2, %v8463_v0, %v2724_v61  ;;  %v2557_v7 = vmul.f32 1.442695, %v2535_v9 }
 0x38e   : > { %v6857_v23 = vpop.eup %6856  ;;  %5419 = vst.msk [vmem:[%s8472_s12 + $0x18] sm:$0xff] %vm2423_vm0, %v5403_v13  ;;  %v2622_v21 = vadd.f32 1.0, %v6855_v29  ;;  %v2625_v3 = vmul.f32 -0.5, %v6855_v29  ;;  %v2474_v19 = vpop.f32.mrf.mxu1  ;;  %v2628_v30 = vand.u32 2147483647, %v6855_v29 }
 0x38f   : > { %v6859_v22 = vpop.eup %6858  ;;  %v2775_v18 = vmul.f32 1.442695, %v2756_v56  ;;  %v2615_v33 = vmul.f32 0.6931472, %v6857_v23  ;;  %6860 = vpow2.f32 %v2557_v7  ;;  %v8511_v43 = vadd.f32 %v8444_v37, %v2474_v19 }
 0x390   : > { %6862 = vlog2.f32 %v2622_v21  ;;  %2821 = vrot.lane.b32.xlu1 %v6859_v22, %s7579_s23  ;;  %v2626_v32 = vadd.f32 1.0, %v2625_v3  ;;  %vm2629_vm7 = vcmp.lt.f32.partialorder %v2628_v30, 0.0004427343 }
 0x391   : > { %6864 = vpow2.f32 %v2775_v18  ;;  %v2621_v12 = vsel %vm2620_vm6, %v2618_v20, %v2615_v33  ;;  %v2520_v17 = vand.u32 2147483647, %v8511_v43 }
 0x392   : > { %v2725_v25 = vadd.f32 %v2621_v12, %v2501_v45  ;;  %v2627_v41 = vmul.f32 %v6855_v29, %v2626_v32 }
 0x393   : > { %v2536_v42 = vsub.f32 0.0, %v2520_v17 }
 0x394   : > { %v5404_v48 = vsel %vm2917_vm2, %v8479_v59, %v2725_v25  ;;  %v2757_v58 = vmul.f32 0.5, %v2725_v25 }
 0x395   : > { %v6861_v16 = vpop.eup %6860  ;;  %5420 = vst.msk [vmem:[%s8472_s12 + $0x20] sm:$0xff] %vm2423_vm0, %v5404_v48  ;;  %v2559_v6 = vmul.f32 1.442695, %v2536_v42  ;;  %v2504_v42 = vmax.f32 %v8511_v43, 0.0 }
 0x396   : > { %v6863_v39 = vpop.eup %6862  ;;  %v2631_v53 = vadd.f32 1.0, %v6861_v16  ;;  %v2477_v50 = vpop.f32.mrf.mxu1  ;;  %v2777_v4 = vmul.f32 1.442695, %v2757_v58  ;;  %v2634_v31 = vmul.f32 -0.5, %v6861_v16  ;;  %v2637_v26 = vand.u32 2147483647, %v6861_v16 }
 0x397   : > { %v6865_v34 = vpop.eup %6864  ;;  %v2624_v55 = vmul.f32 0.6931472, %v6863_v39  ;;  %6866 = vpow2.f32 %v2559_v6  ;;  %v8521_v35 = vadd.f32 %v8444_v37, %v2477_v50 }
 0x398   : > { %6868 = vlog2.f32 %v2631_v53  ;;  %2823 = vrot.lane.b32.xlu1 %v6865_v34, %s7579_s23  ;;  %v2635_v11 = vadd.f32 1.0, %v2634_v31  ;;  %vm2638_vm8 = vcmp.lt.f32.partialorder %v2637_v26, 0.0004427343 }
 0x399   : > { %v2630_v10 = vsel %vm2629_vm7, %v2627_v41, %v2624_v55  ;;  %v2521_v40 = vand.u32 2147483647, %v8521_v35  ;;  %6870 = vpow2.f32 %v2777_v4 }
 0x39a   : > { %v2726_v62 = vadd.f32 %v2630_v10, %v2502_v8  ;;  %v2636_v1 = vmul.f32 %v6861_v16, %v2635_v11 }
 0x39b   : > { %v2537_v14 = vsub.f32 0.0, %v2521_v40 }
 0x39c   : > { %v2758_v52 = vmul.f32 0.5, %v2726_v62  ;;  %v5405_v57 = vsel %vm2917_vm2, %v8488_v2, %v2726_v62 }
 0x39d   : > { %v6867_v27 = vpop.eup %6866  ;;  %5421 = vst.msk [vmem:[%s8472_s12 + $0x28] sm:$0xff] %vm2423_vm0, %v5405_v57  ;;  %v2561_v24 = vmul.f32 1.442695, %v2537_v14 }
 0x39e   : > { %v6869_v36 = vpop.eup %6868  ;;  %v2779_v38 = vmul.f32 1.442695, %v2758_v52  ;;  %v2640_v46 = vadd.f32 1.0, %v6867_v27  ;;  %v2479_v44 = vpop.f32.mrf.mxu1  ;;  %v2643_v61 = vmul.f32 -0.5, %v6867_v27  ;;  %v2646_v21 = vand.u32 2147483647, %v6867_v27 }
 0x39f   : > { %v6871_v63 = vpop.eup %6870  ;;  %v2633_v5 = vmul.f32 0.6931472, %v6869_v36  ;;  %6872 = vpow2.f32 %v2561_v24  ;;  %v8531_v49 = vadd.f32 %v8444_v37, %v2479_v44  ;;  %v2505_v52 = vmax.f32 %v8521_v35, 0.0 }
 0x3a0   : > { %6874 = vpow2.f32 %v2779_v38  ;;  %2825 = vrot.lane.b32.xlu2 %v6871_v63, %s7579_s23  ;;  %v2644_v23 = vadd.f32 1.0, %v2643_v61  ;;  %vm2647_vm9 = vcmp.lt.f32.partialorder %v2646_v21, 0.0004427343 }
 0x3a1   : > { %v2639_v9 = vsel %vm2638_vm8, %v2636_v1, %v2633_v5  ;;  %6876 = vlog2.f32 %v2640_v46  ;;  %v2522_v28 = vand.u32 2147483647, %v8531_v49 }
 0x3a2   : > { %v2727_v29 = vadd.f32 %v2639_v9, %v2503_v60  ;;  %v2645_v25 = vmul.f32 %v6867_v27, %v2644_v23  ;;  %v2506_v23 = vmax.f32 %v8531_v49, 0.0 }
 0x3a3   : > { %v2538_v56 = vsub.f32 0.0, %v2522_v28 }
 0x3a4   : > { %v2759_v13 = vmul.f32 0.5, %v2727_v29  ;;  %v5406_v7 = vsel %vm2917_vm2, %v8501_v47, %v2727_v29 }
 0x3a5   : > { %v6873_v20 = vpop.eup %6872  ;;  %5422 = vst.msk [vmem:[%s8472_s12 + $0x30] sm:$0xff] %vm2423_vm0, %v5406_v7  ;;  %v2563_v3 = vmul.f32 1.442695, %v2538_v56 }
 0x3a6   : > { %v6875_v19 = vpop.eup %6874  ;;  %v2781_v22 = vmul.f32 1.442695, %v2759_v13  ;;  %v2649_v18 = vadd.f32 1.0, %v6873_v20  ;;  %v2482_v33 = vpop.f32.mrf.mxu1  ;;  %v2652_v32 = vmul.f32 -0.5, %v6873_v20  ;;  %v2655_v50 = vand.u32 2147483647, %v6873_v20 }
 0x3a7   : > { %v6877_v45 = vpop.eup %6876  ;;  %6878 = vpow2.f32 %v2563_v3  ;;  %v8541_v12 = vadd.f32 %v8444_v37, %v2482_v33 }
 0x3a8   : > { %6880 = vpow2.f32 %v2781_v22  ;;  %v2642_v17 = vmul.f32 0.6931472, %v6877_v45  ;;  %2827 = vrot.lane.b32.xlu2 %v6875_v19, %s7579_s23  ;;  %v2653_v6 = vadd.f32 1.0, %v2652_v32  ;;  %vm2656_vm10 = vcmp.lt.f32.partialorder %v2655_v50, 0.0004427343 }
 0x3a9   : > { %6882 = vlog2.f32 %v2649_v18  ;;  %v2523_v48 = vand.u32 2147483647, %v8541_v12 }
 0x3aa   : > { %v2648_v30 = vsel %vm2647_vm9, %v2645_v25, %v2642_v17  ;;  %v2654_v14 = vmul.f32 %v6873_v20, %v2653_v6 }
 0x3ab   : > { %v2728_v58 = vadd.f32 %v2648_v30, %v2504_v42  ;;  %v2539_v16 = vsub.f32 0.0, %v2523_v48 }
 0x3ad   : > { %v6879_v39 = vpop.eup %6878  ;;  %v2760_v41 = vmul.f32 0.5, %v2728_v58  ;;  %v5407_v53 = vsel %vm2917_vm2, %v8511_v43, %v2728_v58  ;;  %v2565_v4 = vmul.f32 1.442695, %v2539_v16 }
 0x3ae   : > { %v6881_v34 = vpop.eup %6880  ;;  %5423 = vst.msk [vmem:[%s8472_s12 + $0x38] sm:$0xff] %vm2423_vm0, %v5407_v53  ;;  %v2658_v55 = vadd.f32 1.0, %v6879_v39  ;;  %v2661_v31 = vmul.f32 -0.5, %v6879_v39  ;;  %v2484_v8 = vpop.f32.mrf.mxu1  ;;  %v2664_v38 = vand.u32 2147483647, %v6879_v39 }
 0x3af   : > { %v6883_v10 = vpop.eup %6882  ;;  %v2783_v40 = vmul.f32 1.442695, %v2760_v41  ;;  %6884 = vpow2.f32 %v2565_v4  ;;  %v8551_v62 = vadd.f32 %v8444_v37, %v2484_v8  ;;  %2829 = vrot.lane.b32.xlu0 %v6881_v34, %s7579_s23  ;;  %v2507_v41 = vmax.f32 %v8541_v12, 0.0 }
 0x3b0   : > { %v2651_v11 = vmul.f32 0.6931472, %v6883_v10  ;;  %6886 = vlog2.f32 %v2658_v55  ;;  %v2662_v27 = vadd.f32 1.0, %v2661_v31  ;;  %vm2665_vm11 = vcmp.lt.f32.partialorder %v2664_v38, 0.0004427343 }
 0x3b1   : > { %6888 = vpow2.f32 %v2783_v40  ;;  %v2524_v57 = vand.u32 2147483647, %v8551_v62 }
 0x3b2   : > { %v2657_v26 = vsel %vm2656_vm10, %v2654_v14, %v2651_v11  ;;  %v2663_v60 = vmul.f32 %v6879_v39, %v2662_v27 }
 0x3b3   : > { %v2729_v24 = vadd.f32 %v2657_v26, %v2505_v52  ;;  %v2540_v36 = vsub.f32 0.0, %v2524_v57 }
 0x3b5   : > { %v6885_v46 = vpop.eup %6884  ;;  %v2761_v44 = vmul.f32 0.5, %v2729_v24  ;;  %v5408_v63 = vsel %vm2917_vm2, %v8521_v35, %v2729_v24  ;;  %v2567_v5 = vmul.f32 1.442695, %v2540_v36 }
 0x3b6   : > { %v6887_v1 = vpop.eup %6886  ;;  %5424 = vst.msk [vmem:[%s8472_s12 + $0x40] sm:$0xff] %vm2423_vm0, %v5408_v63  ;;  %v2667_v61 = vadd.f32 1.0, %v6885_v46  ;;  %v2670_v9 = vmul.f32 -0.5, %v6885_v46  ;;  %v2487_v28 = vpop.f32.mrf.mxu1  ;;  %v2673_v45 = vand.u32 2147483647, %v6885_v46  ;;  %v2508_v63 = vmax.f32 %v8551_v62, 0.0 }
 0x3b7   : > { %v6889_v29 = vpop.eup %6888  ;;  %v2785_v56 = vmul.f32 1.442695, %v2761_v44  ;;  %v2660_v13 = vmul.f32 0.6931472, %v6887_v1  ;;  %6890 = vpow2.f32 %v2567_v5  ;;  %v8561_v7 = vadd.f32 %v8444_v37, %v2487_v28 }
 0x3b8   : > { %6892 = vlog2.f32 %v2667_v61  ;;  %2831 = vrot.lane.b32.xlu1 %v6889_v29, %s7579_s23  ;;  %v2671_v19 = vadd.f32 1.0, %v2670_v9  ;;  %vm2674_vm12 = vcmp.lt.f32.partialorder %v2673_v45, 0.0004427343 }
 0x3b9   : > { %6894 = vpow2.f32 %v2785_v56  ;;  %v2666_v20 = vsel %vm2665_vm11, %v2663_v60, %v2660_v13  ;;  %v2525_v21 = vand.u32 2147483647, %v8561_v7 }
 0x3ba   : > { %v2730_v3 = vadd.f32 %v2666_v20, %v2506_v23  ;;  %v2672_v6 = vmul.f32 %v6885_v46, %v2671_v19 }
 0x3bb   : > { %v2541_v22 = vsub.f32 0.0, %v2525_v21 }
 0x3bc   : > { %v2762_v18 = vmul.f32 0.5, %v2730_v3  ;;  %v5409_v33 = vsel %vm2917_vm2, %v8531_v49, %v2730_v3 }
 0x3bd   : > { %v6891_v17 = vpop.eup %6890  ;;  %5425 = vst.msk [vmem:[%s8472_s12 + $0x48] sm:$0xff] %vm2423_vm0, %v5409_v33  ;;  %v2569_v25 = vmul.f32 1.442695, %v2541_v22 }
 0x3be   : > { %v6893_v32 = vpop.eup %6892  ;;  %v2787_v42 = vmul.f32 1.442695, %v2762_v18  ;;  %v2676_v48 = vadd.f32 1.0, %v6891_v17  ;;  %v2489_v30 = vpop.f32.mrf.mxu1  ;;  %v2679_v53 = vmul.f32 -0.5, %v6891_v17  ;;  %v2682_v11 = vand.u32 2147483647, %v6891_v17 }
 0x3bf   : > { %v6895_v58 = vpop.eup %6894  ;;  %v2669_v16 = vmul.f32 0.6931472, %v6893_v32  ;;  %6896 = vpow2.f32 %v2569_v25  ;;  %v8571_v39 = vadd.f32 %v8444_v37, %v2489_v30  ;;  %v2509_v25 = vmax.f32 %v8561_v7, 0.0 }
 0x3c0   : > { %6898 = vpow2.f32 %v2787_v42  ;;  %2833 = vrot.lane.b32.xlu2 %v6895_v58, %s7579_s23  ;;  %v2680_v10 = vadd.f32 1.0, %v2679_v53  ;;  %vm2683_vm13 = vcmp.lt.f32.partialorder %v2682_v11, 0.0004427343 }
 0x3c1   : > { %v2675_v50 = vsel %vm2674_vm12, %v2672_v6, %v2669_v16  ;;  %6900 = vlog2.f32 %v2676_v48  ;;  %v2526_v4 = vand.u32 2147483647, %v8571_v39 }
 0x3c2   : > { %v2731_v34 = vadd.f32 %v2675_v50, %v2507_v41  ;;  %v2681_v46 = vmul.f32 %v6891_v17, %v2680_v10 }
 0x3c3   : > { %v2542_v55 = vsub.f32 0.0, %v2526_v4 }
 0x3c4   : > { %v2763_v31 = vmul.f32 0.5, %v2731_v34  ;;  %v5410_v8 = vsel %vm2917_vm2, %v8541_v12, %v2731_v34 }
 0x3c5   : > { %v6897_v40 = vpop.eup %6896  ;;  %5426 = vst.msk [vmem:[%s8472_s12 + $0x50] sm:$0xff] %vm2423_vm0, %v5410_v8  ;;  %v2571_v14 = vmul.f32 1.442695, %v2542_v55 }
 0x3c6   : > { %v6899_v52 = vpop.eup %6898  ;;  %v2789_v57 = vmul.f32 1.442695, %v2763_v31  ;;  %v2685_v26 = vadd.f32 1.0, %v6897_v40  ;;  %v2492_v27 = vpop.f32.mrf.mxu1  ;;  %v2688_v44 = vmul.f32 -0.5, %v6897_v40  ;;  %v2691_v13 = vand.u32 2147483647, %v6897_v40 }
 0x3c7   : > { %v6901_v24 = vpop.eup %6900  ;;  %6902 = vpow2.f32 %v2571_v14  ;;  %v8581_v36 = vadd.f32 %v8444_v37, %v2492_v27  ;;  %2835 = vrot.lane.b32.xlu0 %v6899_v52, %s7579_s23 }
 0x3c8   : > { %6904 = vpow2.f32 %v2789_v57  ;;  %v2678_v38 = vmul.f32 0.6931472, %v6901_v24  ;;  %v2689_v9 = vadd.f32 1.0, %v2688_v44  ;;  %vm2692_vm14 = vcmp.lt.f32.partialorder %v2691_v13, 0.0004427343 }
 0x3c9   : > { %6906 = vlog2.f32 %v2685_v26  ;;  %v2527_v5 = vand.u32 2147483647, %v8581_v36 }
 0x3ca   : > { %v2684_v1 = vsel %vm2683_vm13, %v2681_v46, %v2678_v38  ;;  %v2690_v17 = vmul.f32 %v6897_v40, %v2689_v9  ;;  %v2510_v40 = vmax.f32 %v8571_v39, 0.0 }
 0x3cb   : > { %v2732_v60 = vadd.f32 %v2684_v1, %v2508_v63  ;;  %v2543_v61 = vsub.f32 0.0, %v2527_v5 }
 0x3cd   : > { %v6903_v28 = vpop.eup %6902  ;;  %v2764_v29 = vmul.f32 0.5, %v2732_v60  ;;  %v5411_v56 = vsel %vm2917_vm2, %v8551_v62, %v2732_v60  ;;  %v2573_v23 = vmul.f32 1.442695, %v2543_v61  ;;  %v2511_v60 = vmax.f32 %v8581_v36, 0.0 }
 0x3ce   : > { %v6905_v20 = vpop.eup %6904  ;;  %5427 = vst.msk [vmem:[%s8472_s12 + $0x58] sm:$0xff] %vm2423_vm0, %v5411_v56  ;;  %v2694_v21 = vadd.f32 1.0, %v6903_v28  ;;  %v2697_v3 = vmul.f32 -0.5, %v6903_v28  ;;  %v2494_v19 = vpop.f32.mrf.mxu1  ;;  %v2700_v16 = vand.u32 2147483647, %v6903_v28 }
 0x3cf   : > { %v6907_v22 = vpop.eup %6906  ;;  %v2791_v18 = vmul.f32 1.442695, %v2764_v29  ;;  %6908 = vpow2.f32 %v2573_v23  ;;  %v8591_v33 = vadd.f32 %v8444_v37, %v2494_v19  ;;  %2837 = vrot.lane.b32.xlu1 %v6905_v20, %s7579_s23 }
 0x3d0   : > { %v2687_v45 = vmul.f32 0.6931472, %v6907_v22  ;;  %6910 = vlog2.f32 %v2694_v21  ;;  %v2698_v48 = vadd.f32 1.0, %v2697_v3  ;;  %vm2701_vm15 = vcmp.lt.f32.partialorder %v2700_v16, 0.0004427343  ;;  %v2737_v16 = vld [vmem:[%s8627_s14] sm:$0xff] }
 0x3d1   : > { %6912 = vpow2.f32 %v2791_v18  ;;  %v2528_v32 = vand.u32 2147483647, %v8591_v33  ;;  %v2512_v18 = vmax.f32 %v8591_v33, 0.0 }
 0x3d2   : > { %v2693_v42 = vsel %vm2692_vm14, %v2690_v17, %v2687_v45  ;;  %v2699_v4 = vmul.f32 %v6903_v28, %v2698_v48 }
 0x3d3   : > { %v2733_v30 = vadd.f32 %v2693_v42, %v2509_v25  ;;  %v2544_v58 = vsub.f32 0.0, %v2528_v32 }
 0x3d5   : > { %v6909_v6 = vpop.eup %6908  ;;  %v2765_v37 = vmul.f32 0.5, %v2733_v30  ;;  %v5412_v41 = vsel %vm2917_vm2, %v8561_v7, %v2733_v30  ;;  %v2575_v53 = vmul.f32 1.442695, %v2544_v58  ;;  %v6634_v30 = vld [vmem:[%s9948_s20 + $0x8] sm:$0xff] }
 0x3d6   : > { %v6911_v50 = vpop.eup %6910  ;;  %5428 = vst.msk [vmem:[%s8472_s12 + $0x60] sm:$0xff] %vm2423_vm0, %v5412_v41  ;;  %v2703_v34 = vadd.f32 1.0, %v6909_v6  ;;  %v2706_v10 = vmul.f32 -0.5, %v6909_v6  ;;  %v2709_v27 = vand.u32 2147483647, %v6909_v6  ;;  %3065 = vmatpush.bf16.msrb.mxu3 %v6634_v30 }
 0x3d7   : > { %v6913_v55 = vpop.eup %6912  ;;  %v2793_v31 = vmul.f32 1.442695, %v2765_v37  ;;  %v2696_v8 = vmul.f32 0.6931472, %v6911_v50  ;;  %6914 = vpow2.f32 %v2575_v53  ;;  %v2738_v37 = vld [vmem:[%s8627_s14 + $0x8] sm:$0xff] }
 0x3d8   : > { %6916 = vlog2.f32 %v2703_v34  ;;  %2839 = vrot.lane.b32.xlu2 %v6913_v55, %s7579_s23  ;;  %v2707_v52 = vadd.f32 1.0, %v2706_v10  ;;  %vm2710_vm1 = vcmp.lt.f32.partialorder %v2709_v27, 0.0004427343  ;;  %v2740_v10 = vld [vmem:[%s8627_s14 + $0x18] sm:$0xff] }
 0x3d9   : > { %6918 = vpow2.f32 %v2793_v31  ;;  %v2702_v11 = vsel %vm2701_vm15, %v2699_v4, %v2696_v8  ;;  %v2739_v8 = vld [vmem:[%s8627_s14 + $0x10] sm:$0xff] }
 0x3da   : > { %v2734_v14 = vadd.f32 %v2702_v11, %v2510_v40  ;;  %v2708_v1 = vmul.f32 %v6909_v6, %v2707_v52 }
 0x3dc   : > { %v2766_v57 = vmul.f32 0.5, %v2734_v14  ;;  %v5413_v26 = vsel %vm2917_vm2, %v8571_v39, %v2734_v14 }
 0x3dd   : > { %v6915_v24 = vpop.eup %6914  ;;  %5429 = vst.msk [vmem:[%s8472_s12 + $0x68] sm:$0xff] %vm2423_vm0, %v5413_v26 }
 0x3de   : > { %v6917_v38 = vpop.eup %6916  ;;  %v2795_v46 = vmul.f32 1.442695, %v2766_v57  ;;  %v2712_v44 = vadd.f32 1.0, %v6915_v24  ;;  %v2715_v61 = vmul.f32 -0.5, %v6915_v24  ;;  %v2718_v23 = vand.u32 2147483647, %v6915_v24 }
 0x3df   : > { %v6919_v63 = vpop.eup %6918  ;;  %v2705_v5 = vmul.f32 0.6931472, %v6917_v38 }
 0x3e0   : > { %6920 = vpow2.f32 %v2795_v46  ;;  %2841 = vrot.lane.b32.xlu0 %v6919_v63, %s7579_s23  ;;  %v2716_v13 = vadd.f32 1.0, %v2715_v61  ;;  %vm2719_vm3 = vcmp.lt.f32.partialorder %v2718_v23, 0.0004427343  ;;  %v2746_v23 = vld [vmem:[%s8627_s14 + $0x48] sm:$0xff] }
 0x3e1   : > { %v2711_v9 = vsel %vm2710_vm1, %v2708_v1, %v2705_v5  ;;  %6922 = vlog2.f32 %v2712_v44 }
 0x3e2   : > { %v2735_v28 = vadd.f32 %v2711_v9, %v2511_v60  ;;  %v2717_v22 = vmul.f32 %v6915_v24, %v2716_v13  ;;  %v2741_v24 = vld [vmem:[%s8627_s14 + $0x20] sm:$0xff] }
 0x3e3   : > { %v6633_v13 = vld [vmem:[%s9948_s20] sm:$0xff] }
 0x3e4   : > { %v2767_v29 = vmul.f32 0.5, %v2735_v28  ;;  %v5414_v56 = vsel %vm2917_vm2, %v8581_v36, %v2735_v28  ;;  %3066 = vmatpush.bf16.msrb.mxu3 %v6633_v13 }
 0x3e5   : > { %5430 = vst.msk [vmem:[%s8472_s12 + $0x70] sm:$0xff] %vm2423_vm0, %v5414_v56 }
 0x3e6   : > { %v6921_v20 = vpop.eup %6920  ;;  %v2797_v21 = vmul.f32 1.442695, %v2767_v29 }
 0x3e7   : > { %v6923_v3 = vpop.eup %6922  ;;  %2843 = vrot.lane.b32.xlu1 %v6921_v20, %s7579_s23 }
 0x3e8   : > { %6924 = vpow2.f32 %v2797_v21  ;;  %v2714_v19 = vmul.f32 0.6931472, %v6923_v3 }
 0x3ea   : > { %v2720_v45 = vsel %vm2719_vm3, %v2717_v22, %v2714_v19  ;;  %v2747_v22 = vld [vmem:[%s8627_s14 + $0x50] sm:$0xff] }
 0x3eb   : > { %v2736_v17 = vadd.f32 %v2720_v45, %v2512_v18  ;;  %v2748_v45 = vld [vmem:[%s8627_s14 + $0x58] sm:$0xff] }
 0x3ed   : > { %v2768_v25 = vmul.f32 0.5, %v2736_v17  ;;  %v5415_v32 = vsel %vm2917_vm2, %v8591_v33, %v2736_v17 }
 0x3ee   : > { %v6925_v42 = vpop.eup %6924  ;;  %5431 = vst.msk [vmem:[%s8472_s12 + $0x78] sm:$0xff] %vm2423_vm0, %v5415_v32 }
 0x3ef   : > { %v2799_v48 = vmul.f32 1.442695, %v2768_v25  ;;  %2845 = vrot.lane.b32.xlu2 %v6925_v42, %s7579_s23 }
 0x3f1   : > { %6926 = vpow2.f32 %v2799_v48 }
 0x3f2   : > { %v2818_v58 = vpop.permute.xlu0 %2817 }
 0x3f3   : > { %v2865_v41 = vmul.f32 %v2818_v58, %v2737_v16  ;;  %v2750_v58 = vld [vmem:[%s8627_s14 + $0x68] sm:$0xff] }
 0x3f5   : > { %v2881_v4 = vadd.f32 %v2865_v41, %v8447_v54 }
 0x3f7   : > { %v6927_v6 = vpop.eup %6926 }
 0x3f8   : > { %2847 = vrot.lane.b32.xlu0 %v6927_v6, %s7579_s23 }
 0x3fa   : > { %v2820_v53 = vpop.permute.xlu0 %2819  ;;  %v2826_v11 = vpop.permute.xlu2 %2825 }
 0x3fb   : > { %v2866_v50 = vmul.f32 %v2820_v53, %v2738_v37  ;;  %v2869_v46 = vmul.f32 %v2826_v11, %v2741_v24 }
 0x3fd   : > { %v2882_v34 = vadd.f32 %v2866_v50, %v8451_v51  ;;  %v2742_v51 = vld [vmem:[%s8627_s14 + $0x28] sm:$0xff]  ;;  %v2885_v63 = vadd.f32 %v2869_v46, %v8479_v59  ;;  %v2745_v59 = vld [vmem:[%s8627_s14 + $0x40] sm:$0xff] }
 0x3fe   : > { %v6244_v46 = vld [vmem:[#allocation10 + $0xe0] sm:$0xf] }
 0x3ff   : > { %v2897_v55 = vpack.c.bf16 %v2882_v34, %v2881_v4  ;;  %v2752_v34 = vld [vmem:[%s8627_s14 + $0x78] sm:$0xff] }
 0x401   : > { %6106 = vmatmul.msk.bf16.vlgmr.msrb.gmra.mxu2 %vm2917_vm2, %v2897_v55 }
 0x402   : > { %v2822_v31 = vpop.permute.xlu1 %2821  ;;  %v2828_v27 = vpop.permute.xlu2 %2827 }
 0x403   : > { %v2867_v40 = vmul.f32 %v2822_v31, %v2739_v8  ;;  %v2870_v38 = vmul.f32 %v2828_v27, %v2742_v51 }
 0x405   : > { %v2883_v57 = vadd.f32 %v2867_v40, %v8456_v15  ;;  %v2886_v44 = vadd.f32 %v2870_v38, %v8488_v2  ;;  %v2743_v15 = vld [vmem:[%s8627_s14 + $0x30] sm:$0xff] }
 0x407   : > { %v2899_v5 = vpack.c.bf16 %v2886_v44, %v2885_v63  ;;  %v6665_v44 = vld [vmem:[#allocation10 + $0xec] sm:$0xf0]  ;;  %v6663_v63 = vld [vmem:[#allocation10 + $0xe4] sm:$0xf] }
 0x40a   : > { %v2824_v14 = vpop.permute.xlu1 %2823 }
 0x40b   : > { %v2868_v52 = vmul.f32 %v2824_v14, %v2740_v10  ;;  %v6666_v14 = vld [vmem:[#allocation10 + $0xf4] sm:$0xf0] }
 0x40d   : > { %v2884_v26 = vadd.f32 %v2868_v52, %v8463_v0  ;;  %v2744_v0 = vld [vmem:[%s8627_s14 + $0x38] sm:$0xff] }
 0x40f   : > { %v2898_v54 = vpack.c.bf16 %v2884_v26, %v2883_v57  ;;  %v6664_v57 = vld [vmem:[#allocation10 + $0xec] sm:$0xf]  ;;  %v6254_v26 = vld [vmem:[#allocation10 + $0xf8] sm:$0xf0] }
 0x411   : > { %6107 = vmatmul.msk.bf16.gmra.mxu2 %vm2917_vm2, %v2898_v54  ;;  %v6257_v54 = vor.u32 %v6664_v57, %v6254_v26 }
 0x413   : > { %3481 = vmatpush.bf16.msra.mxu3 %v6257_v54 }
 0x41a   : > { %v2834_v2 = vpop.permute.xlu2 %2833 }
 0x41b   : > { %v2873_v20 = vmul.f32 %v2834_v2, %v2745_v59 }
 0x421   : > { %6108 = vmatmul.msk.bf16.gmra.mxu2 %vm2917_vm2, %v2899_v5  ;;  %v2830_v1 = vpop.permute.xlu0 %2829  ;;  %v6245_v5 = vor.u32 %v6665_v44, %v6244_v46  ;;  %v6188_v44 = vld [vmem:[#allocation10 + $0x68] sm:$0xf] }
 0x422   : > { %v2871_v60 = vmul.f32 %v2830_v1, %v2743_v15  ;;  %v6246_v15 = vld [vmem:[#allocation10 + $0xf0] sm:$0xf0] }
 0x423   : > { %v6249_v1 = vor.u32 %v6663_v63, %v6246_v15  ;;  %3334 = vmatpush.bf16.msra.mxu0 %v6245_v5  ;;  %v6650_v63 = vld [vmem:[#allocation10 + $0x74] sm:$0xf0]  ;;  %v6648_v15 = vld [vmem:[#allocation10 + $0x6c] sm:$0xf] }
 0x424   : > { %v2887_v28 = vadd.f32 %v2871_v60, %v8501_v47  ;;  %v2889_v47 = vadd.f32 %v2873_v20, %v8521_v35  ;;  %v2749_v35 = vld [vmem:[%s8627_s14 + $0x60] sm:$0xff]  ;;  %v6236_v60 = vld [vmem:[#allocation10 + $0xc8] sm:$0xf]  ;;  %v6189_v5 = vor.u32 %v6650_v63, %v6188_v44  ;;  %v6637_v63 = vld [vmem:[#allocation10 + $0xc] sm:$0xf0] }
 0x425   : > { %3383 = vmatpush.bf16.msra.mxu1 %v6249_v1  ;;  %v6190_v1 = vld [vmem:[#allocation10 + $0x78] sm:$0xf0] }
 0x42a   : > { %v2832_v61 = vpop.permute.xlu1 %2831 }
 0x42b   : > { %v2872_v9 = vmul.f32 %v2832_v61, %v2744_v0  ;;  %v6662_v61 = vld [vmem:[#allocation10 + $0xd4] sm:$0xf0] }
 0x42d   : > { %v2888_v29 = vadd.f32 %v2872_v9, %v8511_v43  ;;  %v6237_v9 = vor.u32 %v6662_v61, %v6236_v60 }
 0x42f   : > { %v2900_v56 = vpack.c.bf16 %v2888_v29, %v2887_v28  ;;  %v6660_v28 = vld [vmem:[#allocation10 + $0xcc] sm:$0xf]  ;;  %v6238_v29 = vld [vmem:[#allocation10 + $0xd8] sm:$0xf0] }
 0x431   : > { %6109 = vmatmul.msk.bf16.gmra.mxu2 %vm2917_vm2, %v2900_v56  ;;  %v6241_v56 = vor.u32 %v6660_v28, %v6238_v29 }
 0x432   : > { %v2840_v17 = vpop.permute.xlu2 %2839 }
 0x433   : > { %v2876_v32 = vmul.f32 %v2840_v17, %v2748_v45  ;;  %3482 = vmatpush.bf16.msra.mxu3 %v6241_v56  ;;  %v6220_v17 = vld [vmem:[#allocation10 + $0xa8] sm:$0xf] }
 0x435   : > { %v2892_v48 = vadd.f32 %v2876_v32, %v8551_v62 }
 0x439   : > { %v2836_v21 = vpop.permute.xlu0 %2835 }
 0x43a   : > { %v2874_v3 = vmul.f32 %v2836_v21, %v2746_v23 }
 0x43c   : > { %v2890_v43 = vadd.f32 %v2874_v3, %v8531_v49  ;;  %v6228_v3 = vld [vmem:[#allocation10 + $0xc0] sm:$0xf] }
 0x43e   : > { %v2901_v19 = vpack.c.bf16 %v2890_v43, %v2889_v47  ;;  %v6661_v47 = vld [vmem:[#allocation10 + $0xcc] sm:$0xf0]  ;;  %v6659_v43 = vld [vmem:[#allocation10 + $0xc4] sm:$0xf] }
 0x441   : > { %6110 = vmatmul.msk.bf16.gmra.mxu2 %vm2917_vm2, %v2901_v19  ;;  %v2838_v18 = vpop.permute.xlu1 %2837  ;;  %v6229_v19 = vor.u32 %v6661_v47, %v6228_v3  ;;  %v6172_v47 = vld [vmem:[#allocation10 + $0x48] sm:$0xf] }
 0x442   : > { %v2875_v25 = vmul.f32 %v2838_v18, %v2747_v22  ;;  %v6230_v22 = vld [vmem:[#allocation10 + $0xd0] sm:$0xf0] }
 0x443   : > { %v6233_v18 = vor.u32 %v6659_v43, %v6230_v22  ;;  %3335 = vmatpush.bf16.msra.mxu0 %v6229_v19  ;;  %v6646_v43 = vld [vmem:[#allocation10 + $0x54] sm:$0xf0]  ;;  %v6644_v22 = vld [vmem:[#allocation10 + $0x4c] sm:$0xf] }
 0x444   : > { %v2891_v42 = vadd.f32 %v2875_v25, %v8541_v12  ;;  %v2751_v12 = vld [vmem:[%s8627_s14 + $0x70] sm:$0xff]  ;;  %v6658_v25 = vld [vmem:[#allocation10 + $0xb4] sm:$0xf0]  ;;  %v6173_v19 = vor.u32 %v6646_v43, %v6172_v47 }
 0x445   : > { %3384 = vmatpush.bf16.msra.mxu1 %v6233_v18  ;;  %v6221_v32 = vor.u32 %v6658_v25, %v6220_v17  ;;  %v6174_v18 = vld [vmem:[#allocation10 + $0x58] sm:$0xf0]  ;;  %v6730_v43 = vld [vmem:[#allocation11 + $0x1f4] sm:$0xf0] }
 0x446   : > { %v2902_v30 = vpack.c.bf16 %v2892_v48, %v2891_v42  ;;  %v6656_v42 = vld [vmem:[#allocation10 + $0xac] sm:$0xf]  ;;  %v6222_v48 = vld [vmem:[#allocation10 + $0xb8] sm:$0xf0] }
 0x449   : > { %v2846_v4 = vpop.permute.xlu2 %2845 }
 0x44a   : > { %v2879_v62 = vmul.f32 %v2846_v4, %v2751_v12  ;;  %v6214_v4 = vld [vmem:[#allocation10 + $0xb0] sm:$0xf0] }
 0x44c   : > { %v2895_v8 = vadd.f32 %v2879_v62, %v8581_v36 }
 0x451   : > { %6111 = vmatmul.msk.bf16.gmra.mxu2 %vm2917_vm2, %v2902_v30  ;;  %v6225_v30 = vor.u32 %v6656_v42, %v6222_v48 }
 0x452   : > { %v2842_v49 = vpop.permute.xlu0 %2841 }
 0x453   : > { %v2877_v16 = vmul.f32 %v2842_v49, %v2749_v35  ;;  %3483 = vmatpush.bf16.msra.mxu3 %v6225_v30 }
 0x455   : > { %v2893_v41 = vadd.f32 %v2877_v16, %v8561_v7  ;;  %v8676_v7 = vld [vmem:[%s9950_s9] ss:$0 sm:$0xff] }
 0x459   : > { %v2844_v6 = vpop.permute.xlu1 %2843 }
 0x45a   : > { %v2878_v37 = vmul.f32 %v2844_v6, %v2750_v58 }
 0x45c   : > { %v2894_v53 = vadd.f32 %v2878_v37, %v8571_v39  ;;  %v6252_v39 = vld [vmem:[#allocation10 + $0xe8] sm:$0xf] }
 0x45d   : > { %v6253_v52 = vor.u32 %v6666_v14, %v6252_v39 }
 0x45e   : > { %v2903_v50 = vpack.c.bf16 %v2894_v53, %v2893_v41  ;;  %v6212_v41 = vld [vmem:[#allocation10 + $0xa0] sm:$0xf]  ;;  %v6657_v53 = vld [vmem:[#allocation10 + $0xac] sm:$0xf0] }
 0x45f   : > { %3432 = vmatpush.bf16.msra.mxu2 %v6253_v52  ;;  %v6213_v12 = vor.u32 %v6657_v53, %v6212_v41  ;;  %v6156_v41 = vld [vmem:[#allocation10 + $0x28] sm:$0xf]  ;;  %v6642_v53 = vld [vmem:[#allocation10 + $0x34] sm:$0xf0] }
 0x461   : > { %6112 = vmatmul.msk.bf16.gmra.mxu2 %vm2917_vm2, %v2903_v50  ;;  %v6655_v50 = vld [vmem:[#allocation10 + $0xa4] sm:$0xf]  ;;  %3336 = vmatpush.bf16.msra.mxu0 %v6213_v12 }
 0x463   : > { %3433 = vmatpush.bf16.msra.mxu2 %v6237_v9 }
 0x467   : > { %3434 = vmatpush.bf16.msra.mxu2 %v6221_v32 }
 0x46a   : > { %v2848_v55 = vpop.permute.xlu0 %2847 }
 0x46b   : > { %v2880_v31 = vmul.f32 %v2848_v55, %v2752_v34  ;;  %v6217_v34 = vor.u32 %v6655_v50, %v6214_v4  ;;  %v6204_v55 = vld [vmem:[#allocation10 + $0x88] sm:$0xf]  ;;  %v6640_v50 = vld [vmem:[#allocation10 + $0x2c] sm:$0xf]  ;;  %v6157_v4 = vor.u32 %v6642_v53, %v6156_v41  ;;  %v6500_v41 = vld [vmem:[#allocation11 + $0x1e0] sm:$0xf] }
 0x46d   : > { %v2896_v10 = vadd.f32 %v2880_v31, %v8591_v33  ;;  %3385 = vmatpush.bf16.msra.mxu1 %v6217_v34  ;;  %v6654_v31 = vld [vmem:[#allocation10 + $0x94] sm:$0xf0]  ;;  %v6158_v34 = vld [vmem:[#allocation10 + $0x38] sm:$0xf0] }
 0x46f   : > { %v2904_v40 = vpack.c.bf16 %v2896_v10, %v2895_v8  ;;  %v6205_v8 = vor.u32 %v6654_v31, %v6204_v55  ;;  %v6652_v10 = vld [vmem:[#allocation10 + $0x8c] sm:$0xf]  ;;  %v6641_v55 = vld [vmem:[#allocation10 + $0x2c] sm:$0xf0]  ;;  %v6161_v31 = vor.u32 %v6640_v50, %v6158_v34  ;;  %v6728_v50 = vld [vmem:[#allocation11 + $0x1e4] sm:$0xf0] }
 0x470   : > { %v6501_v34 = vor.u32 %v6728_v50, %v6500_v41 }
 0x471   : > { %6113 = vmatmul.msk.bf16.gmra.mxu2 %vm2917_vm2, %v2904_v40  ;;  %v6206_v40 = vld [vmem:[#allocation10 + $0x98] sm:$0xf0] }
 0x472   : > { %3435 = vmatpush.bf16.msra.mxu2 %v6205_v8 }
 0x476   : > { %3436 = vmatpush.bf16.msra.mxu2 %v6189_v5 }
 0x47a   : > { %3437 = vmatpush.bf16.msra.mxu2 %v6173_v19  ;;  %v6380_v19 = vld [vmem:[#allocation11 + $0xf0] sm:$0xf] }
 0x47e   : > { %3438 = vmatpush.bf16.msra.mxu2 %v6157_v4  ;;  %v6696_v4 = vld [vmem:[#allocation11 + $0xe4] sm:$0xf0] }
 0x484   : > { %v2951_v11 = vpop.f32.mrf.mxu2 }
 0x485   : > { %v2952_v36 = vadd.f32 %v8676_v7, %v2951_v11  ;;  %v6209_v11 = vor.u32 %v6652_v10, %v6206_v40  ;;  %v6639_v10 = vld [vmem:[#allocation10 + $0x24] sm:$0xf]  ;;  %v6150_v40 = vld [vmem:[#allocation10 + $0x30] sm:$0xf0] }
 0x487   : > { %v2991_v27 = vmax.f32 %v2952_v36, 0.0  ;;  %3484 = vmatpush.bf16.msra.mxu3 %v6209_v11  ;;  %v6196_v36 = vld [vmem:[#allocation10 + $0x80] sm:$0xf]  ;;  %v6140_v11 = vld [vmem:[#allocation10 + $0x8] sm:$0xf] }
 0x48c   : > { %v2953_v33 = vpop.f32.mrf.mxu2 }
 0x48d   : > { %v2954_v51 = vadd.f32 %v8676_v7, %v2953_v33  ;;  %v6653_v33 = vld [vmem:[#allocation10 + $0x8c] sm:$0xf0] }
 0x48f   : > { %v2992_v24 = vmax.f32 %v2954_v51, 0.0  ;;  %v6651_v51 = vld [vmem:[#allocation10 + $0x84] sm:$0xf] }
 0x491   : > { %v3007_v38 = vpack.c.bf16 %v2992_v24, %v2991_v27  ;;  %v6197_v27 = vor.u32 %v6653_v33, %v6196_v36  ;;  %v6198_v24 = vld [vmem:[#allocation10 + $0x90] sm:$0xf0] }
 0x493   : > { %6122 = vmatmul.msk.bf16.vlgmr.msrb.gmra.mxu3 %vm2423_vm0, %v3007_v38  ;;  %v6201_v38 = vor.u32 %v6651_v51, %v6198_v24  ;;  %3337 = vmatpush.bf16.msra.mxu0 %v6197_v27  ;;  %v6636_v24 = vld [vmem:[#allocation10 + $0xc] sm:$0xf] }
 0x494   : > { %v2956_v0 = vpop.f32.mrf.mxu2 }
 0x495   : > { %v2957_v59 = vadd.f32 %v8676_v7, %v2956_v0  ;;  %3386 = vmatpush.bf16.msra.mxu1 %v6201_v38  ;;  %v6193_v0 = vor.u32 %v6648_v15, %v6190_v1  ;;  %v6142_v38 = vld [vmem:[#allocation10 + $0x18] sm:$0xf0] }
 0x496   : > { %v6145_v44 = vor.u32 %v6636_v24, %v6142_v38  ;;  %v6694_v24 = vld [vmem:[#allocation11 + $0xd4] sm:$0xf0] }
 0x497   : > { %v2993_v23 = vmax.f32 %v2957_v59, 0.0  ;;  %3485 = vmatpush.bf16.msra.mxu3 %v6193_v0  ;;  %v6180_v59 = vld [vmem:[#allocation10 + $0x60] sm:$0xf] }
 0x49c   : > { %v2958_v2 = vpop.f32.mrf.mxu2 }
 0x49d   : > { %v2959_v13 = vadd.f32 %v8676_v7, %v2958_v2  ;;  %v6649_v2 = vld [vmem:[#allocation10 + $0x6c] sm:$0xf0] }
 0x49f   : > { %v2994_v20 = vmax.f32 %v2959_v13, 0.0  ;;  %v6647_v13 = vld [vmem:[#allocation10 + $0x64] sm:$0xf] }
 0x4a1   : > { %v3008_v21 = vpack.c.bf16 %v2994_v20, %v2993_v23  ;;  %v6181_v23 = vor.u32 %v6649_v2, %v6180_v59  ;;  %v6182_v20 = vld [vmem:[#allocation10 + $0x70] sm:$0xf0]  ;;  %v8705_v2 = vld [vmem:[%s9951_s30] ss:$0 sm:$0xff] }
 0x4a3   : > { %6123 = vmatmul.msk.bf16.gmra.mxu3 %vm2423_vm0, %v3008_v21  ;;  %v6185_v21 = vor.u32 %v6647_v13, %v6182_v20  ;;  %3338 = vmatpush.bf16.msra.mxu0 %v6181_v23  ;;  %v6444_v13 = vld [vmem:[#allocation11 + $0x170] sm:$0xf]  ;;  %v6714_v23 = vld [vmem:[#allocation11 + $0x174] sm:$0xf0] }
 0x4a4   : > { %v2961_v45 = vpop.f32.mrf.mxu2  ;;  %v6445_v20 = vor.u32 %v6714_v23, %v6444_v13  ;;  %v6724_v23 = vld [vmem:[#allocation11 + $0x1c4] sm:$0xf0] }
 0x4a5   : > { %v2962_v35 = vadd.f32 %v8676_v7, %v2961_v45  ;;  %3387 = vmatpush.bf16.msra.mxu1 %v6185_v21  ;;  %v6177_v45 = vor.u32 %v6644_v22, %v6174_v18  ;;  %v6682_v21 = vld [vmem:[#allocation11 + $0x74] sm:$0xf0] }
 0x4a6   : > { %v6698_v22 = vld [vmem:[#allocation11 + $0xf4] sm:$0xf0] }
 0x4a7   : > { %v2995_v16 = vmax.f32 %v2962_v35, 0.0  ;;  %3486 = vmatpush.bf16.msra.mxu3 %v6177_v45  ;;  %v6164_v35 = vld [vmem:[#allocation10 + $0x40] sm:$0xf]  ;;  %v6381_v45 = vor.u32 %v6698_v22, %v6380_v19 }
 0x4ab   : > { %3487 = vmatpush.bf16.msra.mxu3 %v6161_v31 }
 0x4ac   : > { %v2963_v49 = vpop.f32.mrf.mxu2 }
 0x4ad   : > { %v2964_v58 = vadd.f32 %v8676_v7, %v2963_v49  ;;  %v6645_v49 = vld [vmem:[#allocation10 + $0x4c] sm:$0xf0] }
 0x4af   : > { %v2996_v6 = vmax.f32 %v2964_v58, 0.0  ;;  %v6643_v58 = vld [vmem:[#allocation10 + $0x44] sm:$0xf]  ;;  %3488 = vmatpush.bf16.msra.mxu3 %v6145_v44 }
 0x4b1   : > { %v3009_v37 = vpack.c.bf16 %v2996_v6, %v2995_v16  ;;  %v6165_v16 = vor.u32 %v6645_v49, %v6164_v35  ;;  %v6166_v6 = vld [vmem:[#allocation10 + $0x50] sm:$0xf0]  ;;  %v6436_v49 = vld [vmem:[#allocation11 + $0x160] sm:$0xf] }
 0x4b3   : > { %6124 = vmatmul.msk.bf16.gmra.mxu3 %vm2423_vm0, %v3009_v37  ;;  %v6169_v37 = vor.u32 %v6643_v58, %v6166_v6  ;;  %3339 = vmatpush.bf16.msra.mxu0 %v6165_v16  ;;  %v6712_v58 = vld [vmem:[#allocation11 + $0x164] sm:$0xf0]  ;;  %v6308_v6 = vld [vmem:[#allocation11 + $0x60] sm:$0xf] }
 0x4b4   : > { %v2966_v62 = vpop.f32.mrf.mxu2  ;;  %v6437_v16 = vor.u32 %v6712_v58, %v6436_v49  ;;  %v6722_v58 = vld [vmem:[#allocation11 + $0x1b4] sm:$0xf0] }
 0x4b5   : > { %v2967_v39 = vadd.f32 %v8676_v7, %v2966_v62  ;;  %v6148_v62 = vld [vmem:[#allocation10 + $0x20] sm:$0xf]  ;;  %3388 = vmatpush.bf16.msra.mxu1 %v6169_v37  ;;  %v6680_v37 = vld [vmem:[#allocation11 + $0x64] sm:$0xf0] }
 0x4b6   : > { %v6149_v8 = vor.u32 %v6641_v55, %v6148_v62  ;;  %v6309_v53 = vor.u32 %v6680_v37, %v6308_v6  ;;  %v6690_v6 = vld [vmem:[#allocation11 + $0xb4] sm:$0xf0] }
 0x4b7   : > { %v2997_v57 = vmax.f32 %v2967_v39, 0.0  ;;  %v6153_v39 = vor.u32 %v6639_v10, %v6150_v40 }
 0x4b8   : > { %3340 = vmatpush.bf16.msra.mxu0 %v6149_v8 }
 0x4b9   : > { %3389 = vmatpush.bf16.msra.mxu1 %v6153_v39 }
 0x4bc   : > { %v2968_v14 = vpop.f32.mrf.mxu2 }
 0x4bd   : > { %v2969_v52 = vadd.f32 %v8676_v7, %v2968_v14  ;;  %v6638_v14 = vld [vmem:[#allocation10 + $0x14] sm:$0xf0] }
 0x4bf   : > { %v2998_v26 = vmax.f32 %v2969_v52, 0.0  ;;  %v6141_v52 = vor.u32 %v6638_v14, %v6140_v11  ;;  %v6428_v14 = vld [vmem:[#allocation11 + $0x150] sm:$0xf] }
 0x4c1   : > { %v3010_v54 = vpack.c.bf16 %v2998_v26, %v2997_v57  ;;  %3439 = vmatpush.bf16.msra.mxu2 %v6141_v52  ;;  %v6710_v52 = vld [vmem:[#allocation11 + $0x154] sm:$0xf0] }
 0x4c3   : > { %6125 = vmatmul.msk.bf16.gmra.mxu3 %vm2423_vm0, %v3010_v54 }
 0x4c4   : > { %v2971_v46 = vpop.f32.mrf.mxu2 }
 0x4c5   : > { %v2972_v60 = vadd.f32 %v8676_v7, %v2971_v46  ;;  %v6132_v46 = vld [vmem:[#allocation10] sm:$0xf]  ;;  %4114 = vmatpush.bf16.msrb.mxu2 %v6445_v20 }
 0x4c6   : > { %v6133_v15 = vor.u32 %v6637_v63, %v6132_v46  ;;  %v6356_v20 = vld [vmem:[#allocation11 + $0xc0] sm:$0xf] }
 0x4c7   : > { %v2999_v28 = vmax.f32 %v2972_v60, 0.0 }
 0x4c8   : > { %3341 = vmatpush.bf16.msra.mxu0 %v6133_v15 }
 0x4c9   : > { %4115 = vmatpush.bf16.msrb.mxu2 %v6437_v16  ;;  %v6348_v16 = vld [vmem:[#allocation11 + $0xb0] sm:$0xf] }
 0x4ca   : > { %v6349_v41 = vor.u32 %v6690_v6, %v6348_v16 }
 0x4cc   : > { %v2973_v61 = vpop.f32.mrf.mxu2 }
 0x4cd   : > { %v2974_v9 = vadd.f32 %v8676_v7, %v2973_v61 }
 0x4cf   : > { %v3000_v29 = vmax.f32 %v2974_v9, 0.0  ;;  %v6635_v9 = vld [vmem:[#allocation10 + $0x4] sm:$0xf] }
 0x4d1   : > { %v3011_v56 = vpack.c.bf16 %v3000_v29, %v2999_v28  ;;  %v6134_v28 = vld [vmem:[#allocation10 + $0x10] sm:$0xf0] }
 0x4d2   : > { %v6137_v29 = vor.u32 %v6635_v9, %v6134_v28  ;;  %v6708_v9 = vld [vmem:[#allocation11 + $0x144] sm:$0xf0] }
 0x4d3   : > { %6126 = vmatmul.msk.bf16.gmra.mxu3 %vm2423_vm0, %v3011_v56 }
 0x4d4   : > { %v2976_v3 = vpop.f32.mrf.mxu2  ;;  %3390 = vmatpush.bf16.msra.mxu1 %v6137_v29  ;;  %v6292_v29 = vld [vmem:[#allocation11 + $0x40] sm:$0xf] }
 0x4d5   : > { %v2977_v17 = vadd.f32 %v8676_v7, %v2976_v3  ;;  %v6508_v3 = vld [vmem:[#allocation11 + $0x1f0] sm:$0xf] }
 0x4d6   : > { %v6509_v18 = vor.u32 %v6730_v43, %v6508_v3 }
 0x4d7   : > { %v3001_v42 = vmax.f32 %v2977_v17, 0.0 }
 0x4d8   : > { %4163 = vmatpush.bf16.msrb.mxu3 %v6509_v18  ;;  %4065 = vmatpush.bf16.msrb.mxu1 %v6381_v45 }
 0x4dc   : > { %v2978_v25 = vpop.f32.mrf.mxu2  ;;  %4164 = vmatpush.bf16.msrb.mxu3 %v6501_v34 }
 0x4dd   : > { %v2979_v32 = vadd.f32 %v8676_v7, %v2978_v25 }
 0x4df   : > { %v3002_v48 = vmax.f32 %v2979_v32, 0.0 }
 0x4e1   : > { %v3012_v30 = vpack.c.bf16 %v3002_v48, %v3001_v42 }
 0x4e3   : > { %6127 = vmatmul.msk.bf16.gmra.mxu3 %vm2423_vm0, %v3012_v30 }
 0x4e4   : > { %v2981_v12 = vpop.f32.mrf.mxu2 }
 0x4e5   : > { %v2982_v57 = vadd.f32 %v8676_v7, %v2981_v12  ;;  %v6372_v12 = vld [vmem:[#allocation11 + $0xe0] sm:$0xf] }
 0x4e6   : > { %v6373_v62 = vor.u32 %v6696_v4, %v6372_v12 }
 0x4e7   : > { %v3003_v36 = vmax.f32 %v2982_v57, 0.0  ;;  %v6429_v57 = vor.u32 %v6710_v52, %v6428_v14  ;;  %v6720_v52 = vld [vmem:[#allocation11 + $0x1a4] sm:$0xf0] }
 0x4e8   : > { %4066 = vmatpush.bf16.msrb.mxu1 %v6373_v62 }
 0x4e9   : > { %4116 = vmatpush.bf16.msrb.mxu2 %v6429_v57  ;;  %v6340_v57 = vld [vmem:[#allocation11 + $0xa0] sm:$0xf] }
 0x4ec   : > { %v2983_v26 = vpop.f32.mrf.mxu2 }
 0x4ed   : > { %v2984_v54 = vadd.f32 %v8676_v7, %v2983_v26  ;;  %v6300_v26 = vld [vmem:[#allocation11 + $0x50] sm:$0xf] }
 0x4ef   : > { %v3004_v33 = vmax.f32 %v2984_v54, 0.0  ;;  %v6678_v54 = vld [vmem:[#allocation11 + $0x54] sm:$0xf0] }
 0x4f1   : > { %v3013_v51 = vpack.c.bf16 %v3004_v33, %v3003_v36  ;;  %v6492_v36 = vld [vmem:[#allocation11 + $0x1d0] sm:$0xf]  ;;  %v6301_v33 = vor.u32 %v6678_v54, %v6300_v26  ;;  %v6688_v26 = vld [vmem:[#allocation11 + $0xa4] sm:$0xf0] }
 0x4f3   : > { %6128 = vmatmul.msk.bf16.gmra.mxu3 %vm2423_vm0, %v3013_v51  ;;  %v6726_v51 = vld [vmem:[#allocation11 + $0x1d4] sm:$0xf0] }
 0x4f4   : > { %v2986_v27 = vpop.f32.mrf.mxu2  ;;  %v6493_v38 = vor.u32 %v6726_v51, %v6492_v36  ;;  %v6341_v36 = vor.u32 %v6688_v26, %v6340_v57 }
 0x4f5   : > { %v2987_v5 = vadd.f32 %v8676_v7, %v2986_v27  ;;  %v6364_v27 = vld [vmem:[#allocation11 + $0xd0] sm:$0xf] }
 0x4f6   : > { %v6365_v46 = vor.u32 %v6694_v24, %v6364_v27  ;;  %4165 = vmatpush.bf16.msrb.mxu3 %v6493_v38 }
 0x4f7   : > { %v3005_v60 = vmax.f32 %v2987_v5, 0.0 }
 0x4f8   : > { %4067 = vmatpush.bf16.msrb.mxu1 %v6365_v46 }
 0x4fc   : > { %v2988_v1 = vpop.f32.mrf.mxu2 }
 0x4fd   : > { %v2989_v0 = vadd.f32 %v8676_v7, %v2988_v1  ;;  %v6316_v7 = vld [vmem:[#allocation11 + $0x70] sm:$0xf] }
 0x4fe   : > { %v6317_v47 = vor.u32 %v6682_v21, %v6316_v7  ;;  %v6692_v7 = vld [vmem:[#allocation11 + $0xc4] sm:$0xf0] }
 0x4ff   : > { %v3006_v61 = vmax.f32 %v2989_v0, 0.0  ;;  %v6357_v3 = vor.u32 %v6692_v7, %v6356_v20 }
 0x500   : > { %4016 = vmatpush.bf16.msrb.mxu0 %v6317_v47 }
 0x501   : > { %v3014_v56 = vpack.c.bf16 %v3006_v61, %v3005_v60  ;;  %v6420_v61 = vld [vmem:[#allocation11 + $0x140] sm:$0xf]  ;;  %4068 = vmatpush.bf16.msrb.mxu1 %v6357_v3 }
 0x502   : > { %v6421_v28 = vor.u32 %v6708_v9, %v6420_v61  ;;  %v6718_v61 = vld [vmem:[#allocation11 + $0x194] sm:$0xf0] }
 0x503   : > { %6129 = vmatmul.msk.bf16.gmra.mxu3 %vm2423_vm0, %v3014_v56  ;;  %v6676_v56 = vld [vmem:[#allocation11 + $0x44] sm:$0xf0] }
 0x504   : > { %4017 = vmatpush.bf16.msrb.mxu0 %v6309_v53  ;;  %v6293_v13 = vor.u32 %v6676_v56, %v6292_v29  ;;  %4117 = vmatpush.bf16.msrb.mxu2 %v6421_v28  ;;  %v6332_v29 = vld [vmem:[#allocation11 + $0x90] sm:$0xf]  ;;  %v6686_v56 = vld [vmem:[#allocation11 + $0x94] sm:$0xf0] }
 0x505   : > { %4069 = vmatpush.bf16.msrb.mxu1 %v6349_v41 }
 0x508   : > { %4018 = vmatpush.bf16.msrb.mxu0 %v6301_v33 }
 0x509   : > { %4070 = vmatpush.bf16.msrb.mxu1 %v6341_v36  ;;  %v6711_v36 = vld [vmem:[#allocation11 + $0x164] sm:$0xf] }
 0x50c   : > { %4019 = vmatpush.bf16.msrb.mxu0 %v6293_v13 }
 0x516   : > { %v3068_v59 = vpop.f32.mrf.mxu3 }
 0x517   : > { %v3069_v17 = vadd.f32 %v8705_v2, %v3068_v59  ;;  %v6484_v59 = vld [vmem:[#allocation11 + $0x1c0] sm:$0xf] }
 0x518   : > { %v6485_v21 = vor.u32 %v6724_v23, %v6484_v59  ;;  %v6333_v59 = vor.u32 %v6686_v56, %v6332_v29  ;;  %v6727_v56 = vld [vmem:[#allocation11 + $0x1e4] sm:$0xf] }
 0x519   : > { %v3108_v42 = vmax.f32 %v3069_v17, 0.0 }
 0x51a   : > { %4166 = vmatpush.bf16.msrb.mxu3 %v6485_v21  ;;  %4071 = vmatpush.bf16.msrb.mxu1 %v6333_v59  ;;  %v6502_v59 = vld [vmem:[#allocation11 + $0x1e8] sm:$0xf0] }
 0x51e   : > { %v3070_v25 = vpop.f32.mrf.mxu3 }
 0x51f   : > { %v3071_v32 = vadd.f32 %v8705_v2, %v3070_v25  ;;  %v6412_v25 = vld [vmem:[#allocation11 + $0x130] sm:$0xf] }
 0x521   : > { %v3109_v48 = vmax.f32 %v3071_v32, 0.0  ;;  %v6706_v32 = vld [vmem:[#allocation11 + $0x134] sm:$0xf0] }
 0x523   : > { %v3124_v30 = vpack.c.bf16 %v3109_v48, %v3108_v42  ;;  %v6413_v42 = vor.u32 %v6706_v32, %v6412_v25  ;;  %v6284_v48 = vld [vmem:[#allocation11 + $0x30] sm:$0xf] }
 0x525   : > { %3342 = vmatmul.bf16.vlgmr.msra.gmra.mxu0 %v3124_v30  ;;  %3391 = vmatmul.bf16.vlgmr.msra.gmra.mxu1 %v3124_v30 }
 0x526   : > { %3440 = vmatmul.bf16.vlgmr.msra.gmra.mxu2 %v3124_v30  ;;  %3489 = vmatmul.bf16.vlgmr.msra.gmra.mxu3 %v3124_v30  ;;  %v3073_v35 = vpop.f32.mrf.mxu3  ;;  %v6674_v30 = vld [vmem:[#allocation11 + $0x34] sm:$0xf0] }
 0x527   : > { %v3074_v55 = vadd.f32 %v8705_v2, %v3073_v35  ;;  %v6476_v35 = vld [vmem:[#allocation11 + $0x1b0] sm:$0xf]  ;;  %v6285_v49 = vor.u32 %v6674_v30, %v6284_v48  ;;  %4118 = vmatpush.bf16.msrb.mxu2 %v6413_v42  ;;  %v6716_v42 = vld [vmem:[#allocation11 + $0x184] sm:$0xf0]  ;;  %v6324_v48 = vld [vmem:[#allocation11 + $0x80] sm:$0xf] }
 0x528   : > { %v6477_v37 = vor.u32 %v6722_v58, %v6476_v35  ;;  %v6684_v30 = vld [vmem:[#allocation11 + $0x84] sm:$0xf0] }
 0x529   : > { %v3110_v10 = vmax.f32 %v3074_v55, 0.0  ;;  %4020 = vmatpush.bf16.msrb.mxu0 %v6285_v49  ;;  %v6325_v58 = vor.u32 %v6684_v30, %v6324_v48 }
 0x52a   : > { %4167 = vmatpush.bf16.msrb.mxu3 %v6477_v37 }
 0x52b   : > { %4072 = vmatpush.bf16.msrb.mxu1 %v6325_v58 }
 0x52e   : > { %v3075_v31 = vpop.f32.mrf.mxu3 }
 0x52f   : > { %v3076_v8 = vadd.f32 %v8705_v2, %v3075_v31  ;;  %v6404_v31 = vld [vmem:[#allocation11 + $0x120] sm:$0xf] }
 0x531   : > { %v3111_v40 = vmax.f32 %v3076_v8, 0.0  ;;  %v6704_v8 = vld [vmem:[#allocation11 + $0x124] sm:$0xf0] }
 0x533   : > { %v3125_v11 = vpack.c.bf16 %v3111_v40, %v3110_v10  ;;  %v6405_v10 = vor.u32 %v6704_v8, %v6404_v31  ;;  %v6276_v40 = vld [vmem:[#allocation11 + $0x20] sm:$0xf]  ;;  %v6510_v31 = vld [vmem:[#allocation11 + $0x1f8] sm:$0xf0] }
 0x534   : > { %v6382_v8 = vld [vmem:[#allocation11 + $0xf8] sm:$0xf0] }
 0x535   : > { %3347 = vmatmul.bf16.gmra.mxu0 %v3125_v11  ;;  %3396 = vmatmul.bf16.gmra.mxu1 %v3125_v11 }
 0x536   : > { %3445 = vmatmul.bf16.gmra.mxu2 %v3125_v11  ;;  %3494 = vmatmul.bf16.gmra.mxu3 %v3125_v11  ;;  %v3078_v39 = vpop.f32.mrf.mxu3  ;;  %v6672_v11 = vld [vmem:[#allocation11 + $0x24] sm:$0xf0] }
 0x537   : > { %v3079_v44 = vadd.f32 %v8705_v2, %v3078_v39  ;;  %v6468_v39 = vld [vmem:[#allocation11 + $0x1a0] sm:$0xf]  ;;  %v6277_v14 = vor.u32 %v6672_v11, %v6276_v40  ;;  %4119 = vmatpush.bf16.msrb.mxu2 %v6405_v10 }
 0x538   : > { %v6469_v54 = vor.u32 %v6720_v52, %v6468_v39  ;;  %v3164_v11 = vld [vmem:[%s9952_s24] sm:$0xf] }
 0x539   : > { %v3112_v15 = vmax.f32 %v3079_v44, 0.0  ;;  %4021 = vmatpush.bf16.msrb.mxu0 %v6277_v14  ;;  %v8726_v52 = vperm.slane %v3164_v11, 0  ;;  %v8728_v57 = vperm.slane %v3164_v11, 1 }
 0x53a   : > { %4168 = vmatpush.bf16.msrb.mxu3 %v6469_v54 }
 0x53e   : > { %v3080_v63 = vpop.f32.mrf.mxu3 }
 0x53f   : > { %v3081_v5 = vadd.f32 %v8705_v2, %v3080_v63  ;;  %v6396_v63 = vld [vmem:[#allocation11 + $0x110] sm:$0xf] }
 0x541   : > { %v3113_v1 = vmax.f32 %v3081_v5, 0.0  ;;  %v6702_v5 = vld [vmem:[#allocation11 + $0x114] sm:$0xf0] }
 0x543   : > { %v3126_v0 = vpack.c.bf16 %v3113_v1, %v3112_v15  ;;  %v6268_v15 = vld [vmem:[#allocation11 + $0x10] sm:$0xf]  ;;  %v6397_v1 = vor.u32 %v6702_v5, %v6396_v63  ;;  %v8734_v63 = vperm.slane %v3164_v11, 3 }
 0x545   : > { %3352 = vmatmul.bf16.gmra.mxu0 %v3126_v0  ;;  %3401 = vmatmul.bf16.gmra.mxu1 %v3126_v0 }
 0x546   : > { %3450 = vmatmul.bf16.gmra.mxu2 %v3126_v0  ;;  %3499 = vmatmul.bf16.gmra.mxu3 %v3126_v0  ;;  %v3083_v60 = vpop.f32.mrf.mxu3  ;;  %v6670_v0 = vld [vmem:[#allocation11 + $0x14] sm:$0xf0] }
 0x547   : > { %v3084_v47 = vadd.f32 %v8705_v2, %v3083_v60  ;;  %v6460_v60 = vld [vmem:[#allocation11 + $0x190] sm:$0xf]  ;;  %v6269_v9 = vor.u32 %v6670_v0, %v6268_v15  ;;  %4120 = vmatpush.bf16.msrb.mxu2 %v6397_v1 }
 0x548   : > { %v6461_v28 = vor.u32 %v6718_v61, %v6460_v60  ;;  %v6679_v60 = vld [vmem:[#allocation11 + $0x64] sm:$0xf]  ;;  %v6310_v61 = vld [vmem:[#allocation11 + $0x68] sm:$0xf0] }
 0x549   : > { %v3114_v22 = vmax.f32 %v3084_v47, 0.0  ;;  %4022 = vmatpush.bf16.msrb.mxu0 %v6269_v9  ;;  %v6388_v47 = vld [vmem:[#allocation11 + $0x100] sm:$0xf]  ;;  %v6313_v29 = vor.u32 %v6679_v60, %v6310_v61 }
 0x54a   : > { %4169 = vmatpush.bf16.msrb.mxu3 %v6461_v28 }
 0x54e   : > { %v3085_v43 = vpop.f32.mrf.mxu3 }
 0x54f   : > { %v3086_v19 = vadd.f32 %v8705_v2, %v3085_v43  ;;  %v6700_v43 = vld [vmem:[#allocation11 + $0x104] sm:$0xf0] }
 0x551   : > { %v3115_v18 = vmax.f32 %v3086_v19, 0.0 }
 0x553   : > { %v3127_v45 = vpack.c.bf16 %v3115_v18, %v3114_v22  ;;  %v6389_v22 = vor.u32 %v6700_v43, %v6388_v47  ;;  %v6260_v18 = vld [vmem:[#allocation11] sm:$0xf] }
 0x555   : > { %3357 = vmatmul.bf16.gmra.mxu0 %v3127_v45  ;;  %3406 = vmatmul.bf16.gmra.mxu1 %v3127_v45 }
 0x556   : > { %3455 = vmatmul.bf16.gmra.mxu2 %v3127_v45  ;;  %3504 = vmatmul.bf16.gmra.mxu3 %v3127_v45  ;;  %v3088_v17 = vpop.f32.mrf.mxu3  ;;  %v6668_v45 = vld [vmem:[#allocation11 + $0x4] sm:$0xf0] }
 0x557   : > { %v3089_v53 = vadd.f32 %v8705_v2, %v3088_v17  ;;  %4121 = vmatpush.bf16.msrb.mxu2 %v6389_v22  ;;  %v6452_v17 = vld [vmem:[#allocation11 + $0x180] sm:$0xf]  ;;  %v6261_v32 = vor.u32 %v6668_v45, %v6260_v18 }
 0x558   : > { %v6453_v49 = vor.u32 %v6716_v42, %v6452_v17 }
 0x559   : > { %v3116_v4 = vmax.f32 %v3089_v53, 0.0  ;;  %4023 = vmatpush.bf16.msrb.mxu0 %v6261_v32  ;;  %v6713_v53 = vld [vmem:[#allocation11 + $0x174] sm:$0xf] }
 0x55a   : > { %4170 = vmatpush.bf16.msrb.mxu3 %v6453_v49 }
 0x55e   : > { %v3090_v50 = vpop.f32.mrf.mxu3 }
 0x55f   : > { %v3091_v12 = vadd.f32 %v8705_v2, %v3090_v50  ;;  %v6446_v50 = vld [vmem:[#allocation11 + $0x178] sm:$0xf0] }
 0x561   : > { %v3117_v34 = vmax.f32 %v3091_v12, 0.0  ;;  %v6449_v12 = vor.u32 %v6713_v53, %v6446_v50 }
 0x563   : > { %v3128_v62 = vpack.c.bf16 %v3117_v34, %v3116_v4  ;;  %4310 = vmatpush.bf16.msra.mxu2 %v6449_v12  ;;  %v6681_v4 = vld [vmem:[#allocation11 + $0x74] sm:$0xf]  ;;  %v6318_v34 = vld [vmem:[#allocation11 + $0x78] sm:$0xf0] }
 0x565   : > { %3362 = vmatmul.bf16.gmra.mxu0 %v3128_v62  ;;  %3411 = vmatmul.bf16.gmra.mxu1 %v3128_v62 }
 0x566   : > { %3460 = vmatmul.bf16.gmra.mxu2 %v3128_v62  ;;  %3509 = vmatmul.bf16.gmra.mxu3 %v3128_v62  ;;  %v3093_v55 = vpop.f32.mrf.mxu3  ;;  %v6729_v62 = vld [vmem:[#allocation11 + $0x1f4] sm:$0xf] }
 0x567   : > { %v3094_v33 = vadd.f32 %v8705_v2, %v3093_v55  ;;  %v6321_v55 = vor.u32 %v6681_v4, %v6318_v34  ;;  %v6513_v10 = vor.u32 %v6729_v62, %v6510_v31 }
 0x569   : > { %v3118_v24 = vmax.f32 %v3094_v33, 0.0  ;;  %4212 = vmatpush.bf16.msra.mxu0 %v6321_v55  ;;  %4359 = vmatpush.bf16.msra.mxu3 %v6513_v10  ;;  %v6438_v33 = vld [vmem:[#allocation11 + $0x168] sm:$0xf0] }
 0x56d   : > { %4213 = vmatpush.bf16.msra.mxu0 %v6313_v29 }
 0x56e   : > { %v3095_v51 = vpop.f32.mrf.mxu3 }
 0x56f   : > { %v3096_v27 = vadd.f32 %v8705_v2, %v3095_v51 }
 0x571   : > { %v3119_v38 = vmax.f32 %v3096_v27, 0.0 }
 0x573   : > { %v3129_v46 = vpack.c.bf16 %v3119_v38, %v3118_v24  ;;  %v6441_v24 = vor.u32 %v6711_v36, %v6438_v33  ;;  %v6366_v36 = vld [vmem:[#allocation11 + $0xd8] sm:$0xf0] }
 0x575   : > { %3367 = vmatmul.bf16.gmra.mxu0 %v3129_v46  ;;  %3416 = vmatmul.bf16.gmra.mxu1 %v3129_v46 }
 0x576   : > { %3465 = vmatmul.bf16.gmra.mxu2 %v3129_v46  ;;  %3514 = vmatmul.bf16.gmra.mxu3 %v3129_v46  ;;  %v3098_v44 = vpop.f32.mrf.mxu3 }
 0x577   : > { %v3099_v13 = vadd.f32 %v8705_v2, %v3098_v44  ;;  %v8732_v44 = vperm.slane %v3164_v11, 2  ;;  %4311 = vmatpush.bf16.msra.mxu2 %v6441_v24 }
 0x579   : > { %v3120_v7 = vmax.f32 %v3099_v13, 0.0  ;;  %v6505_v13 = vor.u32 %v6727_v56, %v6502_v59 }
 0x57b   : > { %4360 = vmatpush.bf16.msra.mxu3 %v6505_v13 }
 0x57e   : > { %v3100_v23 = vpop.f32.mrf.mxu3 }
 0x57f   : > { %v3101_v20 = vadd.f32 %v8705_v2, %v3100_v23  ;;  %v6695_v23 = vld [vmem:[#allocation11 + $0xe4] sm:$0xf] }
 0x581   : > { %v3121_v21 = vmax.f32 %v3101_v20, 0.0  ;;  %v6374_v20 = vld [vmem:[#allocation11 + $0xe8] sm:$0xf0] }
 0x583   : > { %v3130_v3 = vpack.c.bf16 %v3121_v21, %v3120_v7 }
 0x585   : > { %3372 = vmatmul.bf16.gmra.mxu0 %v3130_v3  ;;  %3421 = vmatmul.bf16.gmra.mxu1 %v3130_v3 }
 0x586   : > { %3470 = vmatmul.bf16.gmra.mxu2 %v3130_v3  ;;  %3519 = vmatmul.bf16.gmra.mxu3 %v3130_v3  ;;  %v3103_v19 = vpop.f32.mrf.mxu3  ;;  %v6377_v3 = vor.u32 %v6695_v23, %v6374_v20  ;;  %v6707_v20 = vld [vmem:[#allocation11 + $0x144] sm:$0xf] }
 0x587   : > { %v3104_v25 = vadd.f32 %v8705_v2, %v3103_v19 }
 0x589   : > { %v3122_v6 = vmax.f32 %v3104_v25, 0.0 }
 0x58e   : > { %v3105_v35 = vpop.f32.mrf.mxu3 }
 0x58f   : > { %v3106_v16 = vadd.f32 %v8705_v2, %v3105_v35  ;;  %v6697_v2 = vld [vmem:[#allocation11 + $0xf4] sm:$0xf] }
 0x590   : > { %v6385_v40 = vor.u32 %v6697_v2, %v6382_v8  ;;  %v6677_v2 = vld [vmem:[#allocation11 + $0x54] sm:$0xf]  ;;  %v6302_v8 = vld [vmem:[#allocation11 + $0x58] sm:$0xf0] }
 0x591   : > { %v3123_v37 = vmax.f32 %v3106_v16, 0.0  ;;  %v6305_v11 = vor.u32 %v6677_v2, %v6302_v8 }
 0x592   : > { %4261 = vmatpush.bf16.msra.mxu1 %v6385_v40 }
 0x593   : > { %v3131_v41 = vpack.c.bf16 %v3123_v37, %v3122_v6  ;;  %v6709_v6 = vld [vmem:[#allocation11 + $0x154] sm:$0xf]  ;;  %v6430_v37 = vld [vmem:[#allocation11 + $0x158] sm:$0xf0]  ;;  %4214 = vmatpush.bf16.msra.mxu0 %v6305_v11 }
 0x594   : > { %v6433_v50 = vor.u32 %v6709_v6, %v6430_v37  ;;  %v6723_v6 = vld [vmem:[#allocation11 + $0x1c4] sm:$0xf]  ;;  %v6486_v37 = vld [vmem:[#allocation11 + $0x1c8] sm:$0xf0] }
 0x595   : > { %3377 = vmatmul.bf16.gmra.mxu0 %v3131_v41  ;;  %3426 = vmatmul.bf16.gmra.mxu1 %v3131_v41 }
 0x596   : > { %3475 = vmatmul.bf16.gmra.mxu2 %v3131_v41  ;;  %3524 = vmatmul.bf16.gmra.mxu3 %v3131_v41 }
 0x597   : > { %4262 = vmatpush.bf16.msra.mxu1 %v6377_v3  ;;  %4312 = vmatpush.bf16.msra.mxu2 %v6433_v50  ;;  %v6422_v3 = vld [vmem:[#allocation11 + $0x148] sm:$0xf0] }
 0x598   : > { %v6358_v50 = vld [vmem:[#allocation11 + $0xc8] sm:$0xf0] }
 0x5a2   : > { %v3343_v39 = vpop.f32.mrf.mxu0  ;;  %v3392_v14 = vpop.f32.mrf.mxu1 }
 0x5a3   : > { %v3344_v26 = vadd.f32 %v3343_v39, %v8726_v52  ;;  %v3393_v54 = vadd.f32 %v3392_v14, %v8728_v57  ;;  %v6725_v39 = vld [vmem:[#allocation11 + $0x1d4] sm:$0xf]  ;;  %v6494_v14 = vld [vmem:[#allocation11 + $0x1d8] sm:$0xf0] }
 0x5a5   : > { %v3530_v1 = vmax.f32 %v3344_v26, 0.0  ;;  %v3531_v0 = vmax.f32 %v3393_v54, 0.0  ;;  %v6497_v26 = vor.u32 %v6725_v39, %v6494_v14  ;;  %v6693_v54 = vld [vmem:[#allocation11 + $0xd4] sm:$0xf] }
 0x5a7   : > { %4361 = vmatpush.bf16.msra.mxu3 %v6497_v26 }
 0x5a9   : > { %v3441_v51 = vpop.f32.mrf.mxu2  ;;  %v3490_v27 = vpop.f32.mrf.mxu3 }
 0x5aa   : > { %v3345_v38 = vpop.f32.mrf.mxu0  ;;  %v3394_v46 = vpop.f32.mrf.mxu1  ;;  %v3442_v47 = vadd.f32 %v3441_v51, %v8732_v44  ;;  %v3491_v43 = vadd.f32 %v3490_v27, %v8734_v63  ;;  %v6369_v27 = vor.u32 %v6693_v54, %v6366_v36 }
 0x5ab   : > { %v3346_v5 = vadd.f32 %v3345_v38, %v8726_v52  ;;  %v3395_v15 = vadd.f32 %v3394_v46, %v8728_v57 }
 0x5ac   : > { %v3532_v32 = vmax.f32 %v3442_v47, 0.0  ;;  %v3533_v42 = vmax.f32 %v3491_v43, 0.0  ;;  %4263 = vmatpush.bf16.msra.mxu1 %v6369_v27 }
 0x5ad   : > { %v3534_v9 = vmax.f32 %v3346_v5, 0.0  ;;  %v3535_v28 = vmax.f32 %v3395_v15, 0.0 }
 0x5af   : > { %v8738_v7 = vpack.c.bf16 %v3534_v9, %v3530_v1  ;;  %v8740_v21 = vpack.c.bf16 %v3535_v28, %v3531_v0 }
 0x5b1   : > { %v3443_v19 = vpop.f32.mrf.mxu2  ;;  %v3492_v22 = vpop.f32.mrf.mxu3  ;;  %4024 = vmatmul.bf16.vlgmr.msrb.gmra.mxu0 %v8738_v7  ;;  %4073 = vmatmul.bf16.vlgmr.msrb.gmra.mxu1 %v8740_v21 }
 0x5b2   : > { %v3444_v18 = vadd.f32 %v3443_v19, %v8732_v44  ;;  %v3493_v45 = vadd.f32 %v3492_v22, %v8734_v63  ;;  %v3348_v17 = vpop.f32.mrf.mxu0  ;;  %v3397_v25 = vpop.f32.mrf.mxu1  ;;  %v6425_v19 = vor.u32 %v6707_v20, %v6422_v3  ;;  %v6286_v20 = vld [vmem:[#allocation11 + $0x38] sm:$0xf0] }
 0x5b3   : > { %v3349_v58 = vadd.f32 %v3348_v17, %v8726_v52  ;;  %v3398_v16 = vadd.f32 %v3397_v25, %v8728_v57 }
 0x5b4   : > { %v3536_v48 = vmax.f32 %v3444_v18, 0.0  ;;  %v3537_v30 = vmax.f32 %v3493_v45, 0.0  ;;  %4313 = vmatpush.bf16.msra.mxu2 %v6425_v19  ;;  %v6721_v19 = vld [vmem:[#allocation11 + $0x1b4] sm:$0xf] }
 0x5b5   : > { %v3538_v55 = vmax.f32 %v3349_v58, 0.0  ;;  %v3539_v31 = vmax.f32 %v3398_v16, 0.0 }
 0x5b6   : > { %v8748_v35 = vpack.c.bf16 %v3536_v48, %v3532_v32  ;;  %v8750_v49 = vpack.c.bf16 %v3537_v30, %v3533_v42  ;;  %v6675_v42 = vld [vmem:[#allocation11 + $0x44] sm:$0xf]  ;;  %v6294_v48 = vld [vmem:[#allocation11 + $0x48] sm:$0xf0] }
 0x5b7   : > { %v6297_v16 = vor.u32 %v6675_v42, %v6294_v48 }
 0x5b8   : > { %4122 = vmatmul.bf16.vlgmr.msrb.gmra.mxu2 %v8748_v35  ;;  %4171 = vmatmul.bf16.vlgmr.msrb.gmra.mxu3 %v8750_v49 }
 0x5b9   : > { %v3446_v41 = vpop.f32.mrf.mxu2  ;;  %v3495_v53 = vpop.f32.mrf.mxu3  ;;  %4215 = vmatpush.bf16.msra.mxu0 %v6297_v16 }
 0x5ba   : > { %v3350_v12 = vpop.f32.mrf.mxu0  ;;  %v3399_v4 = vpop.f32.mrf.mxu1  ;;  %v3447_v24 = vadd.f32 %v3446_v41, %v8732_v44  ;;  %v3496_v38 = vadd.f32 %v3495_v53, %v8734_v63  ;;  %v6489_v41 = vor.u32 %v6723_v6, %v6486_v37  ;;  %v6691_v53 = vld [vmem:[#allocation11 + $0xc4] sm:$0xf] }
 0x5bb   : > { %v3351_v34 = vadd.f32 %v3350_v12, %v8726_v52  ;;  %v3400_v62 = vadd.f32 %v3399_v4, %v8728_v57 }
 0x5bc   : > { %v3540_v61 = vmax.f32 %v3447_v24, 0.0  ;;  %v3541_v9 = vmax.f32 %v3496_v38, 0.0  ;;  %4362 = vmatpush.bf16.msra.mxu3 %v6489_v41 }
 0x5bd   : > { %v3542_v10 = vmax.f32 %v3351_v34, 0.0  ;;  %v3543_v40 = vmax.f32 %v3400_v62, 0.0  ;;  %v6361_v34 = vor.u32 %v6691_v53, %v6358_v50 }
 0x5bf   : > { %v8758_v33 = vpack.c.bf16 %v3542_v10, %v3538_v55  ;;  %v8760_v51 = vpack.c.bf16 %v3543_v40, %v3539_v31  ;;  %4264 = vmatpush.bf16.msra.mxu1 %v6361_v34 }
 0x5c1   : > { %v3448_v46 = vpop.f32.mrf.mxu2  ;;  %v3497_v5 = vpop.f32.mrf.mxu3  ;;  %4029 = vmatmul.bf16.gmra.mxu0 %v8758_v33  ;;  %4078 = vmatmul.bf16.gmra.mxu1 %v8760_v51 }
 0x5c2   : > { %v3449_v15 = vadd.f32 %v3448_v46, %v8732_v44  ;;  %v3498_v1 = vadd.f32 %v3497_v5, %v8734_v63  ;;  %v3353_v0 = vpop.f32.mrf.mxu0  ;;  %v3402_v60 = vpop.f32.mrf.mxu1  ;;  %v6705_v46 = vld [vmem:[#allocation11 + $0x134] sm:$0xf]  ;;  %v6414_v5 = vld [vmem:[#allocation11 + $0x138] sm:$0xf0] }
 0x5c3   : > { %v3354_v13 = vadd.f32 %v3353_v0, %v8726_v52  ;;  %v3403_v23 = vadd.f32 %v3402_v60, %v8728_v57  ;;  %v6417_v0 = vor.u32 %v6705_v46, %v6414_v5 }
 0x5c4   : > { %v3544_v28 = vmax.f32 %v3449_v15, 0.0  ;;  %v3545_v29 = vmax.f32 %v3498_v1, 0.0 }
 0x5c5   : > { %v3546_v25 = vmax.f32 %v3354_v13, 0.0  ;;  %v3547_v32 = vmax.f32 %v3403_v23, 0.0  ;;  %4314 = vmatpush.bf16.msra.mxu2 %v6417_v0  ;;  %v6673_v23 = vld [vmem:[#allocation11 + $0x34] sm:$0xf]  ;;  %v6278_v0 = vld [vmem:[#allocation11 + $0x28] sm:$0xf0] }
 0x5c6   : > { %v8768_v56 = vpack.c.bf16 %v3544_v28, %v3540_v61  ;;  %v8770_v59 = vpack.c.bf16 %v3545_v29, %v3541_v9 }
 0x5c8   : > { %4127 = vmatmul.bf16.gmra.mxu2 %v8768_v56  ;;  %4176 = vmatmul.bf16.gmra.mxu3 %v8770_v59 }
 0x5c9   : > { %v3451_v47 = vpop.f32.mrf.mxu2  ;;  %v3500_v43 = vpop.f32.mrf.mxu3 }
 0x5ca   : > { %v3355_v22 = vpop.f32.mrf.mxu0  ;;  %v3404_v18 = vpop.f32.mrf.mxu1  ;;  %v3452_v62 = vadd.f32 %v3451_v47, %v8732_v44  ;;  %v3501_v55 = vadd.f32 %v3500_v43, %v8734_v63  ;;  %v6289_v43 = vor.u32 %v6673_v23, %v6286_v20  ;;  %v6687_v23 = vld [vmem:[#allocation11 + $0xa4] sm:$0xf]  ;;  %v6342_v20 = vld [vmem:[#allocation11 + $0xa8] sm:$0xf0] }
 0x5cb   : > { %v3356_v45 = vadd.f32 %v3355_v22, %v8726_v52  ;;  %v3405_v17 = vadd.f32 %v3404_v18, %v8728_v57  ;;  %v6478_v22 = vld [vmem:[#allocation11 + $0x1b8] sm:$0xf0] }
 0x5cc   : > { %v3548_v39 = vmax.f32 %v3452_v62, 0.0  ;;  %v3549_v14 = vmax.f32 %v3501_v55, 0.0  ;;  %v6481_v18 = vor.u32 %v6721_v19, %v6478_v22  ;;  %4216 = vmatpush.bf16.msra.mxu0 %v6289_v43  ;;  %v6345_v43 = vor.u32 %v6687_v23, %v6342_v20 }
 0x5cd   : > { %v3550_v30 = vmax.f32 %v3356_v45, 0.0  ;;  %v3551_v58 = vmax.f32 %v3405_v17, 0.0  ;;  %v6689_v45 = vld [vmem:[#allocation11 + $0xb4] sm:$0xf]  ;;  %v6350_v17 = vld [vmem:[#allocation11 + $0xb8] sm:$0xf0] }
 0x5ce   : > { %v6353_v42 = vor.u32 %v6689_v45, %v6350_v17  ;;  %4363 = vmatpush.bf16.msra.mxu3 %v6481_v18 }
 0x5cf   : > { %v8778_v12 = vpack.c.bf16 %v3550_v30, %v3546_v25  ;;  %v8780_v4 = vpack.c.bf16 %v3551_v58, %v3547_v32 }
 0x5d0   : > { %4265 = vmatpush.bf16.msra.mxu1 %v6353_v42 }
 0x5d1   : > { %v3453_v31 = vpop.f32.mrf.mxu2  ;;  %v3502_v2 = vpop.f32.mrf.mxu3  ;;  %4034 = vmatmul.bf16.gmra.mxu0 %v8778_v12  ;;  %4083 = vmatmul.bf16.gmra.mxu1 %v8780_v4 }
 0x5d2   : > { %v3454_v8 = vadd.f32 %v3453_v31, %v8732_v44  ;;  %v3503_v10 = vadd.f32 %v3502_v2, %v8734_v63  ;;  %v3358_v40 = vpop.f32.mrf.mxu0  ;;  %v3407_v11 = vpop.f32.mrf.mxu1 }
 0x5d3   : > { %v3359_v24 = vadd.f32 %v3358_v40, %v8726_v52  ;;  %v3408_v38 = vadd.f32 %v3407_v11, %v8728_v57  ;;  %v6703_v40 = vld [vmem:[#allocation11 + $0x124] sm:$0xf]  ;;  %v6406_v11 = vld [vmem:[#allocation11 + $0x128] sm:$0xf0] }
 0x5d4   : > { %v3552_v26 = vmax.f32 %v3454_v8, 0.0  ;;  %v3553_v54 = vmax.f32 %v3503_v10, 0.0  ;;  %4266 = vmatpush.bf16.msra.mxu1 %v6345_v43 }
 0x5d5   : > { %v3554_v29 = vmax.f32 %v3359_v24, 0.0  ;;  %v3555_v13 = vmax.f32 %v3408_v38, 0.0 }
 0x5d6   : > { %v8788_v36 = vpack.c.bf16 %v3552_v26, %v3548_v39  ;;  %v8790_v27 = vpack.c.bf16 %v3553_v54, %v3549_v14  ;;  %v6409_v26 = vor.u32 %v6703_v40, %v6406_v11 }
 0x5d8   : > { %4132 = vmatmul.bf16.gmra.mxu2 %v8788_v36  ;;  %4181 = vmatmul.bf16.gmra.mxu3 %v8790_v27 }
 0x5d9   : > { %v3456_v15 = vpop.f32.mrf.mxu2  ;;  %v3505_v1 = vpop.f32.mrf.mxu3  ;;  %4315 = vmatpush.bf16.msra.mxu2 %v6409_v26 }
 0x5da   : > { %v3360_v60 = vpop.f32.mrf.mxu0  ;;  %v3409_v61 = vpop.f32.mrf.mxu1  ;;  %v3457_v48 = vadd.f32 %v3456_v15, %v8732_v44  ;;  %v3506_v30 = vadd.f32 %v3505_v1, %v8734_v63  ;;  %v6671_v1 = vld [vmem:[#allocation11 + $0x24] sm:$0xf] }
 0x5db   : > { %v3361_v9 = vadd.f32 %v3360_v60, %v8726_v52  ;;  %v3410_v28 = vadd.f32 %v3409_v61, %v8728_v57 }
 0x5dc   : > { %v3556_v50 = vmax.f32 %v3457_v48, 0.0  ;;  %v3557_v34 = vmax.f32 %v3506_v30, 0.0 }
 0x5dd   : > { %v3558_v3 = vmax.f32 %v3361_v9, 0.0  ;;  %v3559_v47 = vmax.f32 %v3410_v28, 0.0  ;;  %v6281_v9 = vor.u32 %v6671_v1, %v6278_v0  ;;  %v6719_v28 = vld [vmem:[#allocation11 + $0x1a4] sm:$0xf]  ;;  %v6717_v0 = vld [vmem:[#allocation11 + $0x194] sm:$0xf] }
 0x5df   : > { %v8798_v25 = vpack.c.bf16 %v3558_v3, %v3554_v29  ;;  %v8800_v32 = vpack.c.bf16 %v3559_v47, %v3555_v13  ;;  %v6470_v29 = vld [vmem:[#allocation11 + $0x1a8] sm:$0xf0]  ;;  %4217 = vmatpush.bf16.msra.mxu0 %v6281_v9  ;;  %v6685_v9 = vld [vmem:[#allocation11 + $0x94] sm:$0xf] }
 0x5e0   : > { %v6473_v13 = vor.u32 %v6719_v28, %v6470_v29  ;;  %v6334_v28 = vld [vmem:[#allocation11 + $0x98] sm:$0xf0] }
 0x5e1   : > { %v3458_v58 = vpop.f32.mrf.mxu2  ;;  %v3507_v16 = vpop.f32.mrf.mxu3  ;;  %4039 = vmatmul.bf16.gmra.mxu0 %v8798_v25  ;;  %4088 = vmatmul.bf16.gmra.mxu1 %v8800_v32  ;;  %v6337_v23 = vor.u32 %v6685_v9, %v6334_v28 }
 0x5e2   : > { %v3459_v6 = vadd.f32 %v3458_v58, %v8732_v44  ;;  %v3508_v37 = vadd.f32 %v3507_v16, %v8734_v63  ;;  %v3363_v41 = vpop.f32.mrf.mxu0  ;;  %v3412_v53 = vpop.f32.mrf.mxu1  ;;  %4364 = vmatpush.bf16.msra.mxu3 %v6473_v13 }
 0x5e3   : > { %v3364_v8 = vadd.f32 %v3363_v41, %v8726_v52  ;;  %v3413_v10 = vadd.f32 %v3412_v53, %v8728_v57  ;;  %4267 = vmatpush.bf16.msra.mxu1 %v6337_v23 }
 0x5e4   : > { %v3560_v62 = vmax.f32 %v3459_v6, 0.0  ;;  %v3561_v55 = vmax.f32 %v3508_v37, 0.0 }
 0x5e5   : > { %v3562_v5 = vmax.f32 %v3364_v8, 0.0  ;;  %v3563_v15 = vmax.f32 %v3413_v10, 0.0 }
 0x5e6   : > { %v8808_v31 = vpack.c.bf16 %v3560_v62, %v3556_v50  ;;  %v8810_v2 = vpack.c.bf16 %v3561_v55, %v3557_v34  ;;  %v6701_v62 = vld [vmem:[#allocation11 + $0x114] sm:$0xf]  ;;  %v6398_v55 = vld [vmem:[#allocation11 + $0x118] sm:$0xf0] }
 0x5e7   : > { %v6401_v40 = vor.u32 %v6701_v62, %v6398_v55  ;;  %v6667_v62 = vld [vmem:[#allocation11 + $0x4] sm:$0xf] }
 0x5e8   : > { %4137 = vmatmul.bf16.gmra.mxu2 %v8808_v31  ;;  %4186 = vmatmul.bf16.gmra.mxu3 %v8810_v2 }
 0x5e9   : > { %v3461_v39 = vpop.f32.mrf.mxu2  ;;  %v3510_v14 = vpop.f32.mrf.mxu3  ;;  %4316 = vmatpush.bf16.msra.mxu2 %v6401_v40 }
 0x5ea   : > { %v3365_v54 = vpop.f32.mrf.mxu0  ;;  %v3414_v24 = vpop.f32.mrf.mxu1  ;;  %v3462_v19 = vadd.f32 %v3461_v39, %v8732_v44  ;;  %v3511_v22 = vadd.f32 %v3510_v14, %v8734_v63 }
 0x5eb   : > { %v3366_v38 = vadd.f32 %v3365_v54, %v8726_v52  ;;  %v3415_v46 = vadd.f32 %v3414_v24, %v8728_v57 }
 0x5ec   : > { %v3564_v58 = vmax.f32 %v3462_v19, 0.0  ;;  %v3565_v16 = vmax.f32 %v3511_v22, 0.0 }
 0x5ed   : > { %v3566_v60 = vmax.f32 %v3366_v38, 0.0  ;;  %v3567_v61 = vmax.f32 %v3415_v46, 0.0  ;;  %v6669_v38 = vld [vmem:[#allocation11 + $0x14] sm:$0xf]  ;;  %v6270_v46 = vld [vmem:[#allocation11 + $0x18] sm:$0xf0] }
 0x5ee   : > { %v6273_v1 = vor.u32 %v6669_v38, %v6270_v46 }
 0x5ef   : > { %v8818_v3 = vpack.c.bf16 %v3566_v60, %v3562_v5  ;;  %v8820_v47 = vpack.c.bf16 %v3567_v61, %v3563_v15  ;;  %v6462_v60 = vld [vmem:[#allocation11 + $0x198] sm:$0xf0] }
 0x5f0   : > { %v6465_v61 = vor.u32 %v6717_v0, %v6462_v60  ;;  %4218 = vmatpush.bf16.msra.mxu0 %v6273_v1 }
 0x5f1   : > { %v3463_v18 = vpop.f32.mrf.mxu2  ;;  %v3512_v45 = vpop.f32.mrf.mxu3  ;;  %4044 = vmatmul.bf16.gmra.mxu0 %v8818_v3  ;;  %4093 = vmatmul.bf16.gmra.mxu1 %v8820_v47 }
 0x5f2   : > { %v3464_v17 = vadd.f32 %v3463_v18, %v8732_v44  ;;  %v3513_v42 = vadd.f32 %v3512_v45, %v8734_v63  ;;  %v3368_v48 = vpop.f32.mrf.mxu0  ;;  %v3417_v30 = vpop.f32.mrf.mxu1  ;;  %4365 = vmatpush.bf16.msra.mxu3 %v6465_v61 }
 0x5f3   : > { %v3369_v50 = vadd.f32 %v3368_v48, %v8726_v52  ;;  %v3418_v34 = vadd.f32 %v3417_v30, %v8728_v57 }
 0x5f4   : > { %v3568_v6 = vmax.f32 %v3464_v17, 0.0  ;;  %v3569_v37 = vmax.f32 %v3513_v42, 0.0 }
 0x5f5   : > { %v3570_v54 = vmax.f32 %v3369_v50, 0.0  ;;  %v3571_v24 = vmax.f32 %v3418_v34, 0.0  ;;  %v6699_v50 = vld [vmem:[#allocation11 + $0x104] sm:$0xf]  ;;  %v6390_v34 = vld [vmem:[#allocation11 + $0x108] sm:$0xf0] }
 0x5f6   : > { %v8828_v41 = vpack.c.bf16 %v3568_v6, %v3564_v58  ;;  %v8830_v53 = vpack.c.bf16 %v3569_v37, %v3565_v16 }
 0x5f8   : > { %4142 = vmatmul.bf16.gmra.mxu2 %v8828_v41  ;;  %4191 = vmatmul.bf16.gmra.mxu3 %v8830_v53 }
 0x5f9   : > { %v3466_v8 = vpop.f32.mrf.mxu2  ;;  %v3515_v10 = vpop.f32.mrf.mxu3 }
 0x5fa   : > { %v3370_v11 = vpop.f32.mrf.mxu0  ;;  %v3419_v39 = vpop.f32.mrf.mxu1  ;;  %v3467_v20 = vadd.f32 %v3466_v8, %v8732_v44  ;;  %v3516_v43 = vadd.f32 %v3515_v10, %v8734_v63 }
 0x5fb   : > { %v3371_v14 = vadd.f32 %v3370_v11, %v8726_v52  ;;  %v3420_v26 = vadd.f32 %v3419_v39, %v8728_v57  ;;  %v6393_v11 = vor.u32 %v6699_v50, %v6390_v34  ;;  %v6262_v39 = vld [vmem:[#allocation11 + $0x8] sm:$0xf0] }
 0x5fc   : > { %v3572_v48 = vmax.f32 %v3467_v20, 0.0  ;;  %v3573_v30 = vmax.f32 %v3516_v43, 0.0  ;;  %v6265_v38 = vor.u32 %v6667_v62, %v6262_v39 }
 0x5fd   : > { %v3574_v5 = vmax.f32 %v3371_v14, 0.0  ;;  %v3575_v15 = vmax.f32 %v3420_v26, 0.0  ;;  %v6715_v14 = vld [vmem:[#allocation11 + $0x184] sm:$0xf]  ;;  %v6454_v26 = vld [vmem:[#allocation11 + $0x188] sm:$0xf0]  ;;  %4317 = vmatpush.bf16.msra.mxu2 %v6393_v11 }
 0x5fe   : > { %v6457_v46 = vor.u32 %v6715_v14, %v6454_v26  ;;  %4219 = vmatpush.bf16.msra.mxu0 %v6265_v38 }
 0x5ff   : > { %v8838_v29 = vpack.c.bf16 %v3574_v5, %v3570_v54  ;;  %v8840_v13 = vpack.c.bf16 %v3575_v15, %v3571_v24  ;;  %v6683_v5 = vld [vmem:[#allocation11 + $0x84] sm:$0xf]  ;;  %v6326_v15 = vld [vmem:[#allocation11 + $0x88] sm:$0xf0] }
 0x600   : > { %v6329_v60 = vor.u32 %v6683_v5, %v6326_v15  ;;  %4366 = vmatpush.bf16.msra.mxu3 %v6457_v46 }
 0x601   : > { %v3468_v19 = vpop.f32.mrf.mxu2  ;;  %v3517_v22 = vpop.f32.mrf.mxu3  ;;  %4049 = vmatmul.bf16.gmra.mxu0 %v8838_v29  ;;  %4098 = vmatmul.bf16.gmra.mxu1 %v8840_v13 }
 0x602   : > { %v3469_v18 = vadd.f32 %v3468_v19, %v8732_v44  ;;  %v3518_v45 = vadd.f32 %v3517_v22, %v8734_v63  ;;  %v3373_v17 = vpop.f32.mrf.mxu0  ;;  %v3422_v42 = vpop.f32.mrf.mxu1  ;;  %4268 = vmatpush.bf16.msra.mxu1 %v6329_v60 }
 0x603   : > { %v3374_v55 = vadd.f32 %v3373_v17, %v8726_v52  ;;  %v3423_v8 = vadd.f32 %v3422_v42, %v8728_v57 }
 0x604   : > { %v3576_v58 = vmax.f32 %v3469_v18, 0.0  ;;  %v3577_v16 = vmax.f32 %v3518_v45, 0.0 }
 0x605   : > { %v3578_v61 = vmax.f32 %v3374_v55, 0.0  ;;  %v3579_v9 = vmax.f32 %v3423_v8, 0.0 }
 0x606   : > { %v8848_v6 = vpack.c.bf16 %v3576_v58, %v3572_v48  ;;  %v8850_v37 = vpack.c.bf16 %v3577_v16, %v3573_v30 }
 0x608   : > { %4147 = vmatmul.bf16.gmra.mxu2 %v8848_v6  ;;  %4196 = vmatmul.bf16.gmra.mxu3 %v8850_v37 }
 0x609   : > { %v3471_v10 = vpop.f32.mrf.mxu2  ;;  %v3520_v40 = vpop.f32.mrf.mxu3 }
 0x60a   : > { %v3375_v54 = vpop.f32.mrf.mxu0  ;;  %v3424_v24 = vpop.f32.mrf.mxu1  ;;  %v3472_v19 = vadd.f32 %v3471_v10, %v8732_v44  ;;  %v3521_v22 = vadd.f32 %v3520_v40, %v8734_v63 }
 0x60b   : > { %v3376_v1 = vadd.f32 %v3375_v54, %v8726_v52  ;;  %v3425_v0 = vadd.f32 %v3424_v24, %v8728_v57 }
 0x60c   : > { %v3580_v58 = vmax.f32 %v3472_v19, 0.0  ;;  %v3581_v16 = vmax.f32 %v3521_v22, 0.0 }
 0x60d   : > { %v3582_v28 = vmax.f32 %v3376_v1, 0.0  ;;  %v3583_v23 = vmax.f32 %v3425_v0, 0.0 }
 0x60f   : > { %v8858_v20 = vpack.c.bf16 %v3582_v28, %v3578_v61  ;;  %v8860_v43 = vpack.c.bf16 %v3583_v23, %v3579_v9 }
 0x611   : > { %v3473_v18 = vpop.f32.mrf.mxu2  ;;  %v3522_v45 = vpop.f32.mrf.mxu3  ;;  %4054 = vmatmul.bf16.gmra.mxu0 %v8858_v20  ;;  %4103 = vmatmul.bf16.gmra.mxu1 %v8860_v43 }
 0x612   : > { %v3474_v17 = vadd.f32 %v3473_v18, %v8732_v44  ;;  %v3523_v42 = vadd.f32 %v3522_v45, %v8734_v63  ;;  %v3378_v48 = vpop.f32.mrf.mxu0  ;;  %v3427_v30 = vpop.f32.mrf.mxu1 }
 0x613   : > { %v3379_v8 = vadd.f32 %v3378_v48, %v8726_v52  ;;  %v3428_v10 = vadd.f32 %v3427_v30, %v8728_v57 }
 0x614   : > { %v3584_v50 = vmax.f32 %v3474_v17, 0.0  ;;  %v3585_v34 = vmax.f32 %v3523_v42, 0.0 }
 0x615   : > { %v3586_v24 = vmax.f32 %v3379_v8, 0.0  ;;  %v3587_v38 = vmax.f32 %v3428_v10, 0.0 }
 0x616   : > { %v8868_v62 = vpack.c.bf16 %v3584_v50, %v3580_v58  ;;  %v8870_v55 = vpack.c.bf16 %v3585_v34, %v3581_v16 }
 0x618   : > { %4152 = vmatmul.bf16.gmra.mxu2 %v8868_v62  ;;  %4201 = vmatmul.bf16.gmra.mxu3 %v8870_v55 }
 0x619   : > { %v3476_v40 = vpop.f32.mrf.mxu2  ;;  %v3525_v11 = vpop.f32.mrf.mxu3 }
 0x61a   : > { %v3380_v39 = vpop.f32.mrf.mxu0  ;;  %v3429_v14 = vpop.f32.mrf.mxu1  ;;  %v3477_v0 = vadd.f32 %v3476_v40, %v8732_v44  ;;  %v3526_v60 = vadd.f32 %v3525_v11, %v8734_v63 }
 0x61b   : > { %v3381_v26 = vadd.f32 %v3380_v39, %v8726_v52  ;;  %v3430_v54 = vadd.f32 %v3429_v14, %v8728_v57 }
 0x61c   : > { %v3588_v28 = vmax.f32 %v3477_v0, 0.0  ;;  %v3589_v23 = vmax.f32 %v3526_v60, 0.0 }
 0x61d   : > { %v3590_v46 = vmax.f32 %v3381_v26, 0.0  ;;  %v3591_v5 = vmax.f32 %v3430_v54, 0.0 }
 0x61f   : > { %v8878_v15 = vpack.c.bf16 %v3590_v46, %v3586_v24  ;;  %v8880_v1 = vpack.c.bf16 %v3591_v5, %v3587_v38 }
 0x621   : > { %v3478_v61 = vpop.f32.mrf.mxu2  ;;  %v3527_v9 = vpop.f32.mrf.mxu3  ;;  %4059 = vmatmul.bf16.gmra.mxu0 %v8878_v15  ;;  %4108 = vmatmul.bf16.gmra.mxu1 %v8880_v1 }
 0x622   : > { %v3479_v52 = vadd.f32 %v3478_v61, %v8732_v44  ;;  %v3528_v57 = vadd.f32 %v3527_v9, %v8734_v63  ;;  %v8897_v44 = vld [vmem:[%s9953_s5] sm:$0x3] }
 0x623   : > { %v8902_v63 = vperm.slane %v8897_v44, 0 }
 0x624   : > { %v3592_v19 = vmax.f32 %v3479_v52, 0.0  ;;  %v3593_v22 = vmax.f32 %v3528_v57, 0.0 }
 0x626   : > { %v8888_v18 = vpack.c.bf16 %v3592_v19, %v3588_v28  ;;  %v8890_v45 = vpack.c.bf16 %v3593_v22, %v3589_v23 }
 0x628   : > { %4157 = vmatmul.bf16.gmra.mxu2 %v8888_v18  ;;  %4206 = vmatmul.bf16.gmra.mxu3 %v8890_v45 }
 0x62e   : > { %v4025_v17 = vpop.f32.mrf.mxu0  ;;  %v4074_v42 = vpop.f32.mrf.mxu1 }
 0x62f   : > { %v4026_v48 = vadd.f32 %v4025_v17, %v8902_v63 }
 0x631   : > { %4220 = vmatmul.bf16.vlgmr.msra.gmra.mxu0 %v8738_v7  ;;  %4269 = vmatmul.bf16.vlgmr.msra.gmra.mxu1 %v8740_v21  ;;  %v4075_v16 = vadd.f32 %v4074_v42, %v4026_v48 }
 0x636   : > { %v4027_v30 = vpop.f32.mrf.mxu0  ;;  %v4076_v58 = vpop.f32.mrf.mxu1 }
 0x637   : > { %v4028_v10 = vadd.f32 %v4027_v30, %v8902_v63 }
 0x638   : > { %4318 = vmatmul.bf16.vlgmr.msra.gmra.mxu2 %v8748_v35  ;;  %4367 = vmatmul.bf16.vlgmr.msra.gmra.mxu3 %v8750_v49 }
 0x639   : > { %v4077_v39 = vadd.f32 %v4076_v58, %v4028_v10 }
 0x63b   : > { %v4123_v50 = vpop.f32.mrf.mxu2  ;;  %v4172_v34 = vpop.f32.mrf.mxu3 }
 0x63c   : > { %v4124_v8 = vadd.f32 %v4123_v50, %v4075_v16 }
 0x63e   : > { %v4173_v7 = vadd.f32 %v4172_v34, %v4124_v8  ;;  %v4030_v40 = vpop.f32.mrf.mxu0  ;;  %v4079_v21 = vpop.f32.mrf.mxu1 }
 0x63f   : > { %v4031_v24 = vadd.f32 %v4030_v40, %v8902_v63 }
 0x640   : > { %v4408_v11 = vand.u32 2147483647, %v4173_v7  ;;  %vm4600_vm0 = vcmp.ge.f32.partialorder %v4173_v7, 0.0 }
 0x641   : > { %4225 = vmatmul.bf16.gmra.mxu0 %v8758_v33  ;;  %4274 = vmatmul.bf16.gmra.mxu1 %v8760_v51  ;;  %v4080_v33 = vadd.f32 %v4079_v21, %v4031_v24 }
 0x642   : > { %v4440_v14 = vsub.f32 0.0, %v4408_v11 }
 0x643   : > { %v4125_v26 = vpop.f32.mrf.mxu2  ;;  %v4174_v35 = vpop.f32.mrf.mxu3 }
 0x644   : > { %v4472_v54 = vmul.f32 1.442695, %v4440_v14  ;;  %v4126_v49 = vadd.f32 %v4125_v26, %v4077_v39 }
 0x646   : > { %6928 = vpow2.f32 %v4472_v54  ;;  %v8911_v38 = vadd.f32 %v4174_v35, %v4126_v49  ;;  %v4032_v46 = vpop.f32.mrf.mxu0  ;;  %v4081_v5 = vpop.f32.mrf.mxu1 }
 0x647   : > { %v4033_v23 = vadd.f32 %v4032_v46, %v8902_v63 }
 0x648   : > { %v4410_v0 = vand.u32 2147483647, %v8911_v38  ;;  %4323 = vmatmul.bf16.gmra.mxu2 %v8768_v56  ;;  %4372 = vmatmul.bf16.gmra.mxu3 %v8770_v59  ;;  %vm4602_vm2 = vcmp.ge.f32.partialorder %v8911_v38, 0.0 }
 0x649   : > { %v4082_v59 = vadd.f32 %v4081_v5, %v4033_v23 }
 0x64a   : > { %v4442_v51 = vsub.f32 0.0, %v4410_v0 }
 0x64b   : > { %v4128_v60 = vpop.f32.mrf.mxu2  ;;  %v4177_v61 = vpop.f32.mrf.mxu3 }
 0x64c   : > { %v6929_v9 = vpop.eup %6928  ;;  %v4476_v52 = vmul.f32 1.442695, %v4442_v51  ;;  %v4129_v57 = vadd.f32 %v4128_v60, %v4080_v33 }
 0x64d   : > { %v4536_v28 = vadd.f32 1.0, %v6929_v9 }
 0x64e   : > { %6930 = vpow2.f32 %v4476_v52  ;;  %v8917_v19 = vadd.f32 %v4177_v61, %v4129_v57  ;;  %v4035_v22 = vpop.f32.mrf.mxu0  ;;  %v4084_v17 = vpop.f32.mrf.mxu1 }
 0x64f   : > { %6932 = vrcp.f32 %v4536_v28  ;;  %v4036_v40 = vadd.f32 %v4035_v22, %v8902_v63 }
 0x650   : > { %v4412_v56 = vand.u32 2147483647, %v8917_v19  ;;  %vm4604_vm4 = vcmp.ge.f32.partialorder %v8917_v19, 0.0 }
 0x651   : > { %4230 = vmatmul.bf16.gmra.mxu0 %v8778_v12  ;;  %4279 = vmatmul.bf16.gmra.mxu1 %v8780_v4  ;;  %v4085_v26 = vadd.f32 %v4084_v17, %v4036_v40 }
 0x652   : > { %v4444_v42 = vsub.f32 0.0, %v4412_v56 }
 0x653   : > { %v4130_v48 = vpop.f32.mrf.mxu2  ;;  %v4179_v30 = vpop.f32.mrf.mxu3 }
 0x654   : > { %v6931_v58 = vpop.eup %6930  ;;  %v4480_v16 = vmul.f32 1.442695, %v4444_v42  ;;  %v4131_v50 = vadd.f32 %v4130_v48, %v4082_v59 }
 0x655   : > { %v6933_v34 = vpop.eup %6932  ;;  %v4538_v8 = vadd.f32 1.0, %v6931_v58 }
 0x656   : > { %v4632_v10 = vmul.f32 %v6933_v34, %v6929_v9  ;;  %6934 = vpow2.f32 %v4480_v16  ;;  %v8923_v21 = vadd.f32 %v4179_v30, %v4131_v50  ;;  %v4037_v11 = vpop.f32.mrf.mxu0  ;;  %v4086_v39 = vpop.f32.mrf.mxu1 }
 0x657   : > { %6936 = vrcp.f32 %v4538_v8 }
 0x658   : > { %v8925_v12 = vsel %vm4600_vm0, %v6933_v34, %v4632_v10  ;;  %v4414_v4 = vand.u32 2147483647, %v8923_v21  ;;  %4328 = vmatmul.bf16.gmra.mxu2 %v8788_v36  ;;  %4377 = vmatmul.bf16.gmra.mxu3 %v8790_v27  ;;  %v4038_v27 = vadd.f32 %v4037_v11, %v8902_v63  ;;  %vm4606_vm5 = vcmp.ge.f32.partialorder %v8923_v21, 0.0 }
 0x659   : > { %v8932_v14 = vmul.f32 %v8925_v12, %v8925_v12 }
 0x65a   : > { %v4446_v35 = vsub.f32 0.0, %v4414_v4  ;;  %v4087_v23 = vadd.f32 %v4086_v39, %v4038_v27 }
 0x65b   : > { %v4728_v54 = vsub.f32 0.0, %v8932_v14  ;;  %v4133_v49 = vpop.f32.mrf.mxu2  ;;  %v4182_v24 = vpop.f32.mrf.mxu3 }
 0x65c   : > { %v6935_v7 = vpop.eup %6934  ;;  %v4484_v46 = vmul.f32 1.442695, %v4446_v35  ;;  %v4134_v5 = vadd.f32 %v4133_v49, %v4085_v26 }
 0x65d   : > { %v6937_v0 = vpop.eup %6936  ;;  %v4760_v33 = vmul.f32 1.442695, %v4728_v54  ;;  %v4540_v36 = vadd.f32 1.0, %v6935_v7 }
 0x65e   : > { %v4634_v51 = vmul.f32 %v6937_v0, %v6931_v58  ;;  %6938 = vpow2.f32 %v4484_v46  ;;  %v8938_v60 = vadd.f32 %v4182_v24, %v4134_v5  ;;  %v4040_v61 = vpop.f32.mrf.mxu0  ;;  %v4089_v9 = vpop.f32.mrf.mxu1 }
 0x65f   : > { %6940 = vpow2.f32 %v4760_v33 }
 0x660   : > { %v8941_v52 = vsel %vm4602_vm2, %v6937_v0, %v4634_v51  ;;  %6942 = vrcp.f32 %v4540_v36  ;;  %v4416_v57 = vand.u32 2147483647, %v8938_v60  ;;  %vm4608_vm6 = vcmp.ge.f32.partialorder %v8938_v60, 0.0 }
 0x661   : > { %v8946_v28 = vmul.f32 %v8941_v52, %v8941_v52  ;;  %4235 = vmatmul.bf16.gmra.mxu0 %v8798_v25  ;;  %4284 = vmatmul.bf16.gmra.mxu1 %v8800_v32  ;;  %v4041_v25 = vadd.f32 %v4040_v61, %v8902_v63 }
 0x662   : > { %v4448_v22 = vsub.f32 0.0, %v4416_v57 }
 0x663   : > { %v4730_v17 = vsub.f32 0.0, %v8946_v28  ;;  %v4135_v56 = vpop.f32.mrf.mxu2  ;;  %v4184_v59 = vpop.f32.mrf.mxu3  ;;  %v4090_v35 = vadd.f32 %v4089_v9, %v4041_v25 }
 0x664   : > { %v6939_v38 = vpop.eup %6938  ;;  %v4488_v42 = vmul.f32 1.442695, %v4448_v22  ;;  %v4136_v48 = vadd.f32 %v4135_v56, %v4087_v23 }
 0x665   : > { %v6941_v30 = vpop.eup %6940  ;;  %v4764_v58 = vmul.f32 1.442695, %v4730_v17  ;;  %v4542_v16 = vadd.f32 1.0, %v6939_v38 }
 0x666   : > { %v6943_v50 = vpop.eup %6942  ;;  %v4824_v34 = vsub.f32 1.0, %v6941_v30  ;;  %6944 = vpow2.f32 %v4488_v42  ;;  %v8954_v32 = vadd.f32 %v4184_v59, %v4136_v48  ;;  %v4042_v8 = vpop.f32.mrf.mxu0  ;;  %v4984_v30 = vld [vmem:[%s7888_s13] sm:$0xff] }
 0x667   : > { %v4091_v10 = vpop.f32.mrf.mxu1  ;;  %6946 = vpow2.f32 %v4764_v58  ;;  %v4636_v40 = vmul.f32 %v6943_v50, %v6935_v7 }
 0x668   : > { %v4856_v11 = vadd.f32 1e-20, %v4824_v34  ;;  %6948 = vrcp.f32 %v4542_v16  ;;  %v4418_v39 = vand.u32 2147483647, %v8954_v32  ;;  %4333 = vmatmul.bf16.gmra.mxu2 %v8808_v31  ;;  %4382 = vmatmul.bf16.gmra.mxu3 %v8810_v2  ;;  %v4043_v2 = vadd.f32 %v4042_v8, %v8902_v63 }
 0x669   : > { %v8960_v4 = vsel %vm4604_vm4, %v6943_v50, %v4636_v40  ;;  %vm4610_vm7 = vcmp.ge.f32.partialorder %v8954_v32, 0.0 }
 0x66a   : > { %6950 = vlog2.f32 %v4856_v11  ;;  %v8964_v26 = vmul.f32 %v8960_v4, %v8960_v4  ;;  %v4450_v49 = vsub.f32 0.0, %v4418_v39  ;;  %v4092_v58 = vadd.f32 %v4091_v10, %v4043_v2 }
 0x66b   : > { %v4138_v24 = vpop.f32.mrf.mxu2  ;;  %v4187_v7 = vpop.f32.mrf.mxu3 }
 0x66c   : > { %v6945_v46 = vpop.eup %6944  ;;  %v4732_v19 = vsub.f32 0.0, %v8964_v26  ;;  %v4492_v5 = vmul.f32 1.442695, %v4450_v49  ;;  %v4139_v0 = vadd.f32 %v4138_v24, %v4090_v35 }
 0x66d   : > { %v6947_v33 = vpop.eup %6946  ;;  %v4544_v31 = vadd.f32 1.0, %v6945_v46 }
 0x66e   : > { %v6949_v36 = vpop.eup %6948  ;;  %v4826_v51 = vsub.f32 1.0, %v6947_v33  ;;  %v4768_v27 = vmul.f32 1.442695, %v4732_v19  ;;  %6952 = vpow2.f32 %v4492_v5  ;;  %v8970_v61 = vadd.f32 %v4187_v7, %v4139_v0  ;;  %v4045_v9 = vpop.f32.mrf.mxu0 }
 0x66f   : > { %v4094_v57 = vpop.f32.mrf.mxu1  ;;  %v4638_v23 = vmul.f32 %v6949_v36, %v6939_v38  ;;  %6954 = vrcp.f32 %v4544_v31  ;;  %v4046_v35 = vadd.f32 %v4045_v9, %v8902_v63  ;;  %v4986_v9 = vld [vmem:[%s7888_s13 + $0x10] sm:$0xff] }
 0x670   : > { %v6951_v22 = vpop.eup %6950  ;;  %v4858_v56 = vadd.f32 1e-20, %v4826_v51  ;;  %6956 = vpow2.f32 %v4768_v27  ;;  %v4420_v59 = vand.u32 2147483647, %v8970_v61  ;;  %vm4612_vm8 = vcmp.ge.f32.partialorder %v8970_v61, 0.0  ;;  %v4990_v61 = vld [vmem:[%s7888_s13 + $0x30] sm:$0xff] }
 0x671   : > { %v4889_v42 = vmul.f32 0.6931472, %v6951_v22  ;;  %v8974_v48 = vsel %vm4606_vm5, %v6949_v36, %v4638_v23  ;;  %4240 = vmatmul.bf16.gmra.mxu0 %v8818_v3  ;;  %4289 = vmatmul.bf16.gmra.mxu1 %v8820_v47  ;;  %v4095_v60 = vadd.f32 %v4094_v57, %v4046_v35 }
 0x672   : > { %6958 = vlog2.f32 %v4858_v56  ;;  %v8981_v38 = vmul.f32 %v8974_v48, %v8974_v48  ;;  %v4452_v16 = vsub.f32 0.0, %v4420_v59 }
 0x673   : > { %v4952_v21 = vsub.f32 %v4889_v42, %v4728_v54  ;;  %v4140_v50 = vpop.f32.mrf.mxu2  ;;  %v4189_v34 = vpop.f32.mrf.mxu3 }
 0x674   : > { %v6953_v25 = vpop.eup %6952  ;;  %v4734_v8 = vsub.f32 0.0, %v8981_v38  ;;  %v4496_v40 = vmul.f32 1.442695, %v4452_v16  ;;  %v4141_v3 = vadd.f32 %v4140_v50, %v4092_v58 }
 0x675   : > { %v6955_v11 = vpop.eup %6954  ;;  %v8986_v47 = vadd.f32 %v4984_v30, %v4952_v21  ;;  %v4546_v39 = vadd.f32 1.0, %v6953_v25 }
 0x676   : > { %v6957_v49 = vpop.eup %6956  ;;  %v4772_v10 = vmul.f32 1.442695, %v4734_v8  ;;  %v4640_v24 = vmul.f32 %v6955_v11, %v6945_v46  ;;  %6960 = vpow2.f32 %v4496_v40  ;;  %v8991_v14 = vadd.f32 %v4189_v34, %v4141_v3  ;;  %v4047_v54 = vpop.f32.mrf.mxu0 }
 0x677   : > { %v4096_v7 = vpop.f32.mrf.mxu1  ;;  %v5048_v5 = vand.u32 2147483647, %v8986_v47  ;;  %v4828_v0 = vsub.f32 1.0, %v6957_v49  ;;  %6962 = vrcp.f32 %v4546_v39  ;;  %v4048_v28 = vadd.f32 %v4047_v54, %v8902_v63 }
 0x678   : > { %v6959_v33 = vpop.eup %6958  ;;  %6964 = vpow2.f32 %v4772_v10  ;;  %v8995_v31 = vsel %vm4608_vm6, %v6955_v11, %v4640_v24  ;;  %v4422_v2 = vand.u32 2147483647, %v8991_v14  ;;  %4338 = vmatmul.bf16.gmra.mxu2 %v8828_v41  ;;  %4387 = vmatmul.bf16.gmra.mxu3 %v8830_v53  ;;  %vm5240_vm9 = vcmp.ge.f32.partialorder %v8986_v47, 0.0 }
 0x679   : > { %v5080_v46 = vsub.f32 0.0, %v5048_v5  ;;  %v4893_v36 = vmul.f32 0.6931472, %v6959_v33  ;;  %v4860_v51 = vadd.f32 1e-20, %v4828_v0  ;;  %v9002_v27 = vmul.f32 %v8995_v31, %v8995_v31 }
 0x67a   : > { %v4454_v23 = vsub.f32 0.0, %v4422_v2  ;;  %v4097_v33 = vadd.f32 %v4096_v7, %v4048_v28  ;;  %vm4614_vm10 = vcmp.ge.f32.partialorder %v8991_v14, 0.0 }
 0x67b   : > { %v5112_v22 = vmul.f32 1.442695, %v5080_v46  ;;  %v4954_v56 = vsub.f32 %v4893_v36, %v4730_v17  ;;  %6966 = vlog2.f32 %v4860_v51  ;;  %v4736_v59 = vsub.f32 0.0, %v9002_v27  ;;  %v4143_v41 = vpop.f32.mrf.mxu2  ;;  %v4192_v42 = vpop.f32.mrf.mxu3  ;;  %v4988_v36 = vld [vmem:[%s7888_s13 + $0x20] sm:$0xff] }
 0x67c   : > { %v6961_v53 = vpop.eup %6960  ;;  %v4500_v30 = vmul.f32 1.442695, %v4454_v23  ;;  %v4144_v58 = vadd.f32 %v4143_v41, %v4095_v60 }
 0x67d   : > { %v6963_v16 = vpop.eup %6962  ;;  %6968 = vpow2.f32 %v5112_v22  ;;  %v9008_v21 = vadd.f32 %v4986_v9, %v4954_v56  ;;  %v4776_v57 = vmul.f32 1.442695, %v4736_v59  ;;  %v4548_v50 = vadd.f32 1.0, %v6961_v53 }
 0x67e   : > { %v6965_v34 = vpop.eup %6964  ;;  %v4642_v40 = vmul.f32 %v6963_v16, %v6953_v25  ;;  %6970 = vpow2.f32 %v4500_v30  ;;  %v9013_v17 = vadd.f32 %v4192_v42, %v4144_v58  ;;  %v4050_v3 = vpop.f32.mrf.mxu0 }
 0x67f   : > { %v4099_v11 = vpop.f32.mrf.mxu1  ;;  %v5050_v39 = vand.u32 2147483647, %v9008_v21  ;;  %v4830_v35 = vsub.f32 1.0, %v6965_v34  ;;  %6972 = vpow2.f32 %v4776_v57  ;;  %vm5242_vm11 = vcmp.ge.f32.partialorder %v9008_v21, 0.0 }
 0x680   : > { %v9017_v49 = vsel %vm4610_vm7, %v6963_v16, %v4642_v40  ;;  %6974 = vrcp.f32 %v4548_v50  ;;  %v4424_v10 = vand.u32 2147483647, %v9013_v17  ;;  %vm4616_vm12 = vcmp.ge.f32.partialorder %v9013_v17, 0.0 }
 0x681   : > { %v6967_v25 = vpop.eup %6966  ;;  %v5082_v24 = vsub.f32 0.0, %v5050_v39  ;;  %v4862_v5 = vadd.f32 1e-20, %v4830_v35  ;;  %v9022_v54 = vmul.f32 %v9017_v49, %v9017_v49  ;;  %4245 = vmatmul.bf16.gmra.mxu0 %v8838_v29  ;;  %4294 = vmatmul.bf16.gmra.mxu1 %v8840_v13 }
 0x682   : > { %v4897_v0 = vmul.f32 0.6931472, %v6967_v25  ;;  %v4456_v2 = vsub.f32 0.0, %v4424_v10 }
 0x683   : > { %v6969_v32 = vpop.eup %6968  ;;  %v5116_v46 = vmul.f32 1.442695, %v5082_v24  ;;  %6976 = vlog2.f32 %v4862_v5  ;;  %v4738_v51 = vsub.f32 0.0, %v9022_v54  ;;  %v4145_v9 = vpop.f32.mrf.mxu2 }
 0x684   : > { %v4194_v60 = vpop.f32.mrf.mxu3  ;;  %v6971_v23 = vpop.eup %6970  ;;  %v5176_v22 = vadd.f32 1.0, %v6969_v32  ;;  %v4956_v56 = vsub.f32 %v4897_v0, %v4732_v19  ;;  %v4146_v41 = vadd.f32 %v4145_v9, %v4097_v33  ;;  %v4504_v42 = vmul.f32 1.442695, %v4456_v2 }
 0x685   : > { %v6973_v29 = vpop.eup %6972  ;;  %6978 = vpow2.f32 %v5116_v46  ;;  %v4780_v13 = vmul.f32 1.442695, %v4738_v51  ;;  %v4550_v7 = vadd.f32 1.0, %v6971_v23  ;;  %v4051_v19 = vadd.f32 %v4050_v3, %v8902_v63 }
 0x686   : > { %v6975_v30 = vpop.eup %6974  ;;  %6980 = vrcp.f32 %v5176_v22  ;;  %v9032_v58 = vadd.f32 %v4988_v36, %v4956_v56  ;;  %v4832_v16 = vsub.f32 1.0, %v6973_v29  ;;  %v9034_v57 = vadd.f32 %v4194_v60, %v4146_v41  ;;  %v4052_v50 = vpop.f32.mrf.mxu0 }
 0x687   : > { %v9036_v34 = vpop.f32.mrf.mxu1  ;;  %6982 = vpow2.f32 %v4780_v13  ;;  %v4644_v26 = vmul.f32 %v6975_v30, %v6961_v53  ;;  %v4053_v56 = vadd.f32 %v4052_v50, %v8902_v63 }
 0x688   : > { %v5052_v40 = vand.u32 2147483647, %v9032_v58  ;;  %v4864_v28 = vadd.f32 1e-20, %v4832_v16  ;;  %6984 = vrcp.f32 %v4550_v7  ;;  %4343 = vmatmul.bf16.gmra.mxu2 %v8848_v6  ;;  %4392 = vmatmul.bf16.gmra.mxu3 %v8850_v37  ;;  %v4426_v10 = vand.u32 2147483647, %v9034_v57 }
 0x689   : > { %v6977_v39 = vpop.eup %6976  ;;  %v9043_v35 = vsel %vm4612_vm8, %v6975_v30, %v4644_v26  ;;  %6986 = vpow2.f32 %v4504_v42  ;;  %v4100_v6 = vadd.f32 %v4099_v11, %v4051_v19  ;;  %vm5244_vm13 = vcmp.ge.f32.partialorder %v9032_v58, 0.0 }
 0x68a   : > { %v5084_v53 = vsub.f32 0.0, %v5052_v40  ;;  %v4901_v25 = vmul.f32 0.6931472, %v6977_v39  ;;  %6988 = vlog2.f32 %v4864_v28  ;;  %v9048_v3 = vmul.f32 %v9043_v35, %v9043_v35 }
 0x68b   : > { %v6979_v24 = vpop.eup %6978  ;;  %v4458_v5 = vsub.f32 0.0, %v4426_v10  ;;  %v4148_v37 = vpop.f32.mrf.mxu2  ;;  %vm4618_vm14 = vcmp.ge.f32.partialorder %v9034_v57, 0.0 }
 0x68c   : > { %v4197_v0 = vpop.f32.mrf.mxu3  ;;  %v6981_v33 = vpop.eup %6980  ;;  %v5178_v2 = vadd.f32 1.0, %v6979_v24  ;;  %v5120_v46 = vmul.f32 1.442695, %v5084_v53  ;;  %v4958_v36 = vsub.f32 %v4901_v25, %v4734_v8  ;;  %v4740_v9 = vsub.f32 0.0, %v9048_v3 }
 0x68d   : > { %v6983_v60 = vpop.eup %6982  ;;  %v5272_v22 = vmul.f32 %v6981_v33, %v6969_v32  ;;  %v4149_v41 = vadd.f32 %v4148_v37, %v4100_v6  ;;  %v4508_v28 = vmul.f32 1.442695, %v4458_v5 }
 0x68e   : > { %v6985_v29 = vpop.eup %6984  ;;  %6990 = vrcp.f32 %v5178_v2  ;;  %v9057_v11 = vadd.f32 %v4990_v61, %v4958_v36  ;;  %v4834_v13 = vsub.f32 1.0, %v6983_v60  ;;  %v4784_v7 = vmul.f32 1.442695, %v4740_v9  ;;  %v4055_v42 = vpop.f32.mrf.mxu0 }
 0x68f   : > { %v9061_v38 = vpop.f32.mrf.mxu1  ;;  %v9063_v8 = vpop.eup %6986  ;;  %v5304_v32 = vsel %vm5240_vm9, %v6981_v33, %v5272_v22  ;;  %6992 = vpow2.f32 %v5120_v46  ;;  %v4646_v30 = vmul.f32 %v6985_v29, %v6971_v23  ;;  %v9067_v16 = vadd.f32 %v4197_v0, %v4149_v41  ;;  %v4992_v23 = vld [vmem:[%s7888_s13 + $0x40] sm:$0xff] }
 0x690   : > { %v6989_v50 = vpop.eup %6988  ;;  %v5336_v26 = vmul.f32 %v5304_v32, %v8925_v12  ;;  %v5054_v19 = vand.u32 2147483647, %v9057_v11  ;;  %v4866_v40 = vadd.f32 1e-20, %v4834_v13  ;;  %6994 = vpow2.f32 %v4784_v7 }
 0x691   : > { %v4905_v39 = vmul.f32 0.6931472, %v6989_v50  ;;  %v9073_v10 = vsel %vm4614_vm10, %v6985_v29, %v4646_v30  ;;  %v4552_v47 = vadd.f32 1.0, %v9063_v8  ;;  %4250 = vmatmul.bf16.gmra.mxu0 %v8858_v20  ;;  %4299 = vmatmul.bf16.gmra.mxu1 %v8860_v43  ;;  %v4428_v14 = vand.u32 2147483647, %v9067_v16 }
 0x692   : > { %5368 = vst [vmem:[%s9079_s10] sm:$0xff] %v5336_v26  ;;  %v5086_v12 = vsub.f32 0.0, %v5054_v19  ;;  %6996 = vlog2.f32 %v4866_v40  ;;  %v9085_v53 = vmul.f32 %v9073_v10, %v9073_v10  ;;  %v4102_v43 = vadd.f32 %v9036_v34, %v4053_v56  ;;  %v4994_v40 = vld [vmem:[%s7888_s13 + $0x50] sm:$0xff] }
 0x693   : > { %v4960_v20 = vsub.f32 %v4905_v39, %v4736_v59  ;;  %6998 = vrcp.f32 %v4552_v47  ;;  %v4150_v25 = vpop.f32.mrf.mxu2  ;;  %v4460_v0 = vsub.f32 0.0, %v4428_v14  ;;  %v4056_v36 = vadd.f32 %v4055_v42, %v8902_v63 }
 0x694   : > { %v4199_v61 = vpop.f32.mrf.mxu3  ;;  %v6991_v6 = vpop.eup %6990  ;;  %v5124_v5 = vmul.f32 1.442695, %v5086_v12  ;;  %v4742_v37 = vsub.f32 0.0, %v9085_v53  ;;  %7000 = vpow2.f32 %v4508_v28  ;;  %v4151_v60 = vadd.f32 %v4150_v25, %v4102_v43 }
 0x695   : > { %v6993_v33 = vpop.eup %6992  ;;  %v5274_v2 = vmul.f32 %v6991_v6, %v6979_v24  ;;  %v9093_v46 = vadd.f32 %v4992_v23, %v4960_v20  ;;  %v4512_v34 = vmul.f32 1.442695, %v4460_v0  ;;  %v4105_v39 = vadd.f32 %v9061_v38, %v4056_v36 }
 0x696   : > { %v5180_v27 = vadd.f32 1.0, %v6993_v33  ;;  %7002 = vpow2.f32 %v5124_v5  ;;  %v4788_v59 = vmul.f32 1.442695, %v4742_v37  ;;  %v4057_v22 = vpop.f32.mrf.mxu0  ;;  %v6995_v41 = vpop.eup %6994  ;;  %v9103_v13 = vadd.f32 %v4199_v61, %v4151_v60 }
 0x697   : > { %v9098_v56 = vpop.f32.mrf.mxu1  ;;  %v5306_v29 = vsel %vm5242_vm11, %v6991_v6, %v5274_v2  ;;  %v5056_v24 = vand.u32 2147483647, %v9093_v46  ;;  %v4836_v32 = vsub.f32 1.0, %v6995_v41  ;;  %v4058_v6 = vadd.f32 %v4057_v22, %v8902_v63 }
 0x698   : > { %v6997_v7 = vpop.eup %6996  ;;  %v5338_v42 = vmul.f32 %v5306_v29, %v8941_v52  ;;  %7004 = vrcp.f32 %v5180_v27  ;;  %4348 = vmatmul.bf16.gmra.mxu2 %v8868_v62  ;;  %4397 = vmatmul.bf16.gmra.mxu3 %v8870_v55  ;;  %v4430_v26 = vand.u32 2147483647, %v9103_v13  ;;  %vm5246_vm15 = vcmp.ge.f32.partialorder %v9057_v11, 0.0 }
 0x699   : > { %v6999_v30 = vpop.eup %6998  ;;  %v5088_v21 = vsub.f32 0.0, %v5056_v24  ;;  %v4909_v50 = vmul.f32 0.6931472, %v6997_v7  ;;  %7006 = vpow2.f32 %v4788_v59  ;;  %v4868_v28 = vadd.f32 1e-20, %v4836_v32 }
 0x69a   : > { %v9110_v19 = vpop.eup %7000  ;;  %5370 = vst [vmem:[%s9079_s10 + $0x10] sm:$0xff] %v5338_v42  ;;  %v4648_v52 = vmul.f32 %v6999_v30, %v9063_v8  ;;  %7008 = vpow2.f32 %v4512_v34  ;;  %v4462_v12 = vsub.f32 0.0, %v4430_v26  ;;  %v4107_v42 = vadd.f32 %v9098_v56, %v4058_v6 }
 0x69b   : > { %v5128_v47 = vmul.f32 1.442695, %v5088_v21  ;;  %v4962_v62 = vsub.f32 %v4909_v50, %v4738_v51  ;;  %v4554_v55 = vadd.f32 1.0, %v9110_v19  ;;  %v4153_v23 = vpop.f32.mrf.mxu2  ;;  %7010 = vlog2.f32 %v4868_v28 }
 0x69c   : > { %v4202_v14 = vpop.f32.mrf.mxu3  ;;  %v7003_v20 = vpop.eup %7002  ;;  %v9121_v43 = vsel %vm4616_vm12, %v6999_v30, %v4648_v52  ;;  %v4154_v25 = vadd.f32 %v4153_v23, %v4105_v39  ;;  %v4516_v38 = vmul.f32 1.442695, %v4462_v12  ;;  %v4996_v52 = vld [vmem:[%s7888_s13 + $0x60] sm:$0xff]  ;;  %vm4620_vm1 = vcmp.ge.f32.partialorder %v9067_v16, 0.0 }
 0x69d   : > { %v5182_v8 = vadd.f32 1.0, %v7003_v20  ;;  %7012 = vpow2.f32 %v5128_v47  ;;  %v9123_v61 = vadd.f32 %v4994_v40, %v4962_v62  ;;  %v9127_v54 = vmul.f32 %v9121_v43, %v9121_v43 }
 0x69e   : > { %v7005_v51 = vpop.eup %7004  ;;  %7014 = vrcp.f32 %v4554_v55  ;;  %v9130_v5 = vadd.f32 %v4202_v14, %v4154_v25  ;;  %v4060_v0 = vpop.f32.mrf.mxu0  ;;  %vm5248_vm3 = vcmp.ge.f32.partialorder %v9093_v46, 0.0  ;;  %vm4622_vm0 = vcmp.ge.f32.partialorder %v9103_v13, 0.0 }
 0x69f   : > { %v9132_v17 = vpop.f32.mrf.mxu1  ;;  %v7007_v2 = vpop.eup %7006  ;;  %v5276_v36 = vmul.f32 %v7005_v51, %v6993_v33  ;;  %7016 = vrcp.f32 %v5182_v8  ;;  %v5058_v60 = vand.u32 2147483647, %v9123_v61  ;;  %v4744_v34 = vsub.f32 0.0, %v9127_v54 }
 0x6a0   : > { %v7009_v27 = vpop.eup %7008  ;;  %v4838_v59 = vsub.f32 1.0, %v7007_v2  ;;  %7018 = vpow2.f32 %v4516_v38  ;;  %v4432_v41 = vand.u32 2147483647, %v9130_v5  ;;  %v4061_v23 = vadd.f32 %v4060_v0, %v8902_v63 }
 0x6a1   : > { %v5308_v22 = vsel %vm5244_vm13, %v7005_v51, %v5276_v36  ;;  %v5090_v29 = vsub.f32 0.0, %v5058_v60  ;;  %v4556_v24 = vadd.f32 1.0, %v7009_v27  ;;  %4255 = vmatmul.bf16.gmra.mxu0 %v8878_v15  ;;  %4304 = vmatmul.bf16.gmra.mxu1 %v8880_v1  ;;  %v7011_v58 = vpop.eup %7010  ;;  %v4792_v26 = vmul.f32 1.442695, %v4744_v34 }
 0x6a2   : > { %v5340_v33 = vmul.f32 %v5308_v22, %v8960_v4  ;;  %v4870_v7 = vadd.f32 1e-20, %v4838_v59  ;;  %v4464_v32 = vsub.f32 0.0, %v4432_v41  ;;  %v4913_v50 = vmul.f32 0.6931472, %v7011_v58  ;;  %v4998_v58 = vld [vmem:[%s7888_s13 + $0x70] sm:$0xff] }
 0x6a3   : > { %v7013_v30 = vpop.eup %7012  ;;  %v5132_v21 = vmul.f32 1.442695, %v5090_v29  ;;  %7020 = vrcp.f32 %v4556_v24  ;;  %v4155_v40 = vpop.f32.mrf.mxu2  ;;  %v4110_v41 = vadd.f32 %v9132_v17, %v4061_v23  ;;  %vm5250_vm2 = vcmp.ge.f32.partialorder %v9123_v61, 0.0 }
 0x6a4   : > { %v4204_v28 = vpop.f32.mrf.mxu3  ;;  %v7015_v15 = vpop.eup %7014  ;;  %5372 = vst [vmem:[%s9079_s10 + $0x20] sm:$0xff] %v5340_v33  ;;  %v5184_v1 = vadd.f32 1.0, %v7013_v30  ;;  %7022 = vlog2.f32 %v4870_v7  ;;  %v4520_v39 = vmul.f32 1.442695, %v4464_v32  ;;  %v4156_v4 = vadd.f32 %v4155_v40, %v4107_v42 }
 0x6a5   : > { %v7017_v47 = vpop.eup %7016  ;;  %7024 = vpow2.f32 %v5132_v21  ;;  %v4964_v56 = vsub.f32 %v4913_v50, %v4740_v9  ;;  %v4650_v62 = vmul.f32 %v7015_v15, %v9110_v19  ;;  %vm4624_vm4 = vcmp.ge.f32.partialorder %v9130_v5, 0.0 }
 0x6a6   : > { %v7019_v55 = vpop.eup %7018  ;;  %v5278_v12 = vmul.f32 %v7017_v47, %v7003_v20  ;;  %7026 = vrcp.f32 %v5184_v1  ;;  %v9152_v14 = vadd.f32 %v4204_v28, %v4156_v4  ;;  %v4062_v25 = vpop.f32.mrf.mxu0 }
 0x6a7   : > { %v9154_v8 = vpop.f32.mrf.mxu1  ;;  %v9156_v51 = vadd.f32 %v4996_v52, %v4964_v56  ;;  %7028 = vpow2.f32 %v4792_v26  ;;  %v9160_v11 = vsel %vm4618_vm14, %v7015_v15, %v4650_v62  ;;  %v4558_v3 = vadd.f32 1.0, %v7019_v55 }
 0x6a8   : > { %v5310_v9 = vsel %vm5246_vm15, %v7017_v47, %v5278_v12  ;;  %v9164_v19 = vmul.f32 %v9160_v11, %v9160_v11  ;;  %7030 = vpow2.f32 %v4520_v39  ;;  %v4434_v20 = vand.u32 2147483647, %v9152_v14  ;;  %4353 = vmatmul.bf16.gmra.mxu2 %v8888_v18  ;;  %4402 = vmatmul.bf16.gmra.mxu3 %v8890_v45 }
 0x6a9   : > { %v7021_v38 = vpop.eup %7020  ;;  %v5342_v6 = vmul.f32 %v5310_v9, %v8974_v48  ;;  %v5060_v57 = vand.u32 2147483647, %v9156_v51  ;;  %7032 = vrcp.f32 %v4558_v3  ;;  %v4063_v16 = vadd.f32 %v4062_v25, %v8902_v63 }
 0x6aa   : > { %v7023_v0 = vpop.eup %7022  ;;  %v4746_v2 = vsub.f32 0.0, %v9164_v19  ;;  %v4652_v36 = vmul.f32 %v7021_v38, %v7009_v27  ;;  %v4466_v60 = vsub.f32 0.0, %v4434_v20  ;;  %vm5252_vm5 = vcmp.ge.f32.partialorder %v9156_v51, 0.0 }
 0x6ab   : > { %v7025_v59 = vpop.eup %7024  ;;  %5374 = vst [vmem:[%s9079_s10 + $0x30] sm:$0xff] %v5342_v6  ;;  %v5092_v18 = vsub.f32 0.0, %v5060_v57  ;;  %v4917_v45 = vmul.f32 0.6931472, %v7023_v0  ;;  %v4158_v48 = vpop.f32.mrf.mxu2  ;;  %v4112_v9 = vadd.f32 %v9154_v8, %v4063_v16  ;;  %vm4626_vm6 = vcmp.ge.f32.partialorder %v9152_v14, 0.0 }
 0x6ac   : > { %v4207_v22 = vpop.f32.mrf.mxu3  ;;  %v7027_v29 = vpop.eup %7026  ;;  %v5186_v24 = vadd.f32 1.0, %v7025_v59  ;;  %v4796_v33 = vmul.f32 1.442695, %v4746_v2  ;;  %v9179_v7 = vsel %vm4620_vm1, %v7021_v38, %v4652_v36  ;;  %v4524_v40 = vmul.f32 1.442695, %v4466_v60 }
 0x6ad   : > { %v7029_v27 = vpop.eup %7028  ;;  %v5280_v42 = vmul.f32 %v7027_v29, %v7013_v30  ;;  %v5136_v32 = vmul.f32 1.442695, %v5092_v18  ;;  %v4966_v21 = vsub.f32 %v4917_v45, %v4742_v37  ;;  %v9186_v17 = vmul.f32 %v9179_v7, %v9179_v7 }
 0x6ae   : > { %v9188_v50 = vpop.eup %7030  ;;  %7034 = vrcp.f32 %v5186_v24  ;;  %v4840_v26 = vsub.f32 1.0, %v7029_v27  ;;  %v4159_v28 = vadd.f32 %v4158_v48, %v4110_v41  ;;  %v4221_v15 = vpop.f32.mrf.mxu0 }
 0x6af   : > { %v4270_v1 = vpop.f32.mrf.mxu1  ;;  %v7033_v63 = vpop.eup %7032  ;;  %v5312_v30 = vsel %vm5248_vm3, %v7027_v29, %v5280_v42  ;;  %7036 = vpow2.f32 %v5136_v32  ;;  %v9192_v53 = vadd.f32 %v4998_v58, %v4966_v21  ;;  %v4748_v37 = vsub.f32 0.0, %v9186_v17  ;;  %v5000_v32 = vld [vmem:[%s7888_s13 + $0x80] sm:$0xff] }
 0x6b0   : > { %v5344_v52 = vmul.f32 %v5312_v30, %v8995_v31  ;;  %v4872_v39 = vadd.f32 1e-20, %v4840_v26  ;;  %7038 = vpow2.f32 %v4796_v33  ;;  %v4654_v4 = vmul.f32 %v7033_v63, %v7019_v55 }
 0x6b1   : > { %v5062_v47 = vand.u32 2147483647, %v9192_v53  ;;  %v4800_v56 = vmul.f32 1.442695, %v4748_v37  ;;  %v4560_v46 = vadd.f32 1.0, %v9188_v50  ;;  %v9204_v12 = vadd.f32 %v4207_v22, %v4159_v28 }
 0x6b2   : > { %5376 = vst [vmem:[%s9079_s10 + $0x40] sm:$0xff] %v5344_v52  ;;  %7040 = vlog2.f32 %v4872_v39  ;;  %v9202_v62 = vsel %vm4622_vm0, %v7033_v63, %v4654_v4  ;;  %v9207_v31 = vperm.slane %v8897_v44, 1  ;;  %vm5254_vm7 = vcmp.ge.f32.partialorder %v9192_v53, 0.0  ;;  %v5006_v53 = vld [vmem:[%s7888_s13 + $0xb0] sm:$0xff] }
 0x6b3   : > { %v5094_v23 = vsub.f32 0.0, %v5062_v47  ;;  %7042 = vpow2.f32 %v4800_v56  ;;  %v9211_v55 = vmul.f32 %v9202_v62, %v9202_v62  ;;  %v4160_v25 = vpop.f32.mrf.mxu2  ;;  %v4436_v20 = vand.u32 2147483647, %v9204_v12 }
 0x6b4   : > { %v4209_v3 = vpop.f32.mrf.mxu3  ;;  %v7035_v13 = vpop.eup %7034  ;;  %7044 = vrcp.f32 %v4560_v46  ;;  %v4222_v18 = vadd.f32 %v4221_v15, %v9207_v31  ;;  %v4161_v45 = vadd.f32 %v4160_v25, %v4112_v9  ;;  %vm4628_vm8 = vcmp.ge.f32.partialorder %v9204_v12, 0.0 }
 0x6b5   : > { %v7037_v38 = vpop.eup %7036  ;;  %v5282_v6 = vmul.f32 %v7035_v13, %v7025_v59  ;;  %v5140_v44 = vmul.f32 1.442695, %v5094_v23  ;;  %v4750_v57 = vsub.f32 0.0, %v9211_v55  ;;  %7046 = vpow2.f32 %v4524_v40 }
 0x6b6   : > { %v7039_v0 = vpop.eup %7038  ;;  %v5188_v36 = vadd.f32 1.0, %v7037_v38  ;;  %v4468_v60 = vsub.f32 0.0, %v4436_v20  ;;  %v4223_v41 = vpop.f32.mrf.mxu0  ;;  %v9223_v33 = vadd.f32 %v4209_v3, %v4161_v45  ;;  %v4271_v26 = vadd.f32 %v4270_v1, %v4222_v18 }
 0x6b7   : > { %v4272_v48 = vpop.f32.mrf.mxu1  ;;  %v5314_v8 = vsel %vm5250_vm2, %v7035_v13, %v5282_v6  ;;  %7048 = vpow2.f32 %v5140_v44  ;;  %v4842_v22 = vsub.f32 1.0, %v7039_v0  ;;  %v4804_v59 = vmul.f32 1.442695, %v4750_v57 }
 0x6b8   : > { %v7041_v29 = vpop.eup %7040  ;;  %v5346_v24 = vmul.f32 %v5314_v8, %v9017_v49  ;;  %7050 = vrcp.f32 %v5188_v36  ;;  %v4528_v58 = vmul.f32 1.442695, %v4468_v60  ;;  %v4438_v40 = vand.u32 2147483647, %v9223_v33 }
 0x6b9   : > { %v7043_v16 = vpop.eup %7042  ;;  %v4921_v27 = vmul.f32 0.6931472, %v7041_v29  ;;  %v4874_v42 = vadd.f32 1e-20, %v4842_v22  ;;  %7052 = vpow2.f32 %v4804_v59  ;;  %v4224_v63 = vadd.f32 %v4223_v41, %v9207_v31 }
 0x6ba   : > { %v7045_v61 = vpop.eup %7044  ;;  %5378 = vst [vmem:[%s9079_s10 + $0x50] sm:$0xff] %v5346_v24  ;;  %v4844_v21 = vsub.f32 1.0, %v7043_v16  ;;  %7054 = vpow2.f32 %v4528_v58  ;;  %v4470_v47 = vsub.f32 0.0, %v4438_v40  ;;  %v5002_v24 = vld [vmem:[%s7888_s13 + $0x90] sm:$0xff]  ;;  %vm4630_vm9 = vcmp.ge.f32.partialorder %v9223_v33, 0.0 }
 0x6bb   : > { %v7047_v28 = vpop.eup %7046  ;;  %v4968_v49 = vsub.f32 %v4921_v27, %v4744_v34  ;;  %7056 = vlog2.f32 %v4874_v42  ;;  %v4656_v15 = vmul.f32 %v7045_v61, %v9188_v50  ;;  %v4319_v30 = vpop.f32.mrf.mxu2  ;;  %v4273_v5 = vadd.f32 %v4272_v48, %v4224_v63 }
 0x6bc   : > { %v4368_v52 = vpop.f32.mrf.mxu3  ;;  %v4876_v39 = vadd.f32 1e-20, %v4844_v21  ;;  %v4562_v4 = vadd.f32 1.0, %v7047_v28  ;;  %v4320_v56 = vadd.f32 %v4319_v30, %v4271_v26  ;;  %v4532_v25 = vmul.f32 1.442695, %v4470_v47 }
 0x6bd   : > { %v7049_v46 = vpop.eup %7048  ;;  %v9234_v1 = vadd.f32 %v5000_v32, %v4968_v49  ;;  %v9238_v54 = vsel %vm4624_vm4, %v7045_v61, %v4656_v15  ;;  %v5004_v49 = vld [vmem:[%s7888_s13 + $0xa0] sm:$0xff] }
 0x6be   : > { %v7051_v34 = vpop.eup %7050  ;;  %v5190_v23 = vadd.f32 1.0, %v7049_v46  ;;  %7058 = vlog2.f32 %v4876_v39  ;;  %v9242_v50 = vmul.f32 %v9238_v54, %v9238_v54  ;;  %v9244_v3 = vpop.f32.mrf.mxu0  ;;  %v9250_v60 = vadd.f32 %v4368_v52, %v4320_v56 }
 0x6bf   : > { %v9246_v13 = vpop.f32.mrf.mxu1  ;;  %v7053_v9 = vpop.eup %7052  ;;  %v5284_v20 = vmul.f32 %v7051_v34, %v7037_v38  ;;  %v5064_v6 = vand.u32 2147483647, %v9234_v1  ;;  %7060 = vrcp.f32 %v4562_v4  ;;  %vm5256_vm10 = vcmp.ge.f32.partialorder %v9234_v1, 0.0 }
 0x6c0   : > { %v7055_v44 = vpop.eup %7054  ;;  %7062 = vrcp.f32 %v5190_v23  ;;  %v4846_v0 = vsub.f32 1.0, %v7053_v9  ;;  %v4752_v36 = vsub.f32 0.0, %v9242_v50  ;;  %v4409_v58 = vand.u32 2147483647, %v9250_v60 }
 0x6c1   : > { %v7057_v18 = vpop.eup %7056  ;;  %v5316_v45 = vsel %vm5252_vm5, %v7051_v34, %v5284_v20  ;;  %v5096_v41 = vsub.f32 0.0, %v5064_v6  ;;  %v4564_v8 = vadd.f32 1.0, %v7055_v44  ;;  %7064 = vpow2.f32 %v4532_v25 }
 0x6c2   : > { %v5348_v38 = vmul.f32 %v5316_v45, %v9043_v35  ;;  %v4925_v22 = vmul.f32 0.6931472, %v7057_v18  ;;  %v4878_v48 = vadd.f32 1e-20, %v4846_v0  ;;  %v4808_v59 = vmul.f32 1.442695, %v4752_v36 }
 0x6c3   : > { %v5144_v29 = vmul.f32 1.442695, %v5096_v41  ;;  %7066 = vrcp.f32 %v4564_v8  ;;  %v4321_v16 = vpop.f32.mrf.mxu2  ;;  %v4441_v21 = vsub.f32 0.0, %v4409_v58  ;;  %v4227_v18 = vadd.f32 %v9244_v3, %v9207_v31 }
 0x6c4   : > { %v4370_v51 = vpop.f32.mrf.mxu3  ;;  %v7059_v27 = vpop.eup %7058  ;;  %5380 = vst [vmem:[%s9079_s10 + $0x60] sm:$0xff] %v5348_v38  ;;  %v4970_v42 = vsub.f32 %v4925_v22, %v4746_v2  ;;  %7068 = vlog2.f32 %v4878_v48  ;;  %v4322_v35 = vadd.f32 %v4321_v16, %v4273_v5  ;;  %vm4601_vm11 = vcmp.ge.f32.partialorder %v9250_v60, 0.0 }
 0x6c5   : > { %v7061_v61 = vpop.eup %7060  ;;  %7070 = vpow2.f32 %v5144_v29  ;;  %v4929_v32 = vmul.f32 0.6931472, %v7059_v27  ;;  %v4474_v39 = vmul.f32 1.442695, %v4441_v21 }
 0x6c6   : > { %v7063_v26 = vpop.eup %7062  ;;  %v9264_v40 = vadd.f32 %v5002_v24, %v4970_v42  ;;  %7072 = vpow2.f32 %v4808_v59  ;;  %v4658_v15 = vmul.f32 %v7061_v61, %v7047_v28  ;;  %v4228_v63 = vpop.f32.mrf.mxu0  ;;  %v9277_v28 = vadd.f32 %v4370_v51, %v4322_v35 }
 0x6c7   : > { %v9267_v30 = vpop.f32.mrf.mxu1  ;;  %v7065_v19 = vpop.eup %7064  ;;  %v5286_v2 = vmul.f32 %v7063_v26, %v7049_v46  ;;  %v4972_v52 = vsub.f32 %v4929_v32, %v4748_v37  ;;  %7074 = vpow2.f32 %v4474_v39  ;;  %v4276_v32 = vadd.f32 %v9246_v13, %v4227_v18 }
 0x6c8   : > { %v5066_v4 = vand.u32 2147483647, %v9264_v40  ;;  %v9275_v47 = vsel %vm4626_vm6, %v7061_v61, %v4658_v15  ;;  %v4566_v56 = vadd.f32 1.0, %v7065_v19  ;;  %vm5258_vm12 = vcmp.ge.f32.partialorder %v9264_v40, 0.0 }
 0x6c9   : > { %v7067_v34 = vpop.eup %7066  ;;  %v5318_v46 = vsel %vm5254_vm7, %v7063_v26, %v5286_v2  ;;  %v9281_v23 = vadd.f32 %v5004_v49, %v4972_v52  ;;  %v9285_v17 = vmul.f32 %v9275_v47, %v9275_v47  ;;  %v4229_v2 = vadd.f32 %v4228_v63, %v9207_v31 }
 0x6ca   : > { %v7069_v37 = vpop.eup %7068  ;;  %v5350_v14 = vmul.f32 %v5318_v46, %v9073_v10  ;;  %v5098_v25 = vsub.f32 0.0, %v5066_v4  ;;  %v4660_v9 = vmul.f32 %v7067_v34, %v7055_v44  ;;  %7076 = vrcp.f32 %v4566_v56 }
 0x6cb   : > { %v7071_v20 = vpop.eup %7070  ;;  %v5068_v6 = vand.u32 2147483647, %v9281_v23  ;;  %v4933_v5 = vmul.f32 0.6931472, %v7069_v37  ;;  %v4754_v0 = vsub.f32 0.0, %v9285_v17  ;;  %v4324_v45 = vpop.f32.mrf.mxu2  ;;  %v4278_v33 = vadd.f32 %v9267_v30, %v4229_v2 }
 0x6cc   : > { %v4373_v41 = vpop.f32.mrf.mxu3  ;;  %v7073_v8 = vpop.eup %7072  ;;  %5382 = vst [vmem:[%s9079_s10 + $0x70] sm:$0xff] %v5350_v14  ;;  %v5192_v38 = vadd.f32 1.0, %v7071_v20  ;;  %v5148_v22 = vmul.f32 1.442695, %v5098_v25  ;;  %v9296_v10 = vsel %vm4628_vm8, %v7067_v34, %v4660_v9  ;;  %v4411_v44 = vand.u32 2147483647, %v9277_v28 }
 0x6cd   : > { %v5100_v48 = vsub.f32 0.0, %v5068_v6  ;;  %v4974_v59 = vsub.f32 %v4933_v5, %v4750_v57  ;;  %v4848_v29 = vsub.f32 1.0, %v7073_v8  ;;  %v4812_v3 = vmul.f32 1.442695, %v4754_v0  ;;  %v7075_v51 = vpop.eup %7074 }
 0x6ce   : > { %7078 = vrcp.f32 %v5192_v38  ;;  %v9305_v24 = vmul.f32 %v9296_v10, %v9296_v10  ;;  %v4443_v12 = vsub.f32 0.0, %v4411_v44  ;;  %v9308_v58 = vpop.f32.mrf.mxu0  ;;  %v4537_v61 = vadd.f32 1.0, %v7075_v51 }
 0x6cf   : > { %v9310_v16 = vpop.f32.mrf.mxu1  ;;  %7080 = vpow2.f32 %v5148_v22  ;;  %v5152_v55 = vmul.f32 1.442695, %v5100_v48  ;;  %v9312_v57 = vadd.f32 %v5006_v53, %v4974_v59  ;;  %v4880_v27 = vadd.f32 1e-20, %v4848_v29 }
 0x6d0   : > { %v7077_v42 = vpop.eup %7076  ;;  %7082 = vpow2.f32 %v4812_v3  ;;  %v4756_v35 = vsub.f32 0.0, %v9305_v24  ;;  %v4478_v49 = vmul.f32 1.442695, %v4443_v12  ;;  %v4325_v52 = vadd.f32 %v4324_v45, %v4276_v32 }
 0x6d1   : > { %7084 = vpow2.f32 %v5152_v55  ;;  %v5070_v21 = vand.u32 2147483647, %v9312_v57  ;;  %v4662_v26 = vmul.f32 %v7077_v42, %v7065_v19  ;;  %vm5260_vm13 = vcmp.ge.f32.partialorder %v9281_v23, 0.0  ;;  %v5008_v55 = vld [vmem:[%s7888_s13 + $0xc0] sm:$0xff] }
 0x6d2   : > { %7086 = vlog2.f32 %v4880_v27  ;;  %v4816_v15 = vmul.f32 1.442695, %v4756_v35  ;;  %v9329_v46 = vadd.f32 %v4373_v41, %v4325_v52  ;;  %v4232_v27 = vadd.f32 %v9308_v58, %v9207_v31 }
 0x6d3   : > { %v5102_v39 = vsub.f32 0.0, %v5070_v21  ;;  %v9322_v4 = vsel %vm4630_vm9, %v7077_v42, %v4662_v26  ;;  %7088 = vrcp.f32 %v4537_v61  ;;  %v4326_v56 = vpop.f32.mrf.mxu2  ;;  %vm4603_vm14 = vcmp.ge.f32.partialorder %v9277_v28, 0.0 }
 0x6d4   : > { %v4375_v13 = vpop.f32.mrf.mxu3  ;;  %v7079_v34 = vpop.eup %7078  ;;  %7090 = vpow2.f32 %v4816_v15  ;;  %v9327_v19 = vmul.f32 %v9322_v4, %v9322_v4  ;;  %v4413_v5 = vand.u32 2147483647, %v9329_v46  ;;  %v4327_v8 = vadd.f32 %v4326_v56, %v4278_v33 }
 0x6d5   : > { %v7081_v63 = vpop.eup %7080  ;;  %v5288_v37 = vmul.f32 %v7079_v34, %v7071_v20  ;;  %v5156_v14 = vmul.f32 1.442695, %v5102_v39  ;;  %7092 = vpow2.f32 %v4478_v49  ;;  %v4281_v33 = vadd.f32 %v9310_v16, %v4232_v27 }
 0x6d6   : > { %v7083_v25 = vpop.eup %7082  ;;  %v5194_v9 = vadd.f32 1.0, %v7081_v63  ;;  %v4758_v6 = vsub.f32 0.0, %v9327_v19  ;;  %v4233_v53 = vpop.f32.mrf.mxu0  ;;  %v4445_v1 = vsub.f32 0.0, %v4413_v5  ;;  %v9343_v3 = vadd.f32 %v4375_v13, %v4327_v8 }
 0x6d7   : > { %v9335_v18 = vpop.f32.mrf.mxu1  ;;  %v7085_v45 = vpop.eup %7084  ;;  %v5320_v41 = vsel %vm5256_vm10, %v7079_v34, %v5288_v37  ;;  %7094 = vpow2.f32 %v5156_v14  ;;  %v4850_v20 = vsub.f32 1.0, %v7083_v25  ;;  %vm5262_vm15 = vcmp.ge.f32.partialorder %v9312_v57, 0.0 }
 0x6d8   : > { %v7087_v30 = vpop.eup %7086  ;;  %v5352_v38 = vmul.f32 %v5320_v41, %v9121_v43  ;;  %7096 = vrcp.f32 %v5194_v9  ;;  %v5196_v22 = vadd.f32 1.0, %v7085_v45  ;;  %v4820_v44 = vmul.f32 1.442695, %v4758_v6 }
 0x6d9   : > { %v7089_v48 = vpop.eup %7088  ;;  %v4937_v59 = vmul.f32 0.6931472, %v7087_v30  ;;  %v4882_v29 = vadd.f32 1e-20, %v4850_v20  ;;  %v4482_v21 = vmul.f32 1.442695, %v4445_v1  ;;  %v4234_v41 = vadd.f32 %v4233_v53, %v9207_v31 }
 0x6da   : > { %v7091_v12 = vpop.eup %7090  ;;  %5384 = vst [vmem:[%s9079_s10 + $0x80] sm:$0xff] %v5352_v38  ;;  %7098 = vrcp.f32 %v5196_v22  ;;  %v4633_v43 = vmul.f32 %v7089_v48, %v7075_v51  ;;  %v4415_v51 = vand.u32 2147483647, %v9343_v3  ;;  %v5010_v1 = vld [vmem:[%s7888_s13 + $0xd0] sm:$0xff]  ;;  %vm4605_vm1 = vcmp.ge.f32.partialorder %v9329_v46, 0.0 }
 0x6db   : > { %v7093_v42 = vpop.eup %7092  ;;  %v4976_v61 = vsub.f32 %v4937_v59, %v4752_v36  ;;  %7100 = vlog2.f32 %v4882_v29  ;;  %v4852_v32 = vsub.f32 1.0, %v7091_v12  ;;  %v4329_v26 = vpop.f32.mrf.mxu2  ;;  %vm4607_vm0 = vcmp.ge.f32.partialorder %v9343_v3, 0.0 }
 0x6dc   : > { %v4378_v49 = vpop.f32.mrf.mxu3  ;;  %7102 = vpow2.f32 %v4820_v44  ;;  %v9354_v15 = vsel %vm4601_vm11, %v7089_v48, %v4633_v43  ;;  %v4539_v2 = vadd.f32 1.0, %v7093_v42  ;;  %v4447_v60 = vsub.f32 0.0, %v4415_v51 }
 0x6dd   : > { %v7095_v52 = vpop.eup %7094  ;;  %v9357_v39 = vadd.f32 %v5008_v55, %v4976_v61  ;;  %v4884_v58 = vadd.f32 1e-20, %v4852_v32  ;;  %v9361_v50 = vmul.f32 %v9354_v15, %v9354_v15  ;;  %7104 = vpow2.f32 %v4482_v21 }
 0x6de   : > { %v7097_v36 = vpop.eup %7096  ;;  %v5198_v56 = vadd.f32 1.0, %v7095_v52  ;;  %7106 = vrcp.f32 %v4539_v2  ;;  %v4236_v13 = vpop.f32.mrf.mxu0  ;;  %v4486_v5 = vmul.f32 1.442695, %v4447_v60 }
 0x6df   : > { %v9364_v34 = vpop.f32.mrf.mxu1  ;;  %v5290_v37 = vmul.f32 %v7097_v36, %v7081_v63  ;;  %v5072_v14 = vand.u32 2147483647, %v9357_v39  ;;  %7108 = vlog2.f32 %v4884_v58  ;;  %v4729_v9 = vsub.f32 0.0, %v9361_v50  ;;  %v5012_v58 = vld [vmem:[%s7888_s13 + $0xe0] sm:$0xff] }
 0x6e0   : > { %v7099_v25 = vpop.eup %7098  ;;  %7110 = vrcp.f32 %v5198_v56  ;;  %v4330_v63 = vadd.f32 %v4329_v26, %v4281_v33  ;;  %v4283_v33 = vadd.f32 %v9335_v18, %v4234_v41  ;;  %vm5264_vm3 = vcmp.ge.f32.partialorder %v9357_v39, 0.0 }
 0x6e1   : > { %v7101_v20 = vpop.eup %7100  ;;  %v5322_v8 = vsel %vm5258_vm12, %v7097_v36, %v5290_v37  ;;  %v5292_v30 = vmul.f32 %v7099_v25, %v7085_v45  ;;  %v5104_v38 = vsub.f32 0.0, %v5072_v14  ;;  %v4762_v48 = vmul.f32 1.442695, %v4729_v9 }
 0x6e2   : > { %v7103_v22 = vpop.eup %7102  ;;  %v5354_v44 = vmul.f32 %v5322_v8, %v9160_v11  ;;  %v4941_v16 = vmul.f32 0.6931472, %v7101_v20  ;;  %7112 = vpow2.f32 %v4486_v5  ;;  %v9378_v45 = vadd.f32 %v4378_v49, %v4330_v63 }
 0x6e3   : > { %v7105_v59 = vpop.eup %7104  ;;  %v5324_v53 = vsel %vm5260_vm13, %v7099_v25, %v5292_v30  ;;  %v5160_v29 = vmul.f32 1.442695, %v5104_v38  ;;  %v4854_v40 = vsub.f32 1.0, %v7103_v22  ;;  %v4331_v12 = vpop.f32.mrf.mxu2  ;;  %7114 = vpow2.f32 %v4762_v48 }
 0x6e4   : > { %v4380_v55 = vpop.f32.mrf.mxu3  ;;  %v7107_v43 = vpop.eup %7106  ;;  %5386 = vst [vmem:[%s9079_s10 + $0x90] sm:$0xff] %v5354_v44  ;;  %v5356_v11 = vmul.f32 %v5324_v53, %v9179_v7  ;;  %v4978_v27 = vsub.f32 %v4941_v16, %v4754_v0  ;;  %v4541_v61 = vadd.f32 1.0, %v7105_v59  ;;  %v4417_v26 = vand.u32 2147483647, %v9378_v45 }
 0x6e5   : > { %v7109_v23 = vpop.eup %7108  ;;  %7116 = vpow2.f32 %v5160_v29  ;;  %v4886_v32 = vadd.f32 1e-20, %v4854_v40  ;;  %v4635_v21 = vmul.f32 %v7107_v43, %v7093_v42  ;;  %v4237_v5 = vadd.f32 %v4236_v13, %v9207_v31 }
 0x6e6   : > { %v7111_v49 = vpop.eup %7110  ;;  %5388 = vst [vmem:[%s9079_s10 + $0xa0] sm:$0xff] %v5356_v11  ;;  %v9387_v2 = vadd.f32 %v5010_v1, %v4978_v27  ;;  %v4945_v51 = vmul.f32 0.6931472, %v7109_v23  ;;  %7118 = vrcp.f32 %v4541_v61  ;;  %v4238_v7 = vpop.f32.mrf.mxu0  ;;  %v4449_v42 = vsub.f32 0.0, %v4417_v26  ;;  %v5014_v61 = vld [vmem:[%s7888_s13 + $0xf0] sm:$0xff] }
 0x6e7   : > { %v9389_v17 = vpop.f32.mrf.mxu1  ;;  %v5294_v0 = vmul.f32 %v7111_v49, %v7095_v52  ;;  %7120 = vlog2.f32 %v4886_v32  ;;  %v9394_v36 = vsel %vm4603_vm14, %v7107_v43, %v4635_v21  ;;  %v4332_v57 = vadd.f32 %v4331_v12, %v4283_v33 }
 0x6e8   : > { %v7113_v56 = vpop.eup %7112  ;;  %v5074_v60 = vand.u32 2147483647, %v9387_v2  ;;  %v4980_v37 = vsub.f32 %v4945_v51, %v4756_v35  ;;  %v9401_v14 = vmul.f32 %v9394_v36, %v9394_v36  ;;  %v4490_v28 = vmul.f32 1.442695, %v4449_v42 }
 0x6e9   : > { %v5326_v52 = vsel %vm5262_vm15, %v7111_v49, %v5294_v0  ;;  %v4543_v25 = vadd.f32 1.0, %v7113_v56  ;;  %v7115_v20 = vpop.eup %7114  ;;  %v4286_v1 = vadd.f32 %v9364_v34, %v4237_v5  ;;  %v9417_v43 = vadd.f32 %v4380_v55, %v4332_v57 }
 0x6ea   : > { %v5358_v8 = vmul.f32 %v5326_v52, %v9202_v62  ;;  %v5106_v30 = vsub.f32 0.0, %v5074_v60  ;;  %v9408_v24 = vadd.f32 %v5012_v58, %v4980_v37  ;;  %v4731_v35 = vsub.f32 0.0, %v9401_v14 }
 0x6eb   : > { %v7117_v38 = vpop.eup %7116  ;;  %v4825_v63 = vsub.f32 1.0, %v7115_v20  ;;  %7122 = vrcp.f32 %v4543_v25  ;;  %v4334_v18 = vpop.f32.mrf.mxu2  ;;  %v4239_v32 = vadd.f32 %v4238_v7, %v9207_v31  ;;  %v4419_v46 = vand.u32 2147483647, %v9417_v43 }
 0x6ec   : > { %v4383_v41 = vpop.f32.mrf.mxu3  ;;  %v7119_v22 = vpop.eup %7118  ;;  %5390 = vst [vmem:[%s9079_s10 + $0xb0] sm:$0xff] %v5358_v8  ;;  %v5200_v44 = vadd.f32 1.0, %v7117_v38  ;;  %v5164_v13 = vmul.f32 1.442695, %v5106_v30  ;;  %v5076_v62 = vand.u32 2147483647, %v9408_v24  ;;  %7124 = vpow2.f32 %v4490_v28 }
 0x6ed   : > { %v7121_v16 = vpop.eup %7120  ;;  %v4857_v48 = vadd.f32 1e-20, %v4825_v63  ;;  %v4766_v53 = vmul.f32 1.442695, %v4731_v35  ;;  %v4637_v29 = vmul.f32 %v7119_v22, %v7105_v59  ;;  %v4335_v21 = vadd.f32 %v4334_v18, %v4286_v1 }
 0x6ee   : > { %7126 = vrcp.f32 %v5200_v44  ;;  %v5108_v40 = vsub.f32 0.0, %v5076_v62  ;;  %v4949_v12 = vmul.f32 0.6931472, %v7121_v16  ;;  %v4241_v11 = vpop.f32.mrf.mxu0  ;;  %v4451_v0 = vsub.f32 0.0, %v4419_v46 }
 0x6ef   : > { %v4290_v27 = vpop.f32.mrf.mxu1  ;;  %7128 = vpow2.f32 %v5164_v13  ;;  %v9422_v23 = vsel %vm4605_vm1, %v7119_v22, %v4637_v29  ;;  %v4288_v58 = vadd.f32 %v9389_v17, %v4239_v32  ;;  %v9438_v42 = vadd.f32 %v4383_v41, %v4335_v21 }
 0x6f0   : > { %v5168_v26 = vmul.f32 1.442695, %v5108_v40  ;;  %v4982_v34 = vsub.f32 %v4949_v12, %v4758_v6  ;;  %7130 = vlog2.f32 %v4857_v48  ;;  %v9429_v59 = vmul.f32 %v9422_v23, %v9422_v23 }
 0x6f1   : > { %v7123_v55 = vpop.eup %7122  ;;  %7132 = vpow2.f32 %v4766_v53  ;;  %v4494_v8 = vmul.f32 1.442695, %v4451_v0  ;;  %v4421_v18 = vand.u32 2147483647, %v9438_v42  ;;  %v4985_v53 = vld [vmem:[%s7888_s13 + $0x8] sm:$0xff]  ;;  %vm5266_vm2 = vcmp.ge.f32.partialorder %v9387_v2, 0.0 }
 0x6f2   : > { %v7125_v49 = vpop.eup %7124  ;;  %7134 = vpow2.f32 %v5168_v26  ;;  %v9434_v51 = vadd.f32 %v5014_v61, %v4982_v34  ;;  %v4733_v19 = vsub.f32 0.0, %v9429_v59  ;;  %v4639_v6 = vmul.f32 %v7123_v55, %v7113_v56 }
 0x6f3   : > { %v4545_v7 = vadd.f32 1.0, %v7125_v49  ;;  %v4336_v60 = vpop.f32.mrf.mxu2  ;;  %v4242_v56 = vadd.f32 %v4241_v11, %v9207_v31  ;;  %v4453_v39 = vsub.f32 0.0, %v4421_v18  ;;  %vm4609_vm4 = vcmp.ge.f32.partialorder %v9378_v45, 0.0 }
 0x6f4   : > { %v4385_v37 = vpop.f32.mrf.mxu3  ;;  %v7127_v33 = vpop.eup %7126  ;;  %v5078_v52 = vand.u32 2147483647, %v9434_v51  ;;  %v4770_v25 = vmul.f32 1.442695, %v4733_v19  ;;  %v9445_v28 = vsel %vm4607_vm0, %v7123_v55, %v4639_v6  ;;  %v4337_v26 = vadd.f32 %v4336_v60, %v4288_v58 }
 0x6f5   : > { %v7129_v5 = vpop.eup %7128  ;;  %v5296_v20 = vmul.f32 %v7127_v33, %v7117_v38  ;;  %v9450_v17 = vmul.f32 %v9445_v28, %v9445_v28  ;;  %7136 = vrcp.f32 %v4545_v7  ;;  %v4291_v61 = vadd.f32 %v4290_v27, %v4242_v56 }
 0x6f6   : > { %v7131_v30 = vpop.eup %7130  ;;  %v5202_v63 = vadd.f32 1.0, %v7129_v5  ;;  %v5110_v57 = vsub.f32 0.0, %v5078_v52  ;;  %7138 = vpow2.f32 %v4770_v25  ;;  %v4243_v3 = vpop.f32.mrf.mxu0  ;;  %v9472_v58 = vadd.f32 %v4385_v37, %v4337_v26 }
 0x6f7   : > { %v9453_v41 = vpop.f32.mrf.mxu1  ;;  %v7133_v22 = vpop.eup %7132  ;;  %v5328_v38 = vsel %vm5264_vm3, %v7127_v33, %v5296_v20  ;;  %v4891_v44 = vmul.f32 0.6931472, %v7131_v30  ;;  %v4735_v13 = vsub.f32 0.0, %v9450_v17  ;;  %7140 = vpow2.f32 %v4494_v8 }
 0x6f8   : > { %v7135_v62 = vpop.eup %7134  ;;  %v5360_v16 = vmul.f32 %v5328_v38, %v9238_v54  ;;  %7142 = vrcp.f32 %v5202_v63  ;;  %v5172_v48 = vmul.f32 1.442695, %v5110_v57  ;;  %v4827_v29 = vsub.f32 1.0, %v7133_v22 }
 0x6f9   : > { %v5204_v1 = vadd.f32 1.0, %v7135_v62  ;;  %v4953_v40 = vsub.f32 %v4891_v44, %v4729_v9  ;;  %v4774_v12 = vmul.f32 1.442695, %v4735_v13  ;;  %v4498_v54 = vmul.f32 1.442695, %v4453_v39 }
 0x6fa   : > { %5392 = vst [vmem:[%s9079_s10 + $0xc0] sm:$0xff] %v5360_v16  ;;  %7144 = vpow2.f32 %v5172_v48  ;;  %v4859_v11 = vadd.f32 1e-20, %v4827_v29  ;;  %vm5268_vm5 = vcmp.ge.f32.partialorder %v9408_v24, 0.0  ;;  %v4423_v30 = vand.u32 2147483647, %v9472_v58 }
 0x6fb   : > { %v7137_v32 = vpop.eup %7136  ;;  %7146 = vrcp.f32 %v5204_v1  ;;  %v9465_v21 = vadd.f32 %v4985_v53, %v4953_v40  ;;  %v4339_v34 = vpop.f32.mrf.mxu2  ;;  %v4244_v37 = vadd.f32 %v4243_v3, %v9207_v31  ;;  %vm4611_vm6 = vcmp.ge.f32.partialorder %v9417_v43, 0.0 }
 0x6fc   : > { %v4388_v55 = vpop.f32.mrf.mxu3  ;;  %v7139_v46 = vpop.eup %7138  ;;  %7148 = vlog2.f32 %v4859_v11  ;;  %v4641_v50 = vmul.f32 %v7137_v32, %v7125_v49  ;;  %v4340_v27 = vadd.f32 %v4339_v34, %v4291_v61  ;;  %v4455_v48 = vsub.f32 0.0, %v4423_v30 }
 0x6fd   : > { %v7141_v9 = vpop.eup %7140  ;;  %v5049_v6 = vand.u32 2147483647, %v9465_v21  ;;  %v4829_v7 = vsub.f32 1.0, %v7139_v46  ;;  %7150 = vpow2.f32 %v4774_v12  ;;  %v4293_v24 = vadd.f32 %v9453_v41, %v4244_v37 }
 0x6fe   : > { %v7143_v0 = vpop.eup %7142  ;;  %v9470_v33 = vsel %vm4609_vm4, %v7137_v32, %v4641_v50  ;;  %v4547_v52 = vadd.f32 1.0, %v7141_v9  ;;  %7152 = vpow2.f32 %v4498_v54  ;;  %v9474_v60 = vpop.f32.mrf.mxu0  ;;  %v9490_v3 = vadd.f32 %v4388_v55, %v4340_v27 }
 0x6ff   : > { %v9476_v25 = vpop.f32.mrf.mxu1  ;;  %v5298_v56 = vmul.f32 %v7143_v0, %v7129_v5  ;;  %v5081_v45 = vsub.f32 0.0, %v5049_v6  ;;  %v4861_v49 = vadd.f32 1e-20, %v4829_v7  ;;  %v9480_v20 = vmul.f32 %v9470_v33, %v9470_v33 }
 0x700   : > { %v7145_v8 = vpop.eup %7144  ;;  %7154 = vrcp.f32 %v4547_v52  ;;  %v4502_v54 = vmul.f32 1.442695, %v4455_v48  ;;  %v4425_v55 = vand.u32 2147483647, %v9490_v3  ;;  %vm5270_vm7 = vcmp.ge.f32.partialorder %v9434_v51, 0.0  ;;  %v4989_v52 = vld [vmem:[%s7888_s13 + $0x28] sm:$0xff] }
 0x701   : > { %v7147_v63 = vpop.eup %7146  ;;  %v5330_v57 = vsel %vm5266_vm2, %v7143_v0, %v5298_v56  ;;  %v5206_v18 = vadd.f32 1.0, %v7145_v8  ;;  %v5114_v5 = vmul.f32 1.442695, %v5081_v45  ;;  %7156 = vlog2.f32 %v4861_v49 }
 0x702   : > { %v7149_v22 = vpop.eup %7148  ;;  %v5362_v38 = vmul.f32 %v5330_v57, %v9275_v47  ;;  %v5300_v44 = vmul.f32 %v7147_v63, %v7135_v62  ;;  %v4737_v16 = vsub.f32 0.0, %v9480_v20  ;;  %v4987_v47 = vld [vmem:[%s7888_s13 + $0x18] sm:$0xff]  ;;  %v4457_v6 = vsub.f32 0.0, %v4425_v55 }
 0x703   : > { %v7151_v53 = vpop.eup %7150  ;;  %7158 = vrcp.f32 %v5206_v18  ;;  %v4895_v29 = vmul.f32 0.6931472, %v7149_v22  ;;  %v4341_v2 = vpop.f32.mrf.mxu2  ;;  %vm4613_vm8 = vcmp.ge.f32.partialorder %v9438_v42, 0.0  ;;  %v4247_v43 = vadd.f32 %v9474_v60, %v9207_v31 }
 0x704   : > { %v4390_v1 = vpop.f32.mrf.mxu3  ;;  %v7153_v40 = vpop.eup %7152  ;;  %5394 = vst [vmem:[%s9079_s10 + $0xd0] sm:$0xff] %v5362_v38  ;;  %v5332_v12 = vsel %vm5268_vm5, %v7147_v63, %v5300_v44  ;;  %7160 = vpow2.f32 %v5114_v5  ;;  %v4831_v62 = vsub.f32 1.0, %v7151_v53  ;;  %v4778_v39 = vmul.f32 1.442695, %v4737_v16 }
 0x705   : > { %v5364_v11 = vmul.f32 %v5332_v12, %v9296_v10  ;;  %v4955_v61 = vsub.f32 %v4895_v29, %v4731_v35  ;;  %v4549_v32 = vadd.f32 1.0, %v7153_v40  ;;  %v4342_v7 = vadd.f32 %v4341_v2, %v4293_v24 }
 0x706   : > { %v7155_v26 = vpop.eup %7154  ;;  %v4863_v34 = vadd.f32 1e-20, %v4831_v62  ;;  %7162 = vpow2.f32 %v4778_v39  ;;  %v9503_v46 = vpop.f32.mrf.mxu0  ;;  %v4506_v37 = vmul.f32 1.442695, %v4457_v6  ;;  %vm5241_vm9 = vcmp.ge.f32.partialorder %v9465_v21, 0.0 }
 0x707   : > { %v7157_v50 = vpop.eup %7156  ;;  %5396 = vst [vmem:[%s9079_s10 + $0xe0] sm:$0xff] %v5364_v11  ;;  %v9507_v10 = vadd.f32 %v4987_v47, %v4955_v61  ;;  %v4643_v14 = vmul.f32 %v7155_v26, %v7141_v9  ;;  %7164 = vrcp.f32 %v4549_v32  ;;  %v9509_v27 = vpop.f32.mrf.mxu1  ;;  %v9526_v18 = vadd.f32 %v4390_v1, %v4342_v7  ;;  %v4991_v61 = vld [vmem:[%s7888_s13 + $0x38] sm:$0xff] }
 0x708   : > { %v4899_v35 = vmul.f32 0.6931472, %v7157_v50  ;;  %7166 = vlog2.f32 %v4863_v34  ;;  %vm4615_vm10 = vcmp.ge.f32.partialorder %v9472_v58, 0.0  ;;  %vm4617_vm11 = vcmp.ge.f32.partialorder %v9490_v3, 0.0 }
 0x709   : > { %v7159_v41 = vpop.eup %7158  ;;  %v5051_v0 = vand.u32 2147483647, %v9507_v10  ;;  %v9515_v56 = vsel %vm4611_vm6, %v7155_v26, %v4643_v14  ;;  %7168 = vpow2.f32 %v4502_v54  ;;  %v4427_v34 = vand.u32 2147483647, %v9526_v18 }
 0x70a   : > { %v7161_v45 = vpop.eup %7160  ;;  %v5302_v9 = vmul.f32 %v7159_v41, %v7145_v8  ;;  %v4957_v49 = vsub.f32 %v4899_v35, %v4733_v19  ;;  %v9522_v30 = vmul.f32 %v9515_v56, %v9515_v56  ;;  %7170 = vpow2.f32 %v4506_v37 }
 0x70b   : > { %v5177_v63 = vadd.f32 1.0, %v7161_v45  ;;  %v5083_v57 = vsub.f32 0.0, %v5051_v0  ;;  %v4344_v5 = vpop.f32.mrf.mxu2  ;;  %v4459_v35 = vsub.f32 0.0, %v4427_v34  ;;  %v4249_v0 = vadd.f32 %v9503_v46, %v9207_v31 }
 0x70c   : > { %v4393_v22 = vpop.f32.mrf.mxu3  ;;  %v7163_v38 = vpop.eup %7162  ;;  %v5334_v8 = vsel %vm5270_vm7, %v7159_v41, %v5302_v9  ;;  %v9530_v59 = vadd.f32 %v4989_v52, %v4957_v49  ;;  %v4739_v19 = vsub.f32 0.0, %v9522_v30  ;;  %vm5243_vm12 = vcmp.ge.f32.partialorder %v9507_v10, 0.0 }
 0x70d   : > { %v7165_v44 = vpop.eup %7164  ;;  %v5366_v48 = vmul.f32 %v5334_v8, %v9322_v4  ;;  %7172 = vrcp.f32 %v5177_v63  ;;  %v5118_v60 = vmul.f32 1.442695, %v5083_v57  ;;  %v4833_v53 = vsub.f32 1.0, %v7163_v38 }
 0x70e   : > { %v7167_v29 = vpop.eup %7166  ;;  %v5053_v2 = vand.u32 2147483647, %v9530_v59  ;;  %v4782_v51 = vmul.f32 1.442695, %v4739_v19  ;;  %v4645_v1 = vmul.f32 %v7165_v44, %v7153_v40  ;;  %v4251_v12 = vpop.f32.mrf.mxu0  ;;  %v4296_v4 = vadd.f32 %v9476_v25, %v4247_v43 }
 0x70f   : > { %v7169_v47 = vpop.eup %7168  ;;  %5398 = vst [vmem:[%s9079_s10 + $0xf0] sm:$0xff] %v5366_v48  ;;  %7174 = vpow2.f32 %v5118_v60  ;;  %v4903_v62 = vmul.f32 0.6931472, %v7167_v29  ;;  %v4865_v39 = vadd.f32 1e-20, %v4833_v53  ;;  %v4300_v42 = vpop.f32.mrf.mxu1  ;;  %v4252_v63 = vadd.f32 %v4251_v12, %v9207_v31 }
 0x710   : > { %v5085_v11 = vsub.f32 0.0, %v5053_v2  ;;  %7176 = vpow2.f32 %v4782_v51  ;;  %v9543_v32 = vsel %vm4613_vm8, %v7165_v44, %v4645_v1  ;;  %v4551_v54 = vadd.f32 1.0, %v7169_v47  ;;  %v7171_v24 = vpop.eup %7170  ;;  %v4993_v51 = vld [vmem:[%s7888_s13 + $0x48] sm:$0xff] }
 0x711   : > { %v4959_v26 = vsub.f32 %v4903_v62, %v4735_v13  ;;  %7178 = vlog2.f32 %v4865_v39  ;;  %v9549_v40 = vmul.f32 %v9543_v32, %v9543_v32  ;;  %v4345_v55 = vadd.f32 %v4344_v5, %v4296_v4 }
 0x712   : > { %v5122_v25 = vmul.f32 1.442695, %v5085_v11  ;;  %7180 = vrcp.f32 %v4551_v54  ;;  %v4553_v13 = vadd.f32 1.0, %v7171_v24  ;;  %v4510_v5 = vmul.f32 1.442695, %v4459_v35 }
 0x713   : > { %v7173_v50 = vpop.eup %7172  ;;  %v9553_v14 = vadd.f32 %v4991_v61, %v4959_v26  ;;  %v4741_v17 = vsub.f32 0.0, %v9549_v40  ;;  %v4346_v6 = vpop.f32.mrf.mxu2  ;;  %v9558_v52 = vadd.f32 %v4393_v22, %v4345_v55  ;;  %v4298_v29 = vadd.f32 %v9509_v27, %v4249_v0 }
 0x714   : > { %v4395_v7 = vpop.f32.mrf.mxu3  ;;  %v5273_v41 = vmul.f32 %v7173_v50, %v7161_v45  ;;  %7182 = vpow2.f32 %v5122_v25  ;;  %v4301_v54 = vadd.f32 %v4300_v42, %v4252_v63  ;;  %vm5245_vm13 = vcmp.ge.f32.partialorder %v9530_v59, 0.0 }
 0x715   : > { %v7175_v9 = vpop.eup %7174  ;;  %v5055_v49 = vand.u32 2147483647, %v9553_v14  ;;  %v4786_v37 = vmul.f32 1.442695, %v4741_v17  ;;  %7184 = vrcp.f32 %v4553_v13  ;;  %v4429_v46 = vand.u32 2147483647, %v9558_v52 }
 0x716   : > { %v7177_v57 = vpop.eup %7176  ;;  %v5305_v45 = vsel %vm5241_vm9, %v7173_v50, %v5273_v41  ;;  %v5179_v43 = vadd.f32 1.0, %v7175_v9  ;;  %v4253_v22 = vpop.f32.mrf.mxu0  ;;  %v4347_v4 = vadd.f32 %v4346_v6, %v4298_v29  ;;  %vm4619_vm14 = vcmp.ge.f32.partialorder %v9526_v18, 0.0 }
 0x717   : > { %v7179_v38 = vpop.eup %7178  ;;  %v5337_v8 = vmul.f32 %v5305_v45, %v9354_v15  ;;  %v5087_v44 = vsub.f32 0.0, %v5055_v49  ;;  %v4835_v48 = vsub.f32 1.0, %v7177_v57  ;;  %7186 = vpow2.f32 %v4786_v37  ;;  %v4302_v25 = vpop.f32.mrf.mxu1 }
 0x718   : > { %v7181_v60 = vpop.eup %7180  ;;  %7188 = vrcp.f32 %v5179_v43  ;;  %v4907_v53 = vmul.f32 0.6931472, %v7179_v38  ;;  %v4461_v21 = vsub.f32 0.0, %v4429_v46  ;;  %v9585_v50 = vadd.f32 %v4395_v7, %v4347_v4 }
 0x719   : > { %5369 = vst [vmem:[%s9079_s10 + $0x8] sm:$0xff] %v5337_v8  ;;  %v5126_v2 = vmul.f32 1.442695, %v5087_v44  ;;  %v4867_v1 = vadd.f32 1e-20, %v4835_v48  ;;  %v4647_v12 = vmul.f32 %v7181_v60, %v7169_v47  ;;  %7190 = vpow2.f32 %v4510_v5 }
 0x71a   : > { %v7183_v62 = vpop.eup %7182  ;;  %v4961_v39 = vsub.f32 %v4907_v53, %v4737_v16  ;;  %v4514_v15 = vmul.f32 1.442695, %v4461_v21  ;;  %v4254_v58 = vadd.f32 %v4253_v22, %v9207_v31  ;;  %v4431_v7 = vand.u32 2147483647, %v9585_v50 }
 0x71b   : > { %v7185_v11 = vpop.eup %7184  ;;  %v5181_v61 = vadd.f32 1.0, %v7183_v62  ;;  %7192 = vpow2.f32 %v5126_v2  ;;  %v9576_v27 = vsel %vm4615_vm10, %v7181_v60, %v4647_v12  ;;  %v4349_v26 = vpop.f32.mrf.mxu2  ;;  %v4995_v2 = vld [vmem:[%s7888_s13 + $0x58] sm:$0xff]  ;;  %vm5247_vm15 = vcmp.ge.f32.partialorder %v9553_v14, 0.0 }
 0x71c   : > { %v4398_v34 = vpop.f32.mrf.mxu3  ;;  %v9578_v47 = vadd.f32 %v4993_v51, %v4961_v39  ;;  %7194 = vlog2.f32 %v4867_v1  ;;  %v9582_v20 = vmul.f32 %v9576_v27, %v9576_v27  ;;  %v4649_v16 = vmul.f32 %v7185_v11, %v7171_v24 }
 0x71d   : > { %v7187_v55 = vpop.eup %7186  ;;  %7196 = vrcp.f32 %v5181_v61  ;;  %v4350_v41 = vadd.f32 %v4349_v26, %v4301_v54  ;;  %v4463_v46 = vsub.f32 0.0, %v4431_v7  ;;  %v4303_v10 = vadd.f32 %v4302_v25, %v4254_v58 }
 0x71e   : > { %v7189_v42 = vpop.eup %7188  ;;  %v5057_v13 = vand.u32 2147483647, %v9578_v47  ;;  %v4837_v35 = vsub.f32 1.0, %v7187_v55  ;;  %v4743_v6 = vsub.f32 0.0, %v9582_v20  ;;  %v9590_v0 = vpop.f32.mrf.mxu0  ;;  %v9596_v37 = vsel %vm4617_vm11, %v7185_v11, %v4649_v16 }
 0x71f   : > { %v9592_v49 = vpop.eup %7190  ;;  %v5275_v24 = vmul.f32 %v7189_v42, %v7175_v9  ;;  %7198 = vpow2.f32 %v4514_v15  ;;  %v9603_v43 = vmul.f32 %v9596_v37, %v9596_v37  ;;  %v4518_v51 = vmul.f32 1.442695, %v4463_v46  ;;  %v4305_v54 = vpop.f32.mrf.mxu1 }
 0x720   : > { %v5089_v63 = vsub.f32 0.0, %v5057_v13  ;;  %v4869_v57 = vadd.f32 1e-20, %v4837_v35  ;;  %v4790_v45 = vmul.f32 1.442695, %v4743_v6  ;;  %v4555_v3 = vadd.f32 1.0, %v9592_v49 }
 0x721   : > { %v7193_v5 = vpop.eup %7192  ;;  %v5307_v9 = vsel %vm5243_vm12, %v7189_v42, %v5275_v24  ;;  %v4745_v53 = vsub.f32 0.0, %v9603_v43  ;;  %v9613_v1 = vadd.f32 %v4398_v34, %v4350_v41  ;;  %vm4621_vm1 = vcmp.ge.f32.partialorder %v9558_v52, 0.0  ;;  %v4997_v42 = vld [vmem:[%s7888_s13 + $0x68] sm:$0xff] }
 0x722   : > { %v7195_v22 = vpop.eup %7194  ;;  %v5339_v38 = vmul.f32 %v5307_v9, %v9394_v36  ;;  %v5183_v8 = vadd.f32 1.0, %v7193_v5  ;;  %v5130_v44 = vmul.f32 1.442695, %v5089_v63  ;;  %7200 = vlog2.f32 %v4869_v57 }
 0x723   : > { %v7197_v48 = vpop.eup %7196  ;;  %v4911_v60 = vmul.f32 0.6931472, %v7195_v22  ;;  %7202 = vpow2.f32 %v4790_v45  ;;  %v4351_v29 = vpop.f32.mrf.mxu2  ;;  %v4794_v15 = vmul.f32 1.442695, %v4745_v53  ;;  %v4433_v61 = vand.u32 2147483647, %v9613_v1 }
 0x724   : > { %5371 = vst [vmem:[%s9079_s10 + $0x18] sm:$0xff] %v5339_v38  ;;  %v5277_v21 = vmul.f32 %v7197_v48, %v7183_v62  ;;  %7204 = vrcp.f32 %v5183_v8  ;;  %v4400_v12 = vpop.f32.mrf.mxu3  ;;  %v4352_v4 = vadd.f32 %v4351_v29, %v4303_v10  ;;  %v4257_v41 = vadd.f32 %v9590_v0, %v9207_v31 }
 0x725   : > { %v9615_v39 = vpop.eup %7198  ;;  %7206 = vpow2.f32 %v5130_v44  ;;  %v4963_v36 = vsub.f32 %v4911_v60, %v4739_v19  ;;  %v4465_v59 = vsub.f32 0.0, %v4433_v61  ;;  %vm5249_vm3 = vcmp.ge.f32.partialorder %v9578_v47, 0.0 }
 0x726   : > { %v5309_v11 = vsel %vm5245_vm13, %v7197_v48, %v5277_v21  ;;  %7208 = vrcp.f32 %v4555_v3  ;;  %v4557_v62 = vadd.f32 1.0, %v9615_v39  ;;  %v9630_v19 = vadd.f32 %v4400_v12, %v4352_v4  ;;  %v4258_v16 = vpop.f32.mrf.mxu0 }
 0x727   : > { %v5341_v26 = vmul.f32 %v5309_v11, %v9422_v23  ;;  %v9626_v34 = vadd.f32 %v4995_v2, %v4963_v36  ;;  %7210 = vpow2.f32 %v4794_v15  ;;  %v4522_v35 = vmul.f32 1.442695, %v4465_v59  ;;  %v4307_v36 = vpop.f32.mrf.mxu1 }
 0x728   : > { %v7201_v30 = vpop.eup %7200  ;;  %7212 = vrcp.f32 %v4557_v62  ;;  %v4435_v24 = vand.u32 2147483647, %v9630_v19  ;;  %v4259_v9 = vadd.f32 %v4258_v16, %v9207_v31  ;;  %vm4623_vm0 = vcmp.ge.f32.partialorder %v9585_v50, 0.0 }
 0x729   : > { %v7203_v25 = vpop.eup %7202  ;;  %5373 = vst [vmem:[%s9079_s10 + $0x28] sm:$0xff] %v5341_v26  ;;  %v5059_v55 = vand.u32 2147483647, %v9626_v34  ;;  %v4915_v58 = vmul.f32 0.6931472, %v7201_v30  ;;  %7214 = vpow2.f32 %v4518_v51  ;;  %v4306_v51 = vadd.f32 %v4305_v54, %v4257_v41 }
 0x72a   : > { %v7205_v23 = vpop.eup %7204  ;;  %v4839_v13 = vsub.f32 1.0, %v7203_v25  ;;  %7216 = vpow2.f32 %v4522_v35  ;;  %v4467_v8 = vsub.f32 0.0, %v4435_v24  ;;  %v4308_v11 = vadd.f32 %v4307_v36, %v4259_v9 }
 0x72b   : > { %v7207_v7 = vpop.eup %7206  ;;  %v5279_v63 = vmul.f32 %v7205_v23, %v7193_v5  ;;  %v5091_v57 = vsub.f32 0.0, %v5059_v55  ;;  %v4965_v45 = vsub.f32 %v4915_v58, %v4741_v17  ;;  %v4354_v3 = vpop.f32.mrf.mxu2  ;;  %vm4625_vm2 = vcmp.ge.f32.partialorder %v9613_v1, 0.0 }
 0x72c   : > { %v7209_v46 = vpop.eup %7208  ;;  %v5185_v22 = vadd.f32 1.0, %v7207_v7  ;;  %v4871_v38 = vadd.f32 1e-20, %v4839_v13  ;;  %v4526_v10 = vmul.f32 1.442695, %v4467_v8  ;;  %v4403_v29 = vpop.f32.mrf.mxu3  ;;  %v4355_v54 = vadd.f32 %v4354_v3, %v4306_v51  ;;  %v4999_v3 = vld [vmem:[%s7888_s13 + $0x78] sm:$0xff] }
 0x72d   : > { %v7211_v44 = vpop.eup %7210  ;;  %v5311_v0 = vsel %vm5247_vm15, %v7205_v23, %v5279_v63  ;;  %v5134_v48 = vmul.f32 1.442695, %v5091_v57  ;;  %v9644_v60 = vadd.f32 %v4997_v42, %v4965_v45  ;;  %v4651_v5 = vmul.f32 %v7209_v46, %v9592_v49 }
 0x72e   : > { %v7213_v40 = vpop.eup %7212  ;;  %v5343_v17 = vmul.f32 %v5311_v0, %v9445_v28  ;;  %7218 = vrcp.f32 %v5185_v22  ;;  %v4841_v31 = vsub.f32 1.0, %v7211_v44  ;;  %v9673_v55 = vadd.f32 %v4403_v29, %v4355_v54 }
 0x72f   : > { %v7215_v21 = vpop.eup %7214  ;;  %7220 = vpow2.f32 %v5134_v48  ;;  %v5061_v2 = vand.u32 2147483647, %v9644_v60  ;;  %v9651_v14 = vsel %vm4619_vm14, %v7209_v46, %v4651_v5  ;;  %v4653_v28 = vmul.f32 %v7213_v40, %v9615_v39  ;;  %v5001_v48 = vld [vmem:[%s7888_s13 + $0x88] sm:$0xff] }
 0x730   : > { %5375 = vst [vmem:[%s9079_s10 + $0x38] sm:$0xff] %v5343_v17  ;;  %7222 = vlog2.f32 %v4871_v38  ;;  %v4873_v12 = vadd.f32 1e-20, %v4841_v31  ;;  %v9656_v49 = vmul.f32 %v9651_v14, %v9651_v14  ;;  %v4559_v4 = vadd.f32 1.0, %v7215_v21  ;;  %v9659_v62 = vpop.eup %7216 }
 0x731   : > { %v5093_v15 = vsub.f32 0.0, %v5061_v2  ;;  %7224 = vpow2.f32 %v4526_v10  ;;  %v9664_v61 = vsel %vm4621_vm1, %v7213_v40, %v4653_v28  ;;  %v4561_v39 = vadd.f32 1.0, %v9659_v62 }
 0x732   : > { %7226 = vlog2.f32 %v4873_v12  ;;  %v4747_v18 = vsub.f32 0.0, %v9656_v49  ;;  %v9668_v30 = vmul.f32 %v9664_v61, %v9664_v61  ;;  %v4437_v41 = vand.u32 2147483647, %v9673_v55 }
 0x733   : > { %v5138_v26 = vmul.f32 1.442695, %v5093_v15  ;;  %7228 = vrcp.f32 %v4559_v4  ;;  %v4356_v59 = vpop.f32.mrf.mxu2  ;;  %vm5251_vm4 = vcmp.ge.f32.partialorder %v9626_v34, 0.0  ;;  %vm4627_vm5 = vcmp.ge.f32.partialorder %v9630_v19, 0.0 }
 0x734   : > { %v7219_v16 = vpop.eup %7218  ;;  %v4798_v25 = vmul.f32 1.442695, %v4747_v18  ;;  %v4749_v23 = vsub.f32 0.0, %v9668_v30  ;;  %v4357_v42 = vadd.f32 %v4356_v59, %v4308_v11  ;;  %v4469_v46 = vsub.f32 0.0, %v4437_v41  ;;  %v4405_v22 = vpop.f32.mrf.mxu3 }
 0x735   : > { %v7221_v58 = vpop.eup %7220  ;;  %v5281_v52 = vmul.f32 %v7219_v16, %v7207_v7  ;;  %7230 = vpow2.f32 %v5138_v26  ;;  %vm5253_vm6 = vcmp.ge.f32.partialorder %v9644_v60, 0.0  ;;  %vm4629_vm7 = vcmp.ge.f32.partialorder %v9673_v55, 0.0 }
 0x736   : > { %v7223_v13 = vpop.eup %7222  ;;  %v5187_v35 = vadd.f32 1.0, %v7221_v58  ;;  %7232 = vpow2.f32 %v4798_v25  ;;  %v4802_v7 = vmul.f32 1.442695, %v4749_v23  ;;  %v9687_v0 = vadd.f32 %v4405_v22, %v4357_v42 }
 0x737   : > { %v9678_v24 = vpop.eup %7224  ;;  %v5313_v63 = vsel %vm5249_vm3, %v7219_v16, %v5281_v52  ;;  %v4919_v57 = vmul.f32 0.6931472, %v7223_v13  ;;  %7234 = vrcp.f32 %v4561_v39  ;;  %v4530_v40 = vmul.f32 1.442695, %v4469_v46 }
 0x738   : > { %v7227_v45 = vpop.eup %7226  ;;  %v5345_v9 = vmul.f32 %v5313_v63, %v9470_v33  ;;  %7236 = vrcp.f32 %v5187_v35  ;;  %v4563_v47 = vadd.f32 1.0, %v9678_v24  ;;  %v4439_v20 = vand.u32 2147483647, %v9687_v0 }
 0x739   : > { %v7229_v38 = vpop.eup %7228  ;;  %v4967_v8 = vsub.f32 %v4919_v57, %v4743_v6  ;;  %v4923_v44 = vmul.f32 0.6931472, %v7227_v45  ;;  %7238 = vpow2.f32 %v4802_v7  ;;  %vm4631_vm10 = vcmp.ge.f32.partialorder %v9687_v0, 0.0 }
 0x73a   : > { %5377 = vst [vmem:[%s9079_s10 + $0x48] sm:$0xff] %v5345_v9  ;;  %v4655_v5 = vmul.f32 %v7229_v38, %v7215_v21  ;;  %7240 = vrcp.f32 %v4563_v47  ;;  %v4471_v11 = vsub.f32 0.0, %v4439_v20 }
 0x73b   : > { %v7231_v33 = vpop.eup %7230  ;;  %v9691_v17 = vadd.f32 %v4999_v3, %v4967_v8  ;;  %v4969_v31 = vsub.f32 %v4923_v44, %v4745_v53  ;;  %7242 = vpow2.f32 %v4530_v40 }
 0x73c   : > { %v7233_v6 = vpop.eup %7232  ;;  %v5189_v10 = vadd.f32 1.0, %v7231_v33  ;;  %v9697_v29 = vsel %vm4623_vm0, %v7229_v38, %v4655_v5  ;;  %v4534_v45 = vmul.f32 1.442695, %v4471_v11 }
 0x73d   : > { %v7235_v2 = vpop.eup %7234  ;;  %v5063_v21 = vand.u32 2147483647, %v9691_v17  ;;  %v9700_v51 = vadd.f32 %v5001_v48, %v4969_v31  ;;  %v4843_v12 = vsub.f32 1.0, %v7233_v6  ;;  %v9706_v50 = vmul.f32 %v9697_v29, %v9697_v29  ;;  %v5003_v48 = vld [vmem:[%s7888_s13 + $0x98] sm:$0xff]  ;;  %v5005_v6 = vld [vmem:[%s7888_s13 + $0xa8] sm:$0xff] }
 0x73e   : > { %v7237_v28 = vpop.eup %7236  ;;  %7244 = vrcp.f32 %v5189_v10  ;;  %v4657_v43 = vmul.f32 %v7235_v2, %v9659_v62  ;;  %vm5255_vm8 = vcmp.ge.f32.partialorder %v9691_v17, 0.0 }
 0x73f   : > { %v7239_v53 = vpop.eup %7238  ;;  %v5283_v36 = vmul.f32 %v7237_v28, %v7221_v58  ;;  %v5095_v15 = vsub.f32 0.0, %v5063_v21  ;;  %v5065_v4 = vand.u32 2147483647, %v9700_v51  ;;  %v4875_v26 = vadd.f32 1e-20, %v4843_v12 }
 0x740   : > { %v7241_v54 = vpop.eup %7240  ;;  %v4845_v39 = vsub.f32 1.0, %v7239_v53  ;;  %v4751_v1 = vsub.f32 0.0, %v9706_v50  ;;  %v9711_v34 = vsel %vm4625_vm2, %v7235_v2, %v4657_v43  ;;  %vm5257_vm9 = vcmp.ge.f32.partialorder %v9700_v51, 0.0 }
 0x741   : > { %v5315_v59 = vsel %vm5251_vm4, %v7237_v28, %v5283_v36  ;;  %v5142_v16 = vmul.f32 1.442695, %v5095_v15  ;;  %v5097_v25 = vsub.f32 0.0, %v5065_v4  ;;  %v9715_v62 = vmul.f32 %v9711_v34, %v9711_v34  ;;  %v7243_v58 = vpop.eup %7242 }
 0x742   : > { %v5347_v52 = vmul.f32 %v5315_v59, %v9515_v56  ;;  %7246 = vlog2.f32 %v4875_v26  ;;  %v4877_v42 = vadd.f32 1e-20, %v4845_v39  ;;  %v4806_v13 = vmul.f32 1.442695, %v4751_v1 }
 0x743   : > { %7248 = vpow2.f32 %v5142_v16  ;;  %v5146_v35 = vmul.f32 1.442695, %v5097_v25  ;;  %v4753_v41 = vsub.f32 0.0, %v9715_v62  ;;  %v4659_v63 = vmul.f32 %v7241_v54, %v9678_v24 }
 0x744   : > { %v7245_v57 = vpop.eup %7244  ;;  %5379 = vst [vmem:[%s9079_s10 + $0x58] sm:$0xff] %v5347_v52  ;;  %7250 = vlog2.f32 %v4877_v42  ;;  %v4565_v7 = vadd.f32 1.0, %v7243_v58 }
 0x745   : > { %v5285_v9 = vmul.f32 %v7245_v57, %v7231_v33  ;;  %7252 = vpow2.f32 %v5146_v35  ;;  %v4810_v56 = vmul.f32 1.442695, %v4753_v41  ;;  %v9726_v3 = vsel %vm4627_vm5, %v7241_v54, %v4659_v63 }
 0x746   : > { %7254 = vpow2.f32 %v4806_v13  ;;  %v9731_v24 = vmul.f32 %v9726_v3, %v9726_v3 }
 0x747   : > { %v5317_v47 = vsel %vm5253_vm6, %v7245_v57, %v5285_v9  ;;  %7256 = vpow2.f32 %v4810_v56 }
 0x748   : > { %v7247_v19 = vpop.eup %7246  ;;  %v5349_v46 = vmul.f32 %v5317_v47, %v9543_v32  ;;  %v4755_v22 = vsub.f32 0.0, %v9731_v24  ;;  %7258 = vrcp.f32 %v4565_v7 }
 0x749   : > { %v7249_v38 = vpop.eup %7248  ;;  %v4927_v8 = vmul.f32 0.6931472, %v7247_v19  ;;  %7260 = vpow2.f32 %v4534_v45 }
 0x74a   : > { %v7251_v44 = vpop.eup %7250  ;;  %5381 = vst [vmem:[%s9079_s10 + $0x68] sm:$0xff] %v5349_v46  ;;  %v5191_v60 = vadd.f32 1.0, %v7249_v38  ;;  %v4814_v5 = vmul.f32 1.442695, %v4755_v22 }
 0x74b   : > { %v7253_v40 = vpop.eup %7252  ;;  %v4971_v33 = vsub.f32 %v4927_v8, %v4747_v18  ;;  %v4931_v31 = vmul.f32 0.6931472, %v7251_v44  ;;  %v5009_v8 = vld [vmem:[%s7888_s13 + $0xc8] sm:$0xff] }
 0x74c   : > { %v7255_v32 = vpop.eup %7254  ;;  %7262 = vrcp.f32 %v5191_v60  ;;  %v5193_v20 = vadd.f32 1.0, %v7253_v40 }
 0x74d   : > { %v7257_v10 = vpop.eup %7256  ;;  %v9742_v2 = vadd.f32 %v5003_v48, %v4971_v33  ;;  %v4973_v21 = vsub.f32 %v4931_v31, %v4749_v23  ;;  %v4847_v12 = vsub.f32 1.0, %v7255_v32  ;;  %7264 = vpow2.f32 %v4814_v5 }
 0x74e   : > { %v7259_v28 = vpop.eup %7258  ;;  %7266 = vrcp.f32 %v5193_v20  ;;  %v4849_v43 = vsub.f32 1.0, %v7257_v10  ;;  %v5011_v10 = vld [vmem:[%s7888_s13 + $0xd8] sm:$0xff] }
 0x74f   : > { %v7261_v53 = vpop.eup %7260  ;;  %v5067_v49 = vand.u32 2147483647, %v9742_v2  ;;  %v9747_v18 = vadd.f32 %v5005_v6, %v4973_v21  ;;  %v4879_v36 = vadd.f32 1e-20, %v4847_v12  ;;  %v4661_v4 = vmul.f32 %v7259_v28, %v7243_v58 }
 0x750   : > { %v4881_v15 = vadd.f32 1e-20, %v4849_v43  ;;  %v4567_v11 = vadd.f32 1.0, %v7261_v53  ;;  %vm5259_vm11 = vcmp.ge.f32.partialorder %v9742_v2, 0.0 }
 0x751   : > { %v5099_v54 = vsub.f32 0.0, %v5067_v49  ;;  %v5069_v26 = vand.u32 2147483647, %v9747_v18  ;;  %7268 = vlog2.f32 %v4879_v36  ;;  %v9751_v23 = vsel %vm4629_vm7, %v7259_v28, %v4661_v4 }
 0x752   : > { %v7263_v30 = vpop.eup %7262  ;;  %7270 = vlog2.f32 %v4881_v15  ;;  %v9755_v52 = vmul.f32 %v9751_v23, %v9751_v23  ;;  %vm5261_vm12 = vcmp.ge.f32.partialorder %v9747_v18, 0.0 }
 0x753   : > { %v7265_v39 = vpop.eup %7264  ;;  %v5287_v59 = vmul.f32 %v7263_v30, %v7249_v38  ;;  %v5150_v16 = vmul.f32 1.442695, %v5099_v54  ;;  %v5101_v25 = vsub.f32 0.0, %v5069_v26  ;;  %7272 = vrcp.f32 %v4567_v11 }
 0x754   : > { %v7267_v58 = vpop.eup %7266  ;;  %v4851_v42 = vsub.f32 1.0, %v7265_v39  ;;  %v4757_v7 = vsub.f32 0.0, %v9755_v52 }
 0x755   : > { %v5319_v13 = vsel %vm5255_vm8, %v7263_v30, %v5287_v59  ;;  %v5289_v55 = vmul.f32 %v7267_v58, %v7253_v40  ;;  %7274 = vpow2.f32 %v5150_v16  ;;  %v5154_v35 = vmul.f32 1.442695, %v5101_v25 }
 0x756   : > { %v5351_v63 = vmul.f32 %v5319_v13, %v9576_v27  ;;  %v4883_v57 = vadd.f32 1e-20, %v4851_v42  ;;  %v4818_v19 = vmul.f32 1.442695, %v4757_v7  ;;  %v5007_v27 = vld [vmem:[%s7888_s13 + $0xb8] sm:$0xff] }
 0x757   : > { %v7269_v45 = vpop.eup %7268  ;;  %v5321_v9 = vsel %vm5257_vm9, %v7267_v58, %v5289_v55  ;;  %7276 = vpow2.f32 %v5154_v35 }
 0x758   : > { %v7271_v17 = vpop.eup %7270  ;;  %5383 = vst [vmem:[%s9079_s10 + $0x78] sm:$0xff] %v5351_v63  ;;  %v5353_v56 = vmul.f32 %v5321_v9, %v9596_v37  ;;  %v4935_v47 = vmul.f32 0.6931472, %v7269_v45  ;;  %7278 = vlog2.f32 %v4883_v57 }
 0x759   : > { %v4939_v46 = vmul.f32 0.6931472, %v7271_v17  ;;  %v7273_v38 = vpop.eup %7272  ;;  %7280 = vpow2.f32 %v4818_v19 }
 0x75a   : > { %5385 = vst [vmem:[%s9079_s10 + $0x88] sm:$0xff] %v5353_v56  ;;  %v4975_v51 = vsub.f32 %v4935_v47, %v4751_v1  ;;  %v4663_v48 = vmul.f32 %v7273_v38, %v7261_v53 }
 0x75b   : > { %v7275_v44 = vpop.eup %7274  ;;  %v4977_v60 = vsub.f32 %v4939_v46, %v4753_v41 }
 0x75c   : > { %v5195_v37 = vadd.f32 1.0, %v7275_v44  ;;  %v9772_v5 = vadd.f32 %v5007_v27, %v4975_v51  ;;  %v9777_v31 = vsel %vm4631_vm10, %v7273_v38, %v4663_v48 }
 0x75d   : > { %v7277_v40 = vpop.eup %7276  ;;  %v9775_v33 = vadd.f32 %v5009_v8, %v4977_v60  ;;  %v9783_v20 = vmul.f32 %v9777_v31, %v9777_v31 }
 0x75e   : > { %v7279_v50 = vpop.eup %7278  ;;  %7282 = vrcp.f32 %v5195_v37  ;;  %v5197_v1 = vadd.f32 1.0, %v7277_v40  ;;  %v5071_v32 = vand.u32 2147483647, %v9772_v5  ;;  %vm5263_vm13 = vcmp.ge.f32.partialorder %v9772_v5, 0.0 }
 0x75f   : > { %v5073_v62 = vand.u32 2147483647, %v9775_v33  ;;  %v4943_v41 = vmul.f32 0.6931472, %v7279_v50  ;;  %v7281_v6 = vpop.eup %7280  ;;  %v4759_v43 = vsub.f32 0.0, %v9783_v20  ;;  %vm5265_vm14 = vcmp.ge.f32.partialorder %v9775_v33, 0.0 }
 0x760   : > { %7284 = vrcp.f32 %v5197_v1  ;;  %v5103_v0 = vsub.f32 0.0, %v5071_v32  ;;  %v4853_v28 = vsub.f32 1.0, %v7281_v6  ;;  %v5015_v50 = vld [vmem:[%s7888_s13 + $0xf8] sm:$0xff] }
 0x761   : > { %v5105_v21 = vsub.f32 0.0, %v5073_v62  ;;  %v4979_v12 = vsub.f32 %v4943_v41, %v4755_v22  ;;  %v4822_v4 = vmul.f32 1.442695, %v4759_v43 }
 0x762   : > { %v5158_v53 = vmul.f32 1.442695, %v5103_v0  ;;  %v4885_v15 = vadd.f32 1e-20, %v4853_v28 }
 0x763   : > { %v5162_v49 = vmul.f32 1.442695, %v5105_v21  ;;  %v9789_v36 = vadd.f32 %v5011_v10, %v4979_v12 }
 0x764   : > { %v7283_v11 = vpop.eup %7282  ;;  %7286 = vpow2.f32 %v5158_v53 }
 0x765   : > { %v5291_v54 = vmul.f32 %v7283_v11, %v7275_v44  ;;  %7288 = vpow2.f32 %v5162_v49  ;;  %v5075_v26 = vand.u32 2147483647, %v9789_v36  ;;  %vm5267_vm15 = vcmp.ge.f32.partialorder %v9789_v36, 0.0 }
 0x766   : > { %v7285_v24 = vpop.eup %7284  ;;  %7290 = vlog2.f32 %v4885_v15 }
 0x767   : > { %v5323_v22 = vsel %vm5259_vm11, %v7283_v11, %v5291_v54  ;;  %v5293_v30 = vmul.f32 %v7285_v24, %v7277_v40  ;;  %v5107_v39 = vsub.f32 0.0, %v5075_v26  ;;  %7292 = vpow2.f32 %v4822_v4 }
 0x768   : > { %v5355_v59 = vmul.f32 %v5323_v22, %v9651_v14  ;;  %v5013_v14 = vld [vmem:[%s7888_s13 + $0xe8] sm:$0xff] }
 0x769   : > { %v5325_v16 = vsel %vm5261_vm12, %v7285_v24, %v5293_v30  ;;  %v5166_v25 = vmul.f32 1.442695, %v5107_v39 }
 0x76a   : > { %v7287_v58 = vpop.eup %7286  ;;  %5387 = vst [vmem:[%s9079_s10 + $0x98] sm:$0xff] %v5355_v59  ;;  %v5357_v42 = vmul.f32 %v5325_v16, %v9664_v61 }
 0x76b   : > { %v7289_v13 = vpop.eup %7288  ;;  %v5199_v55 = vadd.f32 1.0, %v7287_v58  ;;  %7294 = vpow2.f32 %v5166_v25 }
 0x76c   : > { %v7291_v2 = vpop.eup %7290  ;;  %5389 = vst [vmem:[%s9079_s10 + $0xa8] sm:$0xff] %v5357_v42  ;;  %v5201_v35 = vadd.f32 1.0, %v7289_v13 }
 0x76d   : > { %v7293_v63 = vpop.eup %7292  ;;  %7296 = vrcp.f32 %v5199_v55  ;;  %v4947_v57 = vmul.f32 0.6931472, %v7291_v2 }
 0x76e   : > { %7298 = vrcp.f32 %v5201_v35  ;;  %v4855_v45 = vsub.f32 1.0, %v7293_v63 }
 0x76f   : > { %v4981_v18 = vsub.f32 %v4947_v57, %v4757_v7 }
 0x770   : > { %v4887_v9 = vadd.f32 1e-20, %v4855_v45 }
 0x771   : > { %v7295_v17 = vpop.eup %7294  ;;  %v5045_v56 = vadd.f32 %v5013_v14, %v4981_v18 }
 0x772   : > { %v5203_v47 = vadd.f32 1.0, %v7295_v17  ;;  %7300 = vlog2.f32 %v4887_v9 }
 0x773   : > { %v7297_v61 = vpop.eup %7296  ;;  %v5077_v19 = vand.u32 2147483647, %v5045_v56  ;;  %vm5269_vm1 = vcmp.ge.f32.partialorder %v5045_v56, 0.0 }
 0x774   : > { %v7299_v27 = vpop.eup %7298  ;;  %v5295_v46 = vmul.f32 %v7297_v61, %v7287_v58  ;;  %7302 = vrcp.f32 %v5203_v47 }
 0x775   : > { %v5297_v38 = vmul.f32 %v7299_v27, %v7289_v13  ;;  %v5109_v51 = vsub.f32 0.0, %v5077_v19 }
 0x776   : > { %v5327_v8 = vsel %vm5263_vm13, %v7297_v61, %v5295_v46 }
 0x777   : > { %v5359_v52 = vmul.f32 %v5327_v8, %v9697_v29  ;;  %v5329_v7 = vsel %vm5265_vm14, %v7299_v27, %v5297_v38  ;;  %v5170_v44 = vmul.f32 1.442695, %v5109_v51 }
 0x778   : > { %v7301_v60 = vpop.eup %7300  ;;  %v5361_v48 = vmul.f32 %v5329_v7, %v9711_v34 }
 0x779   : > { %5391 = vst [vmem:[%s9079_s10 + $0xb8] sm:$0xff] %v5359_v52  ;;  %7304 = vpow2.f32 %v5170_v44  ;;  %v4951_v37 = vmul.f32 0.6931472, %v7301_v60 }
 0x77a   : > { %v7303_v40 = vpop.eup %7302  ;;  %5393 = vst [vmem:[%s9079_s10 + $0xc8] sm:$0xff] %v5361_v48 }
 0x77b   : > { %v5299_v5 = vmul.f32 %v7303_v40, %v7295_v17  ;;  %v4983_v1 = vsub.f32 %v4951_v37, %v4759_v43 }
 0x77d   : > { %v5331_v33 = vsel %vm5267_vm15, %v7303_v40, %v5299_v5  ;;  %v5047_v29 = vadd.f32 %v5015_v50, %v4983_v1 }
 0x77e   : > { %v5363_v32 = vmul.f32 %v5331_v33, %v9726_v3 }
 0x77f   : > { %v7305_v62 = vpop.eup %7304  ;;  %v5079_v41 = vand.u32 2147483647, %v5047_v29  ;;  %vm5271_vm3 = vcmp.ge.f32.partialorder %v5047_v29, 0.0 }
 0x780   : > { %5395 = vst [vmem:[%s9079_s10 + $0xd8] sm:$0xff] %v5363_v32  ;;  %v5205_v34 = vadd.f32 1.0, %v7305_v62 }
 0x781   : > { %v5111_v6 = vsub.f32 0.0, %v5079_v41 }
 0x782   : > { %7306 = vrcp.f32 %v5205_v34 }
 0x783   : > { %v5174_v0 = vmul.f32 1.442695, %v5111_v6 }
 0x785   : > { %7308 = vpow2.f32 %v5174_v0 }
 0x788   : > { %v7307_v10 = vpop.eup %7306 }
 0x789   : > { %v5301_v20 = vmul.f32 %v7307_v10, %v7305_v62 }
 0x78b   : > { %v7309_v21 = vpop.eup %7308  ;;  %v5333_v12 = vsel %vm5269_vm1, %v7307_v10, %v5301_v20 }
 0x78c   : > { %v5365_v28 = vmul.f32 %v5333_v12, %v9751_v23  ;;  %v5207_v3 = vadd.f32 1.0, %v7309_v21 }
 0x78e   : > { %5397 = vst [vmem:[%s9079_s10 + $0xe8] sm:$0xff] %v5365_v28  ;;  %7310 = vrcp.f32 %v5207_v3 }
 0x794   : > { %v7311_v43 = vpop.eup %7310 }
 0x795   : > { %v5303_v53 = vmul.f32 %v7311_v43, %v7309_v21 }
 0x797   : > { %v5335_v49 = vsel %vm5271_vm3, %v7311_v43, %v5303_v53 }
 0x798   : > { %v5367_v36 = vmul.f32 %v5335_v49, %v9777_v31 }
 0x79a   : > { %5399 = vst [vmem:[%s9079_s10 + $0xf8] sm:$0xff] %v5367_v36 }
 0x79b   : > { %7519 = shalt.err (!%p7516_p0)
}
 0x79c   : > { %s7580_s17 = smov 256   ;;  %s7581_s23 = smov 16  }
 0x79d   : > { %6751 = dma.vmem_to_hbm [thread:$0]  (%p7768_p7), %s5452_s4, 4096, %s5454_s28, %s5433_s11, %s7580_s17, %s7580_s17, %s7581_s23  }
 0x79e PF: > { %s9956_s24 = sld [smem:[#allocation19_spill]] }
 0x79f   : > { %s9958_s19 = sld [smem:[#allocation20_spill]] }
 0x7a4   : > { %s5472_s5 = sand.u32 1, %s9956_s24  }
 0x7a5   : > { %p9959_p8 = scmp.ge.s32.totalorder %s9958_s19, 2  ;;  %s5473_s10 = scalar_lea.sflag [#allocation4], %s5472_s5 }
 0x7a7   : > { %p6774_p9 = pnand %p9959_p8, %p7727_p6 }
 0x7a9   : > { %p6775_p12 = pneg %p6774_p9 }
 0x7ab   : > { %7553 = dma.done.wait (%p6775_p12), %s5473_s10, 4096  }
 0x7ac   : > { %7555 = vsyncadd (%p6775_p12), %s5473_s10, 4294963200  ;;  %s9960_s27 = sld [smem:[#allocation22_spill]]  ;;  %s9962_s2 = smov %s7562_s25 }
 0x7ad   : > { %s9961_s22 = sld [smem:[#allocation23_spill]]  ;;  %s9963_s25 = smov %s7566_s26 }
 0x7b2   : > { %p40_p3 = scmp.ge.s32.totalorder %s9960_s27, 4  }
 0x7b3   : > { %s9964_s26 = smov %s9961_s22 }
 0x7b4   :  { %42 = sbr.rel (!%p40_p3) target bundleno = 30 (0x1e), region = 196 }
 0x7b9   :  { %5487 = vsyncpa [#allocation3], 1 }
 0x7ba   :  { %5489 = vsyncpa [#allocation3 + $0x1], 1 }
 0x7bb   :  { %5490 = vsyncpa [#allocation6], 1 }
 0x7bc   :  { %5492 = vsyncpa [#allocation6 + $0x1], 1 }
 0x7bd   :  { %5493 = vsyncpa [#allocation9], 1 }
 0x7be   :  { %5494 = vsyncpa [#allocation12], 1 }
 0x7bf   :  { %5495 = vsyncpa [#allocation4], 1 }
 0x7c0   :  { %5497 = vsyncpa [#allocation4 + $0x1], 1 }

</bundles_post_ra>
